<compile_context>
chip_gen: v5e
topology: v5e:2x2
jax: 0.10.0
libtpu: 0.0.40
codegen_flags: <defaults>
</compile_context>

<pallas_src>
import functools

import numpy as np

import jax
import jax.numpy as jnp
from jax import lax
from jax.experimental import pallas as pl
from jax.experimental.pallas import tpu as pltpu

K = 5          # conv kernel size
C_OUT = 16     # conv output channels
PAD = 2        # "same" padding for k=5
EPS = 1e-5     # BatchNorm eps (PyTorch default)
VMEM_LIMIT_BYTES = 48 * 1024 * 1024


def _pick_th(H):
    """H-tile: 16 (M=256, v6e/v7x MXU) if possible, else 8 (M=128), else whole H."""
    for t in (16, 8):
        if H % t == 0:
            return t
    return H


def _pick_td(D, H, W, max_slab_bytes=4 << 20):
    """Depth-tile: <=8, divides D, keeps the per-step bf16 output slab at a few MB."""
    cap = max(1, min(8, D, max_slab_bytes // (C_OUT * H * W * 2)))
    for t in range(cap, 0, -1):
        if D % t == 0:
            return t
    return 1


def _pick_tb(total, cap=1 << 15):
    """Lane-dense chunk of D*H*W for the BN+ELU kernel.  Never falls back to whole-volume:
    if no multiple-of-128 divisor exists, returns `cap` and the grid uses pl.cdiv (the
    ragged last block is masked by Pallas)."""
    if total <= cap:
        return total
    t = cap - (cap % 128)
    while t >= 128:
        if total % t == 0:
            return t
        t -= 128
    return cap


def _conv_stats_kernel(xp_ref, band_ref, y_ref, stats_ref, *, TD, TH, n_ht, W):
    """One (batch, depth-tile) grid step.

    For every output depth slice (fori_loop over dd) and H-tile (small static loop):
      25 banded MXU matmuls  band[kd*K+kw] (C_OUT*TH, TH+4) @ x_window (TH+4, W)
    accumulated in f32, then a single bf16 store of the (C_OUT, TH, W) slab and a
    per-row (sum, sum_sq) update for the batch-norm statistics.
    """
    R = TH + K - 1
    CT = C_OUT * TH
    d0 = pl.program_id(1) * TD                      # global output-depth start of this tile

    def depth_step(dd, carry):
        rs, rq = carry
        for ht in range(n_ht):
            h0 = ht * TH
            acc = jnp.zeros((CT, W), jnp.float32)
            for kd in range(K):
                src = d0 + dd + kd                  # padded-input depth plane
                for kw in range(K):
                    rhs = xp_ref[0, src, pl.ds(h0, R), pl.ds(kw, W)]     # (TH+4, W) bf16
                    acc = acc + jnp.dot(band_ref[kd * K + kw], rhs,
                                        preferred_element_type=jnp.float32)
            # rows of acc are (c, dh)-ordered; reshape only splits the sublane dim.
            y_ref[0, :, dd, pl.ds(h0, TH), :] = (
                acc.reshape(C_OUT, TH, W).astype(y_ref.dtype))
            rs = rs + jnp.sum(acc, axis=1, keepdims=True)
            rq = rq + jnp.sum(acc * acc, axis=1, keepdims=True)
        return rs, rq

    zeros = jnp.zeros((CT, 1), jnp.float32)
    rs, rq = lax.fori_loop(0, TD, depth_step, (zeros, zeros))
    stats_ref[0, 0] = jnp.concatenate([rs, rq], axis=1)      # (C_OUT*TH, 2) partial stats


def _bn_elu_kernel(y_ref, scale_ref, shift_ref, o_ref):
    """z = y*scale + shift ; ELU(alpha=1).  Blocks are (1, C_OUT, TB) -> lane-dense."""
    z = y_ref[0].astype(jnp.float32) * scale_ref[...] + shift_ref[...]
    o_ref[0] = jnp.where(z > 0, z, jnp.exp(z) - 1.0)


def input_transition_forward(x_ncdhw, conv_w, conv_b, gamma, beta, eps=EPS):
    """x_ncdhw: (N, 1, D, H, W) -> (N, 16, D, H, W)  (PyTorch forward with elu=True)."""
    N, c_in, D, H, W = x_ncdhw.shape
    assert c_in == 1
    Dp, Hp, Wp = D + 2 * PAD, H + 2 * PAD, W + 2 * PAD

    TH = _pick_th(H)
    n_ht = H // TH
    R = TH + K - 1

    # bf16 padded input (single channel); the full padded volume per batch element is tiny
    # and stays resident per grid step.
    xp = jnp.pad(x_ncdhw[:, 0].astype(jnp.bfloat16),
                 ((0, 0), (PAD, PAD), (PAD, PAD), (PAD, PAD)))            # (N, Dp, Hp, Wp)

    # Banded weights over an H-tile:
    #   band[kd*K+kw, c*TH+dh, r] = W[c, 0, kd, r-dh, kw]   for 0 <= r-dh < K,  r in [0, TH+4)
    # built with an exact 0/1 mask multiply (no matmul -> no precision surprises).
    w4 = conv_w[:, 0].astype(jnp.float32)                                 # (C_OUT, K, K, K)
    sel = np.zeros((K, TH, R), np.float32)
    for kh in range(K):
        sel[kh, np.arange(TH), np.arange(TH) + kh] = 1.0
    sel = jnp.asarray(sel)                                                # (K, TH, R)
    w_t = jnp.transpose(w4, (1, 3, 0, 2))                                 # (kd, kw, c, kh)
    band = jnp.sum(w_t[:, :, :, :, None, None] * sel[None, None, None, :, :, :], axis=3)
    band = band.reshape(K * K, C_OUT * TH, R).astype(jnp.bfloat16)

    # NOTE: the conv bias is NOT applied.  Training-mode BatchNorm subtracts the batch mean,
    # so a per-channel constant cancels exactly in the forward output.
    del conv_b

    TD = _pick_td(D, H, W)
    n_dt = D // TD

    conv_kern = functools.partial(_conv_stats_kernel, TD=TD, TH=TH, n_ht=n_ht, W=W)
    y, stats = pl.pallas_call(
        conv_kern,
        out_shape=(
            jax.ShapeDtypeStruct((N, C_OUT, D, H, W), jnp.bfloat16),       # conv intermediate
            jax.ShapeDtypeStruct((N, n_dt, C_OUT * TH, 2), jnp.float32),   # per-step partials
        ),
        grid_spec=pltpu.PrefetchScalarGridSpec(
            num_scalar_prefetch=0,
            grid=(N, n_dt),
            in_specs=[
                pl.BlockSpec((1, Dp, Hp, Wp), lambda n, t: (n, 0, 0, 0)),       # full depth
                pl.BlockSpec((K * K, C_OUT * TH, R), lambda n, t: (0, 0, 0)),   # banded weights
            ],
            out_specs=[
                pl.BlockSpec((1, C_OUT, TD, H, W), lambda n, t: (n, 0, t, 0, 0)),
                pl.BlockSpec((1, 1, C_OUT * TH, 2), lambda n, t: (n, t, 0, 0)),
            ],
        ),
        compiler_params=pltpu.CompilerParams(
            dimension_semantics=("parallel", "parallel"),
            vmem_limit_bytes=VMEM_LIMIT_BYTES),
    )(xp, band)

    # training-mode batch-norm statistics (biased variance); tiny 16-element math in plain JAX
    count = float(N * D * H * W)
    red = jnp.sum(stats, axis=(0, 1)).reshape(C_OUT, TH, 2).sum(axis=1)   # (C_OUT, 2)
    mean = red[:, 0] / count
    var = jnp.maximum(red[:, 1] / count - mean * mean, 0.0)
    scale = gamma.astype(jnp.float32) / jnp.sqrt(var + eps)
    shift = beta.astype(jnp.float32) - mean * scale

    total = D * H * W
    TB = _pick_tb(total)
    n_tb = pl.cdiv(total, TB)
    y3 = y.reshape(N, C_OUT, total)                   # free view: lane-dense BN/ELU blocks

    out3 = pl.pallas_call(
        _bn_elu_kernel,
        out_shape=jax.ShapeDtypeStruct((N, C_OUT, total), jnp.float32),
        grid_spec=pltpu.PrefetchScalarGridSpec(
            num_scalar_prefetch=0,
            grid=(N, n_tb),
            in_specs=[
                pl.BlockSpec((1, C_OUT, TB), lambda n, t: (n, 0, t)),
                pl.BlockSpec((C_OUT, 1), lambda n, t: (0, 0)),
                pl.BlockSpec((C_OUT, 1), lambda n, t: (0, 0)),
            ],
            out_specs=pl.BlockSpec((1, C_OUT, TB), lambda n, t: (n, 0, t)),
        ),
        compiler_params=pltpu.CompilerParams(
            dimension_semantics=("parallel", "parallel"),
            vmem_limit_bytes=VMEM_LIMIT_BYTES),
    )(y3, scale.reshape(C_OUT, 1), shift.reshape(C_OUT, 1))

    return out3.reshape(N, C_OUT, D, H, W)


def reference_forward(x, conv_w, conv_b, gamma, beta, eps=EPS):
    """Pure-JAX f32 reference of the PyTorch forward (elu=True), conv bias included."""
    y = lax.conv_general_dilated(
        x, conv_w, window_strides=(1, 1, 1),
        padding=[(PAD, PAD)] * 3,
        dimension_numbers=("NCDHW", "OIDHW", "NCDHW"),
        precision=lax.Precision.HIGHEST)
    y = y + conv_b.reshape(1, C_OUT, 1, 1, 1)
    mean = jnp.mean(y, axis=(0, 2, 3, 4), keepdims=True)
    var = jnp.var(y, axis=(0, 2, 3, 4), keepdims=True)     # biased, as in training-mode BN
    z = (y - mean) / jnp.sqrt(var + eps)
    z = z * gamma.reshape(1, C_OUT, 1, 1, 1) + beta.reshape(1, C_OUT, 1, 1, 1)
    return jnp.where(z > 0, z, jnp.exp(z) - 1.0)


if __name__ == "__main__":
    key = jax.random.PRNGKey(0)
    k_x, k_w, k_b, k_g, k_beta = jax.random.split(key, 5)

    N, D, H, W = 2, 8, 8, 8
    x = jax.random.normal(k_x, (N, 1, D, H, W), dtype=jnp.float32)

    # deterministic synthetic parameters (shapes from nn.Conv3d(1,16,5) / BatchNorm3d(16))
    conv_w = 0.05 * jax.random.normal(k_w, (C_OUT, 1, K, K, K), dtype=jnp.float32)
    conv_b = 0.1 * jax.random.normal(k_b, (C_OUT,), dtype=jnp.float32)
    gamma = 1.0 + 0.1 * jax.random.normal(k_g, (C_OUT,), dtype=jnp.float32)
    beta = 0.1 * jax.random.normal(k_beta, (C_OUT,), dtype=jnp.float32)

    fwd = jax.jit(input_transition_forward)
    out = jax.block_until_ready(fwd(x, conv_w, conv_b, gamma, beta))
    assert out.shape == (N, C_OUT, D, H, W)

    ref = jax.block_until_ready(reference_forward(x, conv_w, conv_b, gamma, beta))
    # tolerance covers the bf16 matmul operands / bf16 intermediate (stats stay f32)
    err = float(jnp.max(jnp.abs(out - ref)))
    assert jnp.allclose(out, ref, atol=5e-2, rtol=5e-2), err

    print("KERNEL_OK")
</pallas_src>

<mosaic_0001>
module attributes {stable_mosaic.version = 11 : i64} {
  func.func @_conv_stats_kernel(%arg0: i32, %arg1: i32, %arg2: memref<1x12x12x12xbf16, #tpu.memory_space<vmem>>, %arg3: memref<25x128x12xbf16, #tpu.memory_space<vmem>>, %arg4: memref<1x16x8x8x8xbf16, #tpu.memory_space<vmem>>, %arg5: memref<1x1x128x2xf32, #tpu.memory_space<vmem>>) attributes {dimension_semantics = [#tpu.dimension_semantics<parallel>, #tpu.dimension_semantics<parallel>], iteration_bounds = array<i64: 2, 1>, scalar_prefetch = 0 : i64, scratch_operands = 0 : i64, tpu.core_type = #tpu.core_type<tc>, window_params = [{transform_indices = @transform_0, window_bounds = array<i64: 1, 12, 12, 12>}, {pipeline_mode = #tpu.pipeline_mode<synchronous>, transform_indices = @transform_1, window_bounds = array<i64: 25, 128, 12>}, {transform_indices = @transform_2, window_bounds = array<i64: 1, 16, 8, 8, 8>}, {transform_indices = @transform_3, window_bounds = array<i64: 1, 1, 128, 2>}]} {
    %c8_i32 = arith.constant 8 : i32
    %0 = arith.muli %arg1, %c8_i32 : i32
    %cst = arith.constant 0.000000e+00 : f32
    %1 = vector.broadcast %cst : f32 to vector<128x1xf32>
    %c0_i32 = arith.constant 0 : i32
    %c8_i32_0 = arith.constant 8 : i32
    %2 = arith.addi %c0_i32, %c8_i32_0 : i32
    %c1_i32 = arith.constant 1 : i32
    %3:2 = scf.for %arg6 = %c0_i32 to %2 step %c1_i32 iter_args(%arg7 = %1, %arg8 = %1) -> (vector<128x1xf32>, vector<128x1xf32>)  : i32 {
      %cst_5 = arith.constant 0.000000e+00 : f32
      %8 = vector.broadcast %cst_5 : f32 to vector<128x8xf32>
      %9 = arith.addi %0, %arg6 : i32
      %c0_i32_6 = arith.constant 0 : i32
      %10 = arith.addi %9, %c0_i32_6 : i32
      %c0_7 = arith.constant 0 : index
      %11 = arith.index_cast %10 : i32 to index
      %c0_8 = arith.constant 0 : index
      %c0_9 = arith.constant 0 : index
      %12 = vector.load %arg2[%c0_7, %11, %c0_8, %c0_9] : memref<1x12x12x12xbf16, #tpu.memory_space<vmem>>, vector<1x1x12x8xbf16>
      %13 = vector.shape_cast %12 : vector<1x1x12x8xbf16> to vector<12x8xbf16>
      %c0_10 = arith.constant 0 : index
      %c0_11 = arith.constant 0 : index
      %c0_12 = arith.constant 0 : index
      %14 = vector.load %arg3[%c0_10, %c0_11, %c0_12] : memref<25x128x12xbf16, #tpu.memory_space<vmem>>, vector<1x128x12xbf16>
      %15 = vector.shape_cast %14 : vector<1x128x12xbf16> to vector<128x12xbf16>
      %cst_13 = arith.constant dense<0.000000e+00> : vector<128x8xf32>
      %16 = tpu.matmul %15, %13, %cst_13 {dimension_numbers = #tpu.dot_dimension_numbers<[1], [0], [0], [1], [0, 0, 1, 1], [], []>} : vector<128x12xbf16>, vector<12x8xbf16>, vector<128x8xf32> -> vector<128x8xf32>
      %17 = arith.addf %8, %16 : vector<128x8xf32>
      %c0_14 = arith.constant 0 : index
      %18 = arith.index_cast %10 : i32 to index
      %c0_15 = arith.constant 0 : index
      %c1 = arith.constant 1 : index
      %19 = vector.load %arg2[%c0_14, %18, %c0_15, %c1] : memref<1x12x12x12xbf16, #tpu.memory_space<vmem>>, vector<1x1x12x8xbf16>
      %20 = vector.shape_cast %19 : vector<1x1x12x8xbf16> to vector<12x8xbf16>
      %c1_16 = arith.constant 1 : index
      %c0_17 = arith.constant 0 : index
      %c0_18 = arith.constant 0 : index
      %21 = vector.load %arg3[%c1_16, %c0_17, %c0_18] : memref<25x128x12xbf16, #tpu.memory_space<vmem>>, vector<1x128x12xbf16>
      %22 = vector.shape_cast %21 : vector<1x128x12xbf16> to vector<128x12xbf16>
      %cst_19 = arith.constant dense<0.000000e+00> : vector<128x8xf32>
      %23 = tpu.matmul %22, %20, %cst_19 {dimension_numbers = #tpu.dot_dimension_numbers<[1], [0], [0], [1], [0, 0, 1, 1], [], []>} : vector<128x12xbf16>, vector<12x8xbf16>, vector<128x8xf32> -> vector<128x8xf32>
      %24 = arith.addf %17, %23 : vector<128x8xf32>
      %c0_20 = arith.constant 0 : index
      %25 = arith.index_cast %10 : i32 to index
      %c0_21 = arith.constant 0 : index
      %c2 = arith.constant 2 : index
      %26 = vector.load %arg2[%c0_20, %25, %c0_21, %c2] : memref<1x12x12x12xbf16, #tpu.memory_space<vmem>>, vector<1x1x12x8xbf16>
      %27 = vector.shape_cast %26 : vector<1x1x12x8xbf16> to vector<12x8xbf16>
      %c2_22 = arith.constant 2 : index
      %c0_23 = arith.constant 0 : index
      %c0_24 = arith.constant 0 : index
      %28 = vector.load %arg3[%c2_22, %c0_23, %c0_24] : memref<25x128x12xbf16, #tpu.memory_space<vmem>>, vector<1x128x12xbf16>
      %29 = vector.shape_cast %28 : vector<1x128x12xbf16> to vector<128x12xbf16>
      %cst_25 = arith.constant dense<0.000000e+00> : vector<128x8xf32>
      %30 = tpu.matmul %29, %27, %cst_25 {dimension_numbers = #tpu.dot_dimension_numbers<[1], [0], [0], [1], [0, 0, 1, 1], [], []>} : vector<128x12xbf16>, vector<12x8xbf16>, vector<128x8xf32> -> vector<128x8xf32>
      %31 = arith.addf %24, %30 : vector<128x8xf32>
      %c0_26 = arith.constant 0 : index
      %32 = arith.index_cast %10 : i32 to index
      %c0_27 = arith.constant 0 : index
      %c3 = arith.constant 3 : index
      %33 = vector.load %arg2[%c0_26, %32, %c0_27, %c3] : memref<1x12x12x12xbf16, #tpu.memory_space<vmem>>, vector<1x1x12x8xbf16>
      %34 = vector.shape_cast %33 : vector<1x1x12x8xbf16> to vector<12x8xbf16>
      %c3_28 = arith.constant 3 : index
      %c0_29 = arith.constant 0 : index
      %c0_30 = arith.constant 0 : index
      %35 = vector.load %arg3[%c3_28, %c0_29, %c0_30] : memref<25x128x12xbf16, #tpu.memory_space<vmem>>, vector<1x128x12xbf16>
      %36 = vector.shape_cast %35 : vector<1x128x12xbf16> to vector<128x12xbf16>
      %cst_31 = arith.constant dense<0.000000e+00> : vector<128x8xf32>
      %37 = tpu.matmul %36, %34, %cst_31 {dimension_numbers = #tpu.dot_dimension_numbers<[1], [0], [0], [1], [0, 0, 1, 1], [], []>} : vector<128x12xbf16>, vector<12x8xbf16>, vector<128x8xf32> -> vector<128x8xf32>
      %38 = arith.addf %31, %37 : vector<128x8xf32>
      %c0_32 = arith.constant 0 : index
      %39 = arith.index_cast %10 : i32 to index
      %c0_33 = arith.constant 0 : index
      %c4 = arith.constant 4 : index
      %40 = vector.load %arg2[%c0_32, %39, %c0_33, %c4] : memref<1x12x12x12xbf16, #tpu.memory_space<vmem>>, vector<1x1x12x8xbf16>
      %41 = vector.shape_cast %40 : vector<1x1x12x8xbf16> to vector<12x8xbf16>
      %c4_34 = arith.constant 4 : index
      %c0_35 = arith.constant 0 : index
      %c0_36 = arith.constant 0 : index
      %42 = vector.load %arg3[%c4_34, %c0_35, %c0_36] : memref<25x128x12xbf16, #tpu.memory_space<vmem>>, vector<1x128x12xbf16>
      %43 = vector.shape_cast %42 : vector<1x128x12xbf16> to vector<128x12xbf16>
      %cst_37 = arith.constant dense<0.000000e+00> : vector<128x8xf32>
      %44 = tpu.matmul %43, %41, %cst_37 {dimension_numbers = #tpu.dot_dimension_numbers<[1], [0], [0], [1], [0, 0, 1, 1], [], []>} : vector<128x12xbf16>, vector<12x8xbf16>, vector<128x8xf32> -> vector<128x8xf32>
      %45 = arith.addf %38, %44 : vector<128x8xf32>
      %46 = arith.addi %0, %arg6 : i32
      %c1_i32_38 = arith.constant 1 : i32
      %47 = arith.addi %46, %c1_i32_38 : i32
      %c0_39 = arith.constant 0 : index
      %48 = arith.index_cast %47 : i32 to index
      %c0_40 = arith.constant 0 : index
      %c0_41 = arith.constant 0 : index
      %49 = vector.load %arg2[%c0_39, %48, %c0_40, %c0_41] : memref<1x12x12x12xbf16, #tpu.memory_space<vmem>>, vector<1x1x12x8xbf16>
      %50 = vector.shape_cast %49 : vector<1x1x12x8xbf16> to vector<12x8xbf16>
      %c5 = arith.constant 5 : index
      %c0_42 = arith.constant 0 : index
      %c0_43 = arith.constant 0 : index
      %51 = vector.load %arg3[%c5, %c0_42, %c0_43] : memref<25x128x12xbf16, #tpu.memory_space<vmem>>, vector<1x128x12xbf16>
      %52 = vector.shape_cast %51 : vector<1x128x12xbf16> to vector<128x12xbf16>
      %cst_44 = arith.constant dense<0.000000e+00> : vector<128x8xf32>
      %53 = tpu.matmul %52, %50, %cst_44 {dimension_numbers = #tpu.dot_dimension_numbers<[1], [0], [0], [1], [0, 0, 1, 1], [], []>} : vector<128x12xbf16>, vector<12x8xbf16>, vector<128x8xf32> -> vector<128x8xf32>
      %54 = arith.addf %45, %53 : vector<128x8xf32>
      %c0_45 = arith.constant 0 : index
      %55 = arith.index_cast %47 : i32 to index
      %c0_46 = arith.constant 0 : index
      %c1_47 = arith.constant 1 : index
      %56 = vector.load %arg2[%c0_45, %55, %c0_46, %c1_47] : memref<1x12x12x12xbf16, #tpu.memory_space<vmem>>, vector<1x1x12x8xbf16>
      %57 = vector.shape_cast %56 : vector<1x1x12x8xbf16> to vector<12x8xbf16>
      %c6 = arith.constant 6 : index
      %c0_48 = arith.constant 0 : index
      %c0_49 = arith.constant 0 : index
      %58 = vector.load %arg3[%c6, %c0_48, %c0_49] : memref<25x128x12xbf16, #tpu.memory_space<vmem>>, vector<1x128x12xbf16>
      %59 = vector.shape_cast %58 : vector<1x128x12xbf16> to vector<128x12xbf16>
      %cst_50 = arith.constant dense<0.000000e+00> : vector<128x8xf32>
      %60 = tpu.matmul %59, %57, %cst_50 {dimension_numbers = #tpu.dot_dimension_numbers<[1], [0], [0], [1], [0, 0, 1, 1], [], []>} : vector<128x12xbf16>, vector<12x8xbf16>, vector<128x8xf32> -> vector<128x8xf32>
      %61 = arith.addf %54, %60 : vector<128x8xf32>
      %c0_51 = arith.constant 0 : index
      %62 = arith.index_cast %47 : i32 to index
      %c0_52 = arith.constant 0 : index
      %c2_53 = arith.constant 2 : index
      %63 = vector.load %arg2[%c0_51, %62, %c0_52, %c2_53] : memref<1x12x12x12xbf16, #tpu.memory_space<vmem>>, vector<1x1x12x8xbf16>
      %64 = vector.shape_cast %63 : vector<1x1x12x8xbf16> to vector<12x8xbf16>
      %c7 = arith.constant 7 : index
      %c0_54 = arith.constant 0 : index
      %c0_55 = arith.constant 0 : index
      %65 = vector.load %arg3[%c7, %c0_54, %c0_55] : memref<25x128x12xbf16, #tpu.memory_space<vmem>>, vector<1x128x12xbf16>
      %66 = vector.shape_cast %65 : vector<1x128x12xbf16> to vector<128x12xbf16>
      %cst_56 = arith.constant dense<0.000000e+00> : vector<128x8xf32>
      %67 = tpu.matmul %66, %64, %cst_56 {dimension_numbers = #tpu.dot_dimension_numbers<[1], [0], [0], [1], [0, 0, 1, 1], [], []>} : vector<128x12xbf16>, vector<12x8xbf16>, vector<128x8xf32> -> vector<128x8xf32>
      %68 = arith.addf %61, %67 : vector<128x8xf32>
      %c0_57 = arith.constant 0 : index
      %69 = arith.index_cast %47 : i32 to index
      %c0_58 = arith.constant 0 : index
      %c3_59 = arith.constant 3 : index
      %70 = vector.load %arg2[%c0_57, %69, %c0_58, %c3_59] : memref<1x12x12x12xbf16, #tpu.memory_space<vmem>>, vector<1x1x12x8xbf16>
      %71 = vector.shape_cast %70 : vector<1x1x12x8xbf16> to vector<12x8xbf16>
      %c8 = arith.constant 8 : index
      %c0_60 = arith.constant 0 : index
      %c0_61 = arith.constant 0 : index
      %72 = vector.load %arg3[%c8, %c0_60, %c0_61] : memref<25x128x12xbf16, #tpu.memory_space<vmem>>, vector<1x128x12xbf16>
      %73 = vector.shape_cast %72 : vector<1x128x12xbf16> to vector<128x12xbf16>
      %cst_62 = arith.constant dense<0.000000e+00> : vector<128x8xf32>
      %74 = tpu.matmul %73, %71, %cst_62 {dimension_numbers = #tpu.dot_dimension_numbers<[1], [0], [0], [1], [0, 0, 1, 1], [], []>} : vector<128x12xbf16>, vector<12x8xbf16>, vector<128x8xf32> -> vector<128x8xf32>
      %75 = arith.addf %68, %74 : vector<128x8xf32>
      %c0_63 = arith.constant 0 : index
      %76 = arith.index_cast %47 : i32 to index
      %c0_64 = arith.constant 0 : index
      %c4_65 = arith.constant 4 : index
      %77 = vector.load %arg2[%c0_63, %76, %c0_64, %c4_65] : memref<1x12x12x12xbf16, #tpu.memory_space<vmem>>, vector<1x1x12x8xbf16>
      %78 = vector.shape_cast %77 : vector<1x1x12x8xbf16> to vector<12x8xbf16>
      %c9 = arith.constant 9 : index
      %c0_66 = arith.constant 0 : index
      %c0_67 = arith.constant 0 : index
      %79 = vector.load %arg3[%c9, %c0_66, %c0_67] : memref<25x128x12xbf16, #tpu.memory_space<vmem>>, vector<1x128x12xbf16>
      %80 = vector.shape_cast %79 : vector<1x128x12xbf16> to vector<128x12xbf16>
      %cst_68 = arith.constant dense<0.000000e+00> : vector<128x8xf32>
      %81 = tpu.matmul %80, %78, %cst_68 {dimension_numbers = #tpu.dot_dimension_numbers<[1], [0], [0], [1], [0, 0, 1, 1], [], []>} : vector<128x12xbf16>, vector<12x8xbf16>, vector<128x8xf32> -> vector<128x8xf32>
      %82 = arith.addf %75, %81 : vector<128x8xf32>
      %83 = arith.addi %0, %arg6 : i32
      %c2_i32 = arith.constant 2 : i32
      %84 = arith.addi %83, %c2_i32 : i32
      %c0_69 = arith.constant 0 : index
      %85 = arith.index_cast %84 : i32 to index
      %c0_70 = arith.constant 0 : index
      %c0_71 = arith.constant 0 : index
      %86 = vector.load %arg2[%c0_69, %85, %c0_70, %c0_71] : memref<1x12x12x12xbf16, #tpu.memory_space<vmem>>, vector<1x1x12x8xbf16>
      %87 = vector.shape_cast %86 : vector<1x1x12x8xbf16> to vector<12x8xbf16>
      %c10 = arith.constant 10 : index
      %c0_72 = arith.constant 0 : index
      %c0_73 = arith.constant 0 : index
      %88 = vector.load %arg3[%c10, %c0_72, %c0_73] : memref<25x128x12xbf16, #tpu.memory_space<vmem>>, vector<1x128x12xbf16>
      %89 = vector.shape_cast %88 : vector<1x128x12xbf16> to vector<128x12xbf16>
      %cst_74 = arith.constant dense<0.000000e+00> : vector<128x8xf32>
      %90 = tpu.matmul %89, %87, %cst_74 {dimension_numbers = #tpu.dot_dimension_numbers<[1], [0], [0], [1], [0, 0, 1, 1], [], []>} : vector<128x12xbf16>, vector<12x8xbf16>, vector<128x8xf32> -> vector<128x8xf32>
      %91 = arith.addf %82, %90 : vector<128x8xf32>
      %c0_75 = arith.constant 0 : index
      %92 = arith.index_cast %84 : i32 to index
      %c0_76 = arith.constant 0 : index
      %c1_77 = arith.constant 1 : index
      %93 = vector.load %arg2[%c0_75, %92, %c0_76, %c1_77] : memref<1x12x12x12xbf16, #tpu.memory_space<vmem>>, vector<1x1x12x8xbf16>
      %94 = vector.shape_cast %93 : vector<1x1x12x8xbf16> to vector<12x8xbf16>
      %c11 = arith.constant 11 : index
      %c0_78 = arith.constant 0 : index
      %c0_79 = arith.constant 0 : index
      %95 = vector.load %arg3[%c11, %c0_78, %c0_79] : memref<25x128x12xbf16, #tpu.memory_space<vmem>>, vector<1x128x12xbf16>
      %96 = vector.shape_cast %95 : vector<1x128x12xbf16> to vector<128x12xbf16>
      %cst_80 = arith.constant dense<0.000000e+00> : vector<128x8xf32>
      %97 = tpu.matmul %96, %94, %cst_80 {dimension_numbers = #tpu.dot_dimension_numbers<[1], [0], [0], [1], [0, 0, 1, 1], [], []>} : vector<128x12xbf16>, vector<12x8xbf16>, vector<128x8xf32> -> vector<128x8xf32>
      %98 = arith.addf %91, %97 : vector<128x8xf32>
      %c0_81 = arith.constant 0 : index
      %99 = arith.index_cast %84 : i32 to index
      %c0_82 = arith.constant 0 : index
      %c2_83 = arith.constant 2 : index
      %100 = vector.load %arg2[%c0_81, %99, %c0_82, %c2_83] : memref<1x12x12x12xbf16, #tpu.memory_space<vmem>>, vector<1x1x12x8xbf16>
      %101 = vector.shape_cast %100 : vector<1x1x12x8xbf16> to vector<12x8xbf16>
      %c12 = arith.constant 12 : index
      %c0_84 = arith.constant 0 : index
      %c0_85 = arith.constant 0 : index
      %102 = vector.load %arg3[%c12, %c0_84, %c0_85] : memref<25x128x12xbf16, #tpu.memory_space<vmem>>, vector<1x128x12xbf16>
      %103 = vector.shape_cast %102 : vector<1x128x12xbf16> to vector<128x12xbf16>
      %cst_86 = arith.constant dense<0.000000e+00> : vector<128x8xf32>
      %104 = tpu.matmul %103, %101, %cst_86 {dimension_numbers = #tpu.dot_dimension_numbers<[1], [0], [0], [1], [0, 0, 1, 1], [], []>} : vector<128x12xbf16>, vector<12x8xbf16>, vector<128x8xf32> -> vector<128x8xf32>
      %105 = arith.addf %98, %104 : vector<128x8xf32>
      %c0_87 = arith.constant 0 : index
      %106 = arith.index_cast %84 : i32 to index
      %c0_88 = arith.constant 0 : index
      %c3_89 = arith.constant 3 : index
      %107 = vector.load %arg2[%c0_87, %106, %c0_88, %c3_89] : memref<1x12x12x12xbf16, #tpu.memory_space<vmem>>, vector<1x1x12x8xbf16>
      %108 = vector.shape_cast %107 : vector<1x1x12x8xbf16> to vector<12x8xbf16>
      %c13 = arith.constant 13 : index
      %c0_90 = arith.constant 0 : index
      %c0_91 = arith.constant 0 : index
      %109 = vector.load %arg3[%c13, %c0_90, %c0_91] : memref<25x128x12xbf16, #tpu.memory_space<vmem>>, vector<1x128x12xbf16>
      %110 = vector.shape_cast %109 : vector<1x128x12xbf16> to vector<128x12xbf16>
      %cst_92 = arith.constant dense<0.000000e+00> : vector<128x8xf32>
      %111 = tpu.matmul %110, %108, %cst_92 {dimension_numbers = #tpu.dot_dimension_numbers<[1], [0], [0], [1], [0, 0, 1, 1], [], []>} : vector<128x12xbf16>, vector<12x8xbf16>, vector<128x8xf32> -> vector<128x8xf32>
      %112 = arith.addf %105, %111 : vector<128x8xf32>
      %c0_93 = arith.constant 0 : index
      %113 = arith.index_cast %84 : i32 to index
      %c0_94 = arith.constant 0 : index
      %c4_95 = arith.constant 4 : index
      %114 = vector.load %arg2[%c0_93, %113, %c0_94, %c4_95] : memref<1x12x12x12xbf16, #tpu.memory_space<vmem>>, vector<1x1x12x8xbf16>
      %115 = vector.shape_cast %114 : vector<1x1x12x8xbf16> to vector<12x8xbf16>
      %c14 = arith.constant 14 : index
      %c0_96 = arith.constant 0 : index
      %c0_97 = arith.constant 0 : index
      %116 = vector.load %arg3[%c14, %c0_96, %c0_97] : memref<25x128x12xbf16, #tpu.memory_space<vmem>>, vector<1x128x12xbf16>
      %117 = vector.shape_cast %116 : vector<1x128x12xbf16> to vector<128x12xbf16>
      %cst_98 = arith.constant dense<0.000000e+00> : vector<128x8xf32>
      %118 = tpu.matmul %117, %115, %cst_98 {dimension_numbers = #tpu.dot_dimension_numbers<[1], [0], [0], [1], [0, 0, 1, 1], [], []>} : vector<128x12xbf16>, vector<12x8xbf16>, vector<128x8xf32> -> vector<128x8xf32>
      %119 = arith.addf %112, %118 : vector<128x8xf32>
      %120 = arith.addi %0, %arg6 : i32
      %c3_i32 = arith.constant 3 : i32
      %121 = arith.addi %120, %c3_i32 : i32
      %c0_99 = arith.constant 0 : index
      %122 = arith.index_cast %121 : i32 to index
      %c0_100 = arith.constant 0 : index
      %c0_101 = arith.constant 0 : index
      %123 = vector.load %arg2[%c0_99, %122, %c0_100, %c0_101] : memref<1x12x12x12xbf16, #tpu.memory_space<vmem>>, vector<1x1x12x8xbf16>
      %124 = vector.shape_cast %123 : vector<1x1x12x8xbf16> to vector<12x8xbf16>
      %c15 = arith.constant 15 : index
      %c0_102 = arith.constant 0 : index
      %c0_103 = arith.constant 0 : index
      %125 = vector.load %arg3[%c15, %c0_102, %c0_103] : memref<25x128x12xbf16, #tpu.memory_space<vmem>>, vector<1x128x12xbf16>
      %126 = vector.shape_cast %125 : vector<1x128x12xbf16> to vector<128x12xbf16>
      %cst_104 = arith.constant dense<0.000000e+00> : vector<128x8xf32>
      %127 = tpu.matmul %126, %124, %cst_104 {dimension_numbers = #tpu.dot_dimension_numbers<[1], [0], [0], [1], [0, 0, 1, 1], [], []>} : vector<128x12xbf16>, vector<12x8xbf16>, vector<128x8xf32> -> vector<128x8xf32>
      %128 = arith.addf %119, %127 : vector<128x8xf32>
      %c0_105 = arith.constant 0 : index
      %129 = arith.index_cast %121 : i32 to index
      %c0_106 = arith.constant 0 : index
      %c1_107 = arith.constant 1 : index
      %130 = vector.load %arg2[%c0_105, %129, %c0_106, %c1_107] : memref<1x12x12x12xbf16, #tpu.memory_space<vmem>>, vector<1x1x12x8xbf16>
      %131 = vector.shape_cast %130 : vector<1x1x12x8xbf16> to vector<12x8xbf16>
      %c16 = arith.constant 16 : index
      %c0_108 = arith.constant 0 : index
      %c0_109 = arith.constant 0 : index
      %132 = vector.load %arg3[%c16, %c0_108, %c0_109] : memref<25x128x12xbf16, #tpu.memory_space<vmem>>, vector<1x128x12xbf16>
      %133 = vector.shape_cast %132 : vector<1x128x12xbf16> to vector<128x12xbf16>
      %cst_110 = arith.constant dense<0.000000e+00> : vector<128x8xf32>
      %134 = tpu.matmul %133, %131, %cst_110 {dimension_numbers = #tpu.dot_dimension_numbers<[1], [0], [0], [1], [0, 0, 1, 1], [], []>} : vector<128x12xbf16>, vector<12x8xbf16>, vector<128x8xf32> -> vector<128x8xf32>
      %135 = arith.addf %128, %134 : vector<128x8xf32>
      %c0_111 = arith.constant 0 : index
      %136 = arith.index_cast %121 : i32 to index
      %c0_112 = arith.constant 0 : index
      %c2_113 = arith.constant 2 : index
      %137 = vector.load %arg2[%c0_111, %136, %c0_112, %c2_113] : memref<1x12x12x12xbf16, #tpu.memory_space<vmem>>, vector<1x1x12x8xbf16>
      %138 = vector.shape_cast %137 : vector<1x1x12x8xbf16> to vector<12x8xbf16>
      %c17 = arith.constant 17 : index
      %c0_114 = arith.constant 0 : index
      %c0_115 = arith.constant 0 : index
      %139 = vector.load %arg3[%c17, %c0_114, %c0_115] : memref<25x128x12xbf16, #tpu.memory_space<vmem>>, vector<1x128x12xbf16>
      %140 = vector.shape_cast %139 : vector<1x128x12xbf16> to vector<128x12xbf16>
      %cst_116 = arith.constant dense<0.000000e+00> : vector<128x8xf32>
      %141 = tpu.matmul %140, %138, %cst_116 {dimension_numbers = #tpu.dot_dimension_numbers<[1], [0], [0], [1], [0, 0, 1, 1], [], []>} : vector<128x12xbf16>, vector<12x8xbf16>, vector<128x8xf32> -> vector<128x8xf32>
      %142 = arith.addf %135, %141 : vector<128x8xf32>
      %c0_117 = arith.constant 0 : index
      %143 = arith.index_cast %121 : i32 to index
      %c0_118 = arith.constant 0 : index
      %c3_119 = arith.constant 3 : index
      %144 = vector.load %arg2[%c0_117, %143, %c0_118, %c3_119] : memref<1x12x12x12xbf16, #tpu.memory_space<vmem>>, vector<1x1x12x8xbf16>
      %145 = vector.shape_cast %144 : vector<1x1x12x8xbf16> to vector<12x8xbf16>
      %c18 = arith.constant 18 : index
      %c0_120 = arith.constant 0 : index
      %c0_121 = arith.constant 0 : index
      %146 = vector.load %arg3[%c18, %c0_120, %c0_121] : memref<25x128x12xbf16, #tpu.memory_space<vmem>>, vector<1x128x12xbf16>
      %147 = vector.shape_cast %146 : vector<1x128x12xbf16> to vector<128x12xbf16>
      %cst_122 = arith.constant dense<0.000000e+00> : vector<128x8xf32>
      %148 = tpu.matmul %147, %145, %cst_122 {dimension_numbers = #tpu.dot_dimension_numbers<[1], [0], [0], [1], [0, 0, 1, 1], [], []>} : vector<128x12xbf16>, vector<12x8xbf16>, vector<128x8xf32> -> vector<128x8xf32>
      %149 = arith.addf %142, %148 : vector<128x8xf32>
      %c0_123 = arith.constant 0 : index
      %150 = arith.index_cast %121 : i32 to index
      %c0_124 = arith.constant 0 : index
      %c4_125 = arith.constant 4 : index
      %151 = vector.load %arg2[%c0_123, %150, %c0_124, %c4_125] : memref<1x12x12x12xbf16, #tpu.memory_space<vmem>>, vector<1x1x12x8xbf16>
      %152 = vector.shape_cast %151 : vector<1x1x12x8xbf16> to vector<12x8xbf16>
      %c19 = arith.constant 19 : index
      %c0_126 = arith.constant 0 : index
      %c0_127 = arith.constant 0 : index
      %153 = vector.load %arg3[%c19, %c0_126, %c0_127] : memref<25x128x12xbf16, #tpu.memory_space<vmem>>, vector<1x128x12xbf16>
      %154 = vector.shape_cast %153 : vector<1x128x12xbf16> to vector<128x12xbf16>
      %cst_128 = arith.constant dense<0.000000e+00> : vector<128x8xf32>
      %155 = tpu.matmul %154, %152, %cst_128 {dimension_numbers = #tpu.dot_dimension_numbers<[1], [0], [0], [1], [0, 0, 1, 1], [], []>} : vector<128x12xbf16>, vector<12x8xbf16>, vector<128x8xf32> -> vector<128x8xf32>
      %156 = arith.addf %149, %155 : vector<128x8xf32>
      %157 = arith.addi %0, %arg6 : i32
      %c4_i32 = arith.constant 4 : i32
      %158 = arith.addi %157, %c4_i32 : i32
      %c0_129 = arith.constant 0 : index
      %159 = arith.index_cast %158 : i32 to index
      %c0_130 = arith.constant 0 : index
      %c0_131 = arith.constant 0 : index
      %160 = vector.load %arg2[%c0_129, %159, %c0_130, %c0_131] : memref<1x12x12x12xbf16, #tpu.memory_space<vmem>>, vector<1x1x12x8xbf16>
      %161 = vector.shape_cast %160 : vector<1x1x12x8xbf16> to vector<12x8xbf16>
      %c20 = arith.constant 20 : index
      %c0_132 = arith.constant 0 : index
      %c0_133 = arith.constant 0 : index
      %162 = vector.load %arg3[%c20, %c0_132, %c0_133] : memref<25x128x12xbf16, #tpu.memory_space<vmem>>, vector<1x128x12xbf16>
      %163 = vector.shape_cast %162 : vector<1x128x12xbf16> to vector<128x12xbf16>
      %cst_134 = arith.constant dense<0.000000e+00> : vector<128x8xf32>
      %164 = tpu.matmul %163, %161, %cst_134 {dimension_numbers = #tpu.dot_dimension_numbers<[1], [0], [0], [1], [0, 0, 1, 1], [], []>} : vector<128x12xbf16>, vector<12x8xbf16>, vector<128x8xf32> -> vector<128x8xf32>
      %165 = arith.addf %156, %164 : vector<128x8xf32>
      %c0_135 = arith.constant 0 : index
      %166 = arith.index_cast %158 : i32 to index
      %c0_136 = arith.constant 0 : index
      %c1_137 = arith.constant 1 : index
      %167 = vector.load %arg2[%c0_135, %166, %c0_136, %c1_137] : memref<1x12x12x12xbf16, #tpu.memory_space<vmem>>, vector<1x1x12x8xbf16>
      %168 = vector.shape_cast %167 : vector<1x1x12x8xbf16> to vector<12x8xbf16>
      %c21 = arith.constant 21 : index
      %c0_138 = arith.constant 0 : index
      %c0_139 = arith.constant 0 : index
      %169 = vector.load %arg3[%c21, %c0_138, %c0_139] : memref<25x128x12xbf16, #tpu.memory_space<vmem>>, vector<1x128x12xbf16>
      %170 = vector.shape_cast %169 : vector<1x128x12xbf16> to vector<128x12xbf16>
      %cst_140 = arith.constant dense<0.000000e+00> : vector<128x8xf32>
      %171 = tpu.matmul %170, %168, %cst_140 {dimension_numbers = #tpu.dot_dimension_numbers<[1], [0], [0], [1], [0, 0, 1, 1], [], []>} : vector<128x12xbf16>, vector<12x8xbf16>, vector<128x8xf32> -> vector<128x8xf32>
      %172 = arith.addf %165, %171 : vector<128x8xf32>
      %c0_141 = arith.constant 0 : index
      %173 = arith.index_cast %158 : i32 to index
      %c0_142 = arith.constant 0 : index
      %c2_143 = arith.constant 2 : index
      %174 = vector.load %arg2[%c0_141, %173, %c0_142, %c2_143] : memref<1x12x12x12xbf16, #tpu.memory_space<vmem>>, vector<1x1x12x8xbf16>
      %175 = vector.shape_cast %174 : vector<1x1x12x8xbf16> to vector<12x8xbf16>
      %c22 = arith.constant 22 : index
      %c0_144 = arith.constant 0 : index
      %c0_145 = arith.constant 0 : index
      %176 = vector.load %arg3[%c22, %c0_144, %c0_145] : memref<25x128x12xbf16, #tpu.memory_space<vmem>>, vector<1x128x12xbf16>
      %177 = vector.shape_cast %176 : vector<1x128x12xbf16> to vector<128x12xbf16>
      %cst_146 = arith.constant dense<0.000000e+00> : vector<128x8xf32>
      %178 = tpu.matmul %177, %175, %cst_146 {dimension_numbers = #tpu.dot_dimension_numbers<[1], [0], [0], [1], [0, 0, 1, 1], [], []>} : vector<128x12xbf16>, vector<12x8xbf16>, vector<128x8xf32> -> vector<128x8xf32>
      %179 = arith.addf %172, %178 : vector<128x8xf32>
      %c0_147 = arith.constant 0 : index
      %180 = arith.index_cast %158 : i32 to index
      %c0_148 = arith.constant 0 : index
      %c3_149 = arith.constant 3 : index
      %181 = vector.load %arg2[%c0_147, %180, %c0_148, %c3_149] : memref<1x12x12x12xbf16, #tpu.memory_space<vmem>>, vector<1x1x12x8xbf16>
      %182 = vector.shape_cast %181 : vector<1x1x12x8xbf16> to vector<12x8xbf16>
      %c23 = arith.constant 23 : index
      %c0_150 = arith.constant 0 : index
      %c0_151 = arith.constant 0 : index
      %183 = vector.load %arg3[%c23, %c0_150, %c0_151] : memref<25x128x12xbf16, #tpu.memory_space<vmem>>, vector<1x128x12xbf16>
      %184 = vector.shape_cast %183 : vector<1x128x12xbf16> to vector<128x12xbf16>
      %cst_152 = arith.constant dense<0.000000e+00> : vector<128x8xf32>
      %185 = tpu.matmul %184, %182, %cst_152 {dimension_numbers = #tpu.dot_dimension_numbers<[1], [0], [0], [1], [0, 0, 1, 1], [], []>} : vector<128x12xbf16>, vector<12x8xbf16>, vector<128x8xf32> -> vector<128x8xf32>
      %186 = arith.addf %179, %185 : vector<128x8xf32>
      %c0_153 = arith.constant 0 : index
      %187 = arith.index_cast %158 : i32 to index
      %c0_154 = arith.constant 0 : index
      %c4_155 = arith.constant 4 : index
      %188 = vector.load %arg2[%c0_153, %187, %c0_154, %c4_155] : memref<1x12x12x12xbf16, #tpu.memory_space<vmem>>, vector<1x1x12x8xbf16>
      %189 = vector.shape_cast %188 : vector<1x1x12x8xbf16> to vector<12x8xbf16>
      %c24 = arith.constant 24 : index
      %c0_156 = arith.constant 0 : index
      %c0_157 = arith.constant 0 : index
      %190 = vector.load %arg3[%c24, %c0_156, %c0_157] : memref<25x128x12xbf16, #tpu.memory_space<vmem>>, vector<1x128x12xbf16>
      %191 = vector.shape_cast %190 : vector<1x128x12xbf16> to vector<128x12xbf16>
      %cst_158 = arith.constant dense<0.000000e+00> : vector<128x8xf32>
      %192 = tpu.matmul %191, %189, %cst_158 {dimension_numbers = #tpu.dot_dimension_numbers<[1], [0], [0], [1], [0, 0, 1, 1], [], []>} : vector<128x12xbf16>, vector<12x8xbf16>, vector<128x8xf32> -> vector<128x8xf32>
      %193 = arith.addf %186, %192 : vector<128x8xf32>
      %194 = vector.shape_cast %193 : vector<128x8xf32> to vector<16x8x8xf32>
      %195 = arith.truncf %194 : vector<16x8x8xf32> to vector<16x8x8xbf16>
      %c0_159 = arith.constant 0 : index
      %c0_160 = arith.constant 0 : index
      %196 = arith.index_cast %arg6 : i32 to index
      %c0_161 = arith.constant 0 : index
      %c0_162 = arith.constant 0 : index
      %197 = vector.load %arg4[%c0_159, %c0_160, %196, %c0_161, %c0_162] : memref<1x16x8x8x8xbf16, #tpu.memory_space<vmem>>, vector<1x16x1x8x8xbf16>
      %198 = vector.shape_cast %197 : vector<1x16x1x8x8xbf16> to vector<16x8x8xbf16>
      %199 = vector.shape_cast %195 : vector<16x8x8xbf16> to vector<1x16x1x8x8xbf16>
      tpu.vector_store %arg4[%c0_159, %c0_160, %196, %c0_161, %c0_162], %199 {strides = array<i32>} : memref<1x16x8x8x8xbf16, #tpu.memory_space<vmem>>, vector<1x16x1x8x8xbf16>,
      %cst_163 = arith.constant dense<0.000000e+00> : vector<128xf32>
      %200 = vector.multi_reduction <add>, %193, %cst_163 [1] : vector<128x8xf32> to vector<128xf32>
      %201 = vector.shape_cast %200 : vector<128xf32> to vector<128x1xf32>
      %202 = arith.addf %arg7, %201 : vector<128x1xf32>
      %203 = arith.mulf %193, %193 : vector<128x8xf32>
      %cst_164 = arith.constant dense<0.000000e+00> : vector<128xf32>
      %204 = vector.multi_reduction <add>, %203, %cst_164 [1] : vector<128x8xf32> to vector<128xf32>
      %205 = vector.shape_cast %204 : vector<128xf32> to vector<128x1xf32>
      %206 = arith.addf %arg8, %205 : vector<128x1xf32>
      scf.yield %202, %206 : vector<128x1xf32>, vector<128x1xf32>
    }
    %c8_i32_1 = arith.constant 8 : i32
    %4 = tpu.concatenate %3#0, %3#1 in 1 : vector<128x1xf32>, vector<128x1xf32> -> vector<128x2xf32>
    %c0 = arith.constant 0 : index
    %c0_2 = arith.constant 0 : index
    %c0_3 = arith.constant 0 : index
    %c0_4 = arith.constant 0 : index
    %5 = vector.load %arg5[%c0, %c0_2, %c0_3, %c0_4] : memref<1x1x128x2xf32, #tpu.memory_space<vmem>>, vector<1x1x128x2xf32>
    %6 = vector.shape_cast %5 : vector<1x1x128x2xf32> to vector<128x2xf32>
    %7 = vector.shape_cast %4 : vector<128x2xf32> to vector<1x1x128x2xf32>
    tpu.vector_store %arg5[%c0, %c0_2, %c0_3, %c0_4], %7 {strides = array<i32>} : memref<1x1x128x2xf32, #tpu.memory_space<vmem>>, vector<1x1x128x2xf32>,
    return
  }
  func.func @transform_0(%arg0: i32, %arg1: i32) -> (i32, i32, i32, i32) {
    %c0_i32 = arith.constant 0 : i32
    %c0_i32_0 = arith.constant 0 : i32
    %c0_i32_1 = arith.constant 0 : i32
    %c0_i32_2 = arith.constant 0 : i32
    return %arg0, %c0_i32, %c0_i32_0, %c0_i32_1 : i32, i32, i32, i32
  }
  func.func @transform_1(%arg0: i32, %arg1: i32) -> (i32, i32, i32) {
    %c0_i32 = arith.constant 0 : i32
    %c0_i32_0 = arith.constant 0 : i32
    %c0_i32_1 = arith.constant 0 : i32
    %c0_i32_2 = arith.constant 0 : i32
    return %c0_i32, %c0_i32_0, %c0_i32_1 : i32, i32, i32
  }
  func.func @transform_2(%arg0: i32, %arg1: i32) -> (i32, i32, i32, i32, i32) {
    %c0_i32 = arith.constant 0 : i32
    %c0_i32_0 = arith.constant 0 : i32
    %c0_i32_1 = arith.constant 0 : i32
    %c0_i32_2 = arith.constant 0 : i32
    return %arg0, %c0_i32, %arg1, %c0_i32_0, %c0_i32_1 : i32, i32, i32, i32, i32
  }
  func.func @transform_3(%arg0: i32, %arg1: i32) -> (i32, i32, i32, i32) {
    %c0_i32 = arith.constant 0 : i32
    %c0_i32_0 = arith.constant 0 : i32
    %c0_i32_1 = arith.constant 0 : i32
    return %arg0, %arg1, %c0_i32, %c0_i32_0 : i32, i32, i32, i32
  }
}

module attributes {stable_mosaic.version = 11 : i64} {
  func.func @_bn_elu_kernel(%arg0: i32, %arg1: i32, %arg2: memref<1x16x512xbf16, #tpu.memory_space<vmem>>, %arg3: memref<16x1xf32, #tpu.memory_space<vmem>>, %arg4: memref<16x1xf32, #tpu.memory_space<vmem>>, %arg5: memref<1x16x512xf32, #tpu.memory_space<vmem>>) attributes {dimension_semantics = [#tpu.dimension_semantics<parallel>, #tpu.dimension_semantics<parallel>], iteration_bounds = array<i64: 2, 1>, scalar_prefetch = 0 : i64, scratch_operands = 0 : i64, tpu.core_type = #tpu.core_type<tc>, window_params = [{transform_indices = @transform_0, window_bounds = array<i64: 1, 16, 512>}, {pipeline_mode = #tpu.pipeline_mode<synchronous>, transform_indices = @transform_1, window_bounds = array<i64: 16, 1>}, {pipeline_mode = #tpu.pipeline_mode<synchronous>, transform_indices = @transform_2, window_bounds = array<i64: 16, 1>}, {transform_indices = @transform_3, window_bounds = array<i64: 1, 16, 512>}]} {
    %c0 = arith.constant 0 : index
    %c0_0 = arith.constant 0 : index
    %c0_1 = arith.constant 0 : index
    %0 = vector.load %arg2[%c0, %c0_0, %c0_1] : memref<1x16x512xbf16, #tpu.memory_space<vmem>>, vector<1x16x512xbf16>
    %1 = vector.shape_cast %0 : vector<1x16x512xbf16> to vector<16x512xbf16>
    %2 = arith.extf %1 : vector<16x512xbf16> to vector<16x512xf32>
    %c0_2 = arith.constant 0 : index
    %c0_3 = arith.constant 0 : index
    %3 = vector.load %arg3[%c0_2, %c0_3] : memref<16x1xf32, #tpu.memory_space<vmem>>, vector<16x1xf32>
    %4 = vector.broadcast %3 : vector<16x1xf32> to vector<16x512xf32>
    %5 = arith.mulf %2, %4 : vector<16x512xf32>
    %c0_4 = arith.constant 0 : index
    %c0_5 = arith.constant 0 : index
    %6 = vector.load %arg4[%c0_4, %c0_5] : memref<16x1xf32, #tpu.memory_space<vmem>>, vector<16x1xf32>
    %7 = vector.broadcast %6 : vector<16x1xf32> to vector<16x512xf32>
    %8 = arith.addf %5, %7 : vector<16x512xf32>
    %cst = arith.constant 0.000000e+00 : f32
    %9 = vector.broadcast %cst : f32 to vector<16x512xf32>
    %10 = arith.cmpf ogt, %8, %9 : vector<16x512xf32>
    %11 = math.exp %8 : vector<16x512xf32>
    %cst_6 = arith.constant 1.000000e+00 : f32
    %12 = vector.broadcast %cst_6 : f32 to vector<16x512xf32>
    %13 = arith.subf %11, %12 : vector<16x512xf32>
    %14 = arith.select %10, %8, %13 : vector<16x512xi1>, vector<16x512xf32>
    %c0_7 = arith.constant 0 : index
    %c0_8 = arith.constant 0 : index
    %c0_9 = arith.constant 0 : index
    %15 = vector.load %arg5[%c0_7, %c0_8, %c0_9] : memref<1x16x512xf32, #tpu.memory_space<vmem>>, vector<1x16x512xf32>
    %16 = vector.shape_cast %15 : vector<1x16x512xf32> to vector<16x512xf32>
    %17 = vector.shape_cast %14 : vector<16x512xf32> to vector<1x16x512xf32>
    tpu.vector_store %arg5[%c0_7, %c0_8, %c0_9], %17 {strides = array<i32>} : memref<1x16x512xf32, #tpu.memory_space<vmem>>, vector<1x16x512xf32>,
    return
  }
  func.func @transform_0(%arg0: i32, %arg1: i32) -> (i32, i32, i32) {
    %c0_i32 = arith.constant 0 : i32
    %c0_i32_0 = arith.constant 0 : i32
    return %arg0, %c0_i32, %arg1 : i32, i32, i32
  }
  func.func @transform_1(%arg0: i32, %arg1: i32) -> (i32, i32) {
    %c0_i32 = arith.constant 0 : i32
    %c0_i32_0 = arith.constant 0 : i32
    %c0_i32_1 = arith.constant 0 : i32
    return %c0_i32, %c0_i32_0 : i32, i32
  }
  func.func @transform_2(%arg0: i32, %arg1: i32) -> (i32, i32) {
    %c0_i32 = arith.constant 0 : i32
    %c0_i32_0 = arith.constant 0 : i32
    %c0_i32_1 = arith.constant 0 : i32
    return %c0_i32, %c0_i32_0 : i32, i32
  }
  func.func @transform_3(%arg0: i32, %arg1: i32) -> (i32, i32, i32) {
    %c0_i32 = arith.constant 0 : i32
    %c0_i32_0 = arith.constant 0 : i32
    return %arg0, %c0_i32, %arg1 : i32, i32, i32
  }
}

</mosaic_0001>

<bundles_post_ra>
// kernel: input_transition_forward.2
= control target key start
LH: loop header
LB: loop body
LE: loop exit
PB: predicated region body
PF: predicated region fallthrough
CT: control target
= control target key end

     0   :  { %s6768_s12 = smov 0   ;;  %s6770_s13 = smov 0   ;;  %s8477_s0 = inlined_call_operand.vmem [shape: bf16[2,12,12,12], index: 0, kind: input, shape index: {}]   ;;  %s8478_s1 = inlined_call_operand.vmem [shape: bf16[25,128,12], index: 1, kind: input, shape index: {}]   ;;  %s8479_s2 = inlined_call_operand.vmem [shape: bf16[2,16,8,8,8], index: 2, kind: output, shape index: {0}]   ;;  %s8480_s3 = inlined_call_operand.vmem [shape: f32[2,1,128,2], index: 3, kind: output, shape index: {1}]  }
   0x1   :  { %s6772_s14 = smov 0  }
   0x2 LB: > { %s26_s15 = sadd.s32 1, %s6606_s13  ;;  %p4525_p0 = scmp.ge.s32.totalorder %s6610_s14, 1  ;;  %s6610_s14 = sphi %s6772_s14, %s14_s14   ;;  %s6606_s13 = sphi %s6770_s13, %s8560_s13   ;;  %s6602_s12 = sphi %s6768_s12, %s8559_s12  }
   0x3   : > { %p28_p1 = scmp.ge.s32.totalorder %s26_s15, 2  ;;  %p156_p2 = scmp.lt.s32.totalorder %s6610_s14, 3 }
   0x5   : > { %s8562_s15 = smov (%p28_p1, %s26_s15), 0  ;;  %p157_p3 = pnand %p4525_p0, %p156_p2 }
   0x7   : > { %160 = sbr.rel (%p157_p3) target bundleno = 1206 (0x4b6), region = 28 }
   0xc   : > { %p193_p4 = scmp.lt.s32.totalorder %s6602_s12, 1  ;;  %v6801_v0 = vmov 0.0   ;;  %v6803_v1 = vmov 0.0   ;;  %v6805_v2 = vmov 0.0   ;;  %v6807_v3 = vmov 0.0   ;;  %s6865_s28 = smov 0  }
   0xd   : > { %v6809_v4 = vmov 0.0   ;;  %v6811_v5 = vmov 0.0   ;;  %v6813_v6 = vmov 0.0   ;;  %v6815_v7 = vmov 0.0  }
   0xe   : > { %s8564_s12 = smov (!%p193_p4, %s6602_s12), 1  ;;  %v6817_v8 = vmov 0.0   ;;  %v6819_v9 = vmov 0.0   ;;  %v6821_v10 = vmov 0.0   ;;  %v6823_v11 = vmov 0.0  }
   0xf   : > { %s6163_s16 = smul.u32 96, %s8564_s12  ;;  %s5952_s17 = sshll.u32 %s8564_s12, 9  ;;  %v6825_v12 = vmov 0.0   ;;  %v6827_v13 = vmov 0.0   ;;  %v6829_v14 = vmov 0.0   ;;  %v6831_v15 = vmov 0.0  }
  0x10   : > { %s6789_s20 = scalar_lea.vmem %s8479_s2, %s5952_s17  ;;  %s5953_s21 = sshll.u32 %s8564_s12, 7  ;;  %v6833_v16 = vmov 0.0   ;;  %v6835_v17 = vmov 0.0   ;;  %v6837_v18 = vmov 0.0   ;;  %v6839_v19 = vmov 0.0  }
  0x11   : > { %s6794_s24 = scalar_lea.vmem %s8477_s0, %s6163_s16  ;;  %s6799_s27 = scalar_lea.vmem %s8480_s3, %s5953_s21  ;;  %v6841_v20 = vmov 0.0   ;;  %v6843_v21 = vmov 0.0   ;;  %v6845_v22 = vmov 0.0   ;;  %v6847_v23 = vmov 0.0  }
  0x12   : > { %v6849_v24 = vmov 0.0   ;;  %v6851_v25 = vmov 0.0   ;;  %v6853_v26 = vmov 0.0   ;;  %v6855_v27 = vmov 0.0  }
  0x13   : > { %v6857_v28 = vmov 0.0   ;;  %v6859_v29 = vmov 0.0   ;;  %v6861_v30 = vmov 0.0   ;;  %v6863_v31 = vmov 0.0  }
  0x14 LB: >> { %8482 = vst [vmem:[#allocation2_spill] sm:$0xff] %v6614_v0  ;;  %s5954_s29 = sshll.u32 %s6742_s28, 3  ;;  %s6744_s4 = smov 127   ;;  %vm368_vm0 = vcmask 1045504   ;;  %v5966_v42 = vld [vmem:[%s8478_s1 + $0x50] sm:$0xff]  ;;  %v5964_v43 = vld [vmem:[%s8478_s1 + $0x40] sm:$0xff]  ;;  %s6742_s28 = sphi %s6865_s28, %s8557_s28   ;;  %v6738_v31 = vphi %v6863_v31, %v8556_v31   ;;  %v6734_v30 = vphi %v6861_v30, %v8555_v30   ;;  %v6730_v29 = vphi %v6859_v29, %v8554_v29   ;;  %v6726_v28 = vphi %v6857_v28, %v8553_v28   ;;  %v6722_v27 = vphi %v6855_v27, %v8552_v27   ;;  %v6718_v26 = vphi %v6853_v26, %v8551_v26   ;;  %v6714_v25 = vphi %v6851_v25, %v8550_v25   ;;  %v6710_v24 = vphi %v6849_v24, %v8549_v24   ;;  %v6706_v23 = vphi %v6847_v23, %v8548_v23   ;;  %v6702_v22 = vphi %v6845_v22, %v8547_v22   ;;  %v6698_v21 = vphi %v6843_v21, %v8546_v21   ;;  %v6694_v20 = vphi %v6841_v20, %v8545_v20   ;;  %v6690_v19 = vphi %v6839_v19, %v8544_v19   ;;  %v6686_v18 = vphi %v6837_v18, %v8543_v18   ;;  %v6682_v17 = vphi %v6835_v17, %v8542_v17   ;;  %v6678_v16 = vphi %v6833_v16, %v8541_v16   ;;  %v6674_v15 = vphi %v6831_v15, %v8539_v15   ;;  %v6670_v14 = vphi %v6829_v14, %v8538_v14   ;;  %v6666_v13 = vphi %v6827_v13, %v8537_v13   ;;  %v6662_v12 = vphi %v6825_v12, %v8536_v12   ;;  %v6658_v11 = vphi %v6823_v11, %v8535_v11   ;;  %v6654_v10 = vphi %v6821_v10, %v8534_v10   ;;  %v6650_v9 = vphi %v6819_v9, %v8533_v9   ;;  %v6646_v8 = vphi %v6817_v8, %v8532_v8   ;;  %v6642_v7 = vphi %v6815_v7, %v8531_v7   ;;  %v6638_v6 = vphi %v6813_v6, %v8530_v6   ;;  %v6634_v5 = vphi %v6811_v5, %v8529_v5   ;;  %v6630_v4 = vphi %v6809_v4, %v8528_v4   ;;  %v6626_v3 = vphi %v6807_v3, %v8527_v3   ;;  %v6622_v2 = vphi %v6805_v2, %v8526_v2   ;;  %v6618_v1 = vphi %v6803_v1, %v8525_v1   ;;  %v6614_v0 = vphi %v6801_v0, %v8524_v0  }
  0x15   : >> { %8483 = vst [vmem:[#allocation3_spill] sm:$0xff] %v6618_v1  ;;  %s6968_s30 = scalar_lea.vmem %s6794_s24, %s5954_s29  ;;  %s6745_s5 = smov 125   ;;  %vm343_vm1 = vcmask 97280   ;;  %v5968_v46 = vld [vmem:[%s8478_s1 + $0x60] sm:$0xff]  ;;  %v5970_v47 = vld [vmem:[%s8478_s1 + $0x70] sm:$0xff]  ;;  %v5967_v57 = vld [vmem:[%s8478_s1 + $0x58] sm:$0xff] }
  0x16   : >> { %8484 = vst [vmem:[#allocation4_spill] sm:$0xff] %v6622_v2  ;;  %v4583_v32 = vld [vmem:[%s6968_s30] sm:$0xf]  ;;  %v5955_v33 = vld [vmem:[%s6968_s30] sm:$0x30]  ;;  %s6746_s6 = smov 126  }
  0x17   : >> { %8485 = vst [vmem:[#allocation5_spill] sm:$0xff] %v6678_v16  ;;  %v4584_v34 = vor.u32 %v5955_v33, %v4583_v32  ;;  %v4854_v35 = vld [vmem:[%s6968_s30 + $0x8] sm:$0xf]  ;;  %v5996_v36 = vld [vmem:[%s6968_s30 + $0x8] sm:$0x30]  ;;  %s6747_s7 = smov 124  }
  0x18   : >> { %v4855_v37 = vor.u32 %v5996_v36, %v4854_v35  ;;  %v5965_v58 = vld [vmem:[%s8478_s1 + $0x48] sm:$0xff]  ;;  %v5971_v61 = vld [vmem:[%s8478_s1 + $0x78] sm:$0xff]  ;;  %v5141_v62 = vld [vmem:[%s6968_s30 + $0x10] sm:$0xf]  ;;  %s5949_s16 = sshll.u32 %s6742_s28, 2  ;;  %vm4081_vm2 = vcmask 64512  }
  0x19   : >> { %341 = vrot.lane.b32.xlu0 %v4584_v34, %s6744_s4  ;;  %745 = vrot.lane.b32.xlu1 %v4584_v34, %s6745_s5  ;;  %v486_v45 = vsel %vm368_vm0, %v4584_v34, 0  ;;  %v5969_v60 = vld [vmem:[%s8478_s1 + $0x68] sm:$0xff]  ;;  %v6037_v63 = vld [vmem:[%s6968_s30 + $0x10] sm:$0x30]  ;;  %s8102_s17 = scalar_lea.vmem %s6789_s20, %s5949_s16  ;;  %vm4064_vm3 = vcmask 60416   ;;  %s224_s18 = sadd.s32 1, %s6742_s28  }
  0x1a   : >> { %1207 = vrot.lane.b32.xlu2 %v4855_v37, %s6744_s4  ;;  %v1083_v49 = vsel %vm368_vm0, %v4855_v37, 0  ;;  %v7025_v32 = vor.u32 %v6037_v63, %v5141_v62  ;;  %v5956_v33 = vld [vmem:[%s8478_s1] sm:$0xff]  ;;  %p8282_p5 = scmp.ge.s32.totalorder %s224_s18, 8   ;;  %s8557_s28 = smov %s224_s18 }
  0x1b   : >> { %v5972_v35 = vld [vmem:[%s8478_s1 + $0x80] sm:$0xff]  ;;  %vm4226_vm4 = vcmask (%p8282_p5), 7168   ;;  %vm4243_vm5 = vcmask (%p8282_p5), 15360  }
  0x1c   : >> { %v5980_v36 = vld [vmem:[%s8478_s1 + $0xc0] sm:$0xff] }
  0x21   : >> { %594 = vrot.lane.b32.xlu0 %v4584_v34, %s6746_s6  ;;  %896 = vrot.lane.b32.xlu1 %v4584_v34, %s6747_s7  ;;  %v5988_v34 = vld [vmem:[%s8478_s1 + $0x100] sm:$0xff] }
  0x22   : >> { %1358 = vrot.lane.b32.xlu2 %v4855_v37, %s6746_s6 }
  0x29   : >> { %1509 = vrot.lane.b32.xlu0 %v4855_v37, %s6745_s5  ;;  %1971 = vrot.lane.b32.xlu1 %v7025_v32, %s6744_s4 }
  0x2a   : >> { %1660 = vrot.lane.b32.xlu2 %v4855_v37, %s6747_s7  ;;  %v5957_v37 = vld [vmem:[%s8478_s1 + $0x8] sm:$0xff] }
  0x31   : >> { %2122 = vrot.lane.b32.xlu0 %v7025_v32, %s6746_s6  ;;  %2424 = vrot.lane.b32.xlu1 %v7025_v32, %s6747_s7 }
  0x32   : >> { %2273 = vrot.lane.b32.xlu2 %v7025_v32, %s6745_s5 }
  0x74   : >> { %v1208_v38 = vpop.permute.xlu2 %1207 }
  0x75   : >> { %v1234_v53 = vsel %vm368_vm0, %v1208_v38, 0  ;;  %v5989_v38 = vld [vmem:[%s8478_s1 + $0x108] sm:$0xff] }
  0x7c   : >> { %v1359_v48 = vpop.permute.xlu2 %1358 }
  0x7d   : >> { %v1385_v50 = vsel %vm368_vm0, %v1359_v48, 0  ;;  %v5983_v48 = vld [vmem:[%s8478_s1 + $0xd8] sm:$0xff] }
  0x8b   : >> { %v342_v39 = vpop.permute.xlu0 %341  ;;  %v746_v40 = vpop.permute.xlu1 %745 }
  0x8c   : >> { %v370_v41 = vsel %vm368_vm0, %v342_v39, 0  ;;  %v772_v44 = vsel %vm368_vm0, %v746_v40, 0  ;;  %v5973_v39 = vld [vmem:[%s8478_s1 + $0x88] sm:$0xff] }
  0x8d   : >> { %379 = vmatpush.bf16.msra.mxu0 %v370_v41  ;;  %6160 = vmatpush.bf16.msra.mxu1 %v370_v41  ;;  %v5981_v40 = vld [vmem:[%s8478_s1 + $0xc8] sm:$0xff] }
  0x8e   : >> { %6161 = vmatpush.bf16.msra.mxu2 %v370_v41  ;;  %6162 = vmatpush.bf16.msra.mxu3 %v370_v41  ;;  %v5958_v41 = vld [vmem:[%s8478_s1 + $0x10] sm:$0xff] }
  0x90   : >> { %4587 = vmatmul.msk.bf16.vlgmr.msra.gmra.mxu1 %vm343_vm1, %v5966_v42  ;;  %4585 = vmatmul.msk.bf16.vlgmr.msra.gmra.mxu0 %vm343_vm1, %v5964_v43  ;;  %v5990_v42 = vld [vmem:[%s8478_s1 + $0x110] sm:$0xff] }
  0x91   : >> { %495 = vmatpush.bf16.msrb.mxu1 %v486_v45  ;;  %4589 = vmatmul.msk.bf16.vlgmr.msra.gmra.mxu2 %vm343_vm1, %v5968_v46  ;;  %v5974_v43 = vld [vmem:[%s8478_s1 + $0x90] sm:$0xff]  ;;  %v5959_v45 = vld [vmem:[%s8478_s1 + $0x18] sm:$0xff] }
  0x92   : >> { %781 = vmatpush.bf16.msrb.mxu3 %v772_v44  ;;  %v5982_v44 = vld [vmem:[%s8478_s1 + $0xd0] sm:$0xff]  ;;  %v5991_v46 = vld [vmem:[%s8478_s1 + $0x118] sm:$0xff] }
  0x93   : >> { %4591 = vmatmul.msk.bf16.vlgmr.msra.gmra.mxu3 %vm343_vm1, %v5970_v47  ;;  %v595_v51 = vpop.permute.xlu0 %594  ;;  %v897_v52 = vpop.permute.xlu1 %896  ;;  %v5975_v47 = vld [vmem:[%s8478_s1 + $0x98] sm:$0xff] }
  0x94   : >> { %v621_v54 = vsel %vm368_vm0, %v595_v51, 0  ;;  %v923_v55 = vsel %vm368_vm0, %v897_v52, 0  ;;  %v5976_v51 = vld [vmem:[%s8478_s1 + $0xa0] sm:$0xff] }
  0x95   : >> { %1092 = vmatpush.bf16.msra.mxu1 %v1083_v49  ;;  %630 = vmatpush.bf16.msrb.mxu2 %v621_v54  ;;  %v5960_v49 = vld [vmem:[%s8478_s1 + $0x20] sm:$0xff]  ;;  %v5993_v54 = vld [vmem:[%s8478_s1 + $0x128] sm:$0xff] }
  0x96   : >> { %1394 = vmatpush.bf16.msra.mxu3 %v1385_v50  ;;  %932 = vmatpush.bf16.msrb.mxu0 %v923_v55  ;;  %v5992_v50 = vld [vmem:[%s8478_s1 + $0x120] sm:$0xff]  ;;  %v5977_v55 = vld [vmem:[%s8478_s1 + $0xa8] sm:$0xff] }
  0x97   : >> { %v5984_v52 = vld [vmem:[%s8478_s1 + $0xe0] sm:$0xff] }
  0x99   : >> { %1243 = vmatpush.bf16.msra.mxu2 %v1234_v53  ;;  %v5961_v53 = vld [vmem:[%s8478_s1 + $0x28] sm:$0xff] }
  0x9b   : >> { %v1510_v56 = vpop.permute.xlu0 %1509 }
  0x9c   : >> { %v1536_v59 = vsel %vm368_vm0, %v1510_v56, 0  ;;  %v5985_v56 = vld [vmem:[%s8478_s1 + $0xe8] sm:$0xff] }
  0x9d   : >> { %1545 = vmatpush.bf16.msra.mxu0 %v1536_v59 }
  0xa0   : >> { %4588 = vmatmul.msk.bf16.gmra.mxu1 %vm343_vm1, %v5967_v57  ;;  %4586 = vmatmul.msk.bf16.gmra.mxu0 %vm343_vm1, %v5965_v58  ;;  %v5962_v57 = vld [vmem:[%s8478_s1 + $0x30] sm:$0xff] }
  0xa1   : >> { %4590 = vmatmul.msk.bf16.gmra.mxu2 %vm343_vm1, %v5969_v60  ;;  %v5994_v58 = vld [vmem:[%s8478_s1 + $0x130] sm:$0xff] }
  0xa2   : >> { %v5978_v60 = vld [vmem:[%s8478_s1 + $0xb0] sm:$0xff] }
  0xa3   : >> { %4592 = vmatmul.msk.bf16.gmra.mxu3 %vm343_vm1, %v5971_v61  ;;  %v5986_v61 = vld [vmem:[%s8478_s1 + $0xf0] sm:$0xff] }
  0xb0   : >> { %4625 = vmatmul.msk.bf16.vlgmr.msrb.gmra.mxu1 %vm343_vm1, %v5956_v33  ;;  %4793 = vmatmul.msk.bf16.vlgmr.msrb.gmra.mxu0 %vm343_vm1, %v5988_v34 }
  0xb1   : >> { %4681 = vmatmul.msk.bf16.vlgmr.msrb.gmra.mxu2 %vm343_vm1, %v5972_v35 }
  0xb3   : >> { %4737 = vmatmul.msk.bf16.vlgmr.msrb.gmra.mxu3 %vm343_vm1, %v5980_v36  ;;  %v1972_v36 = vpop.permute.xlu1 %1971 }
  0xc0   : >> { %4626 = vmatmul.msk.bf16.gmra.mxu1 %vm343_vm1, %v5957_v37  ;;  %4794 = vmatmul.msk.bf16.gmra.mxu0 %vm343_vm1, %v5989_v38  ;;  %v1847_v37 = vsel %vm368_vm0, %v7025_v32, 0  ;;  %v1661_v38 = vpop.permute.xlu2 %1660  ;;  %v5995_v32 = vld [vmem:[%s8478_s1 + $0x138] sm:$0xff] }
  0xc1   : >> { %4682 = vmatmul.msk.bf16.gmra.mxu2 %vm343_vm1, %v5973_v39  ;;  %v1998_v39 = vsel %vm368_vm0, %v1972_v36, 0 }
  0xc2   : >> { %1856 = vmatpush.bf16.msrb.mxu2 %v1847_v37  ;;  %2007 = vmatpush.bf16.msrb.mxu3 %v1998_v39  ;;  %v6005_v37 = vld [vmem:[%s8478_s1 + $0x180] sm:$0xff] }
  0xc3   : >> { %4738 = vmatmul.msk.bf16.gmra.mxu3 %vm343_vm1, %v5981_v40  ;;  %v1687_v40 = vsel %vm368_vm0, %v1661_v38, 0  ;;  %v6013_v38 = vld [vmem:[%s8478_s1 + $0x1c0] sm:$0xff] }
  0xc4   : >> { %1696 = vmatpush.bf16.msrb.mxu1 %v1687_v40 }
  0xd0   : >> { %4627 = vmatmul.msk.bf16.gmra.mxu1 %vm343_vm1, %v5958_v41  ;;  %4795 = vmatmul.msk.bf16.gmra.mxu0 %vm343_vm1, %v5990_v42 }
  0xd1   : >> { %4683 = vmatmul.msk.bf16.gmra.mxu2 %vm343_vm1, %v5974_v43  ;;  %v5963_v43 = vld [vmem:[%s8478_s1 + $0x38] sm:$0xff] }
  0xd3   : >> { %4739 = vmatmul.msk.bf16.gmra.mxu3 %vm343_vm1, %v5982_v44 }
  0xe0   : >> { %4628 = vmatmul.msk.bf16.gmra.mxu1 %vm343_vm1, %v5959_v45  ;;  %4796 = vmatmul.msk.bf16.gmra.mxu0 %vm343_vm1, %v5991_v46  ;;  %v5979_v45 = vld [vmem:[%s8478_s1 + $0xb8] sm:$0xff] }
  0xe1   : >> { %4684 = vmatmul.msk.bf16.gmra.mxu2 %vm343_vm1, %v5975_v47  ;;  %v5987_v46 = vld [vmem:[%s8478_s1 + $0xf8] sm:$0xff] }
  0xe3   : >> { %4740 = vmatmul.msk.bf16.gmra.mxu3 %vm343_vm1, %v5983_v48  ;;  %v2123_v48 = vpop.permute.xlu0 %2122 }
  0xf0   : >> { %4629 = vmatmul.msk.bf16.gmra.mxu1 %vm343_vm1, %v5960_v49  ;;  %4797 = vmatmul.msk.bf16.gmra.mxu0 %vm343_vm1, %v5992_v50  ;;  %v2149_v49 = vsel %vm368_vm0, %v2123_v48, 0 }
  0xf1   : >> { %4685 = vmatmul.msk.bf16.gmra.mxu2 %vm343_vm1, %v5976_v51  ;;  %2158 = vmatpush.bf16.msrb.mxu0 %v2149_v49 }
  0xf3   : >> { %4741 = vmatmul.msk.bf16.gmra.mxu3 %vm343_vm1, %v5984_v52 }
 0x100   : >> { %4630 = vmatmul.msk.bf16.gmra.mxu1 %vm343_vm1, %v5961_v53  ;;  %4798 = vmatmul.msk.bf16.gmra.mxu0 %vm343_vm1, %v5993_v54  ;;  %v5428_v54 = vld [vmem:[%s6968_s30 + $0x18] sm:$0xf] }
 0x101   : >> { %4686 = vmatmul.msk.bf16.gmra.mxu2 %vm343_vm1, %v5977_v55  ;;  %v6078_v55 = vld [vmem:[%s6968_s30 + $0x18] sm:$0x30] }
 0x103   : >> { %4742 = vmatmul.msk.bf16.gmra.mxu3 %vm343_vm1, %v5985_v56  ;;  %v7190_v56 = vor.u32 %v6078_v55, %v5428_v54 }
 0x105   : >> { %2735 = vrot.lane.b32.xlu0 %v7190_v56, %s6744_s4  ;;  %3037 = vrot.lane.b32.xlu1 %v7190_v56, %s6745_s5 }
 0x106   : >> { %3188 = vrot.lane.b32.xlu2 %v7190_v56, %s6747_s7 }
 0x10d   : >> { %v7137_v59 = vpop.f32.mrf.mxu1  ;;  %v381_v62 = vpop.f32.mrf.mxu0  ;;  %2886 = vrot.lane.b32.xlu0 %v7190_v56, %s6746_s6 }
 0x110   : >> { %4631 = vmatmul.msk.bf16.gmra.mxu1 %vm343_vm1, %v5962_v57  ;;  %4799 = vmatmul.msk.bf16.gmra.mxu0 %vm343_vm1, %v5994_v58 }
 0x111   : >> { %4687 = vmatmul.msk.bf16.gmra.mxu2 %vm343_vm1, %v5978_v60  ;;  %v5997_v60 = vld [vmem:[%s8478_s1 + $0x140] sm:$0xff] }
 0x113   : >> { %4743 = vmatmul.msk.bf16.gmra.mxu3 %vm343_vm1, %v5986_v61  ;;  %v6021_v61 = vld [vmem:[%s8478_s1 + $0x200] sm:$0xff] }
 0x114   : >> { %v7149_v63 = vpop.f32.mrf.mxu2 }
 0x115   : >> { %v7153_v34 = vpop.f32.mrf.mxu1  ;;  %v383_v35 = vpop.f32.mrf.mxu0 }
 0x116   : >> { %v7151_v33 = vpop.f32.mrf.mxu3 }
 0x11c   : >> { %v7159_v41 = vpop.f32.mrf.mxu2 }
 0x11d   : >> { %v7169_v44 = vpop.f32.mrf.mxu1  ;;  %v386_v47 = vpop.f32.mrf.mxu0 }
 0x11e   : >> { %v7161_v42 = vpop.f32.mrf.mxu3 }
 0x120   : >> { %4632 = vmatmul.msk.bf16.gmra.mxu1 %vm343_vm1, %v5963_v43  ;;  %4800 = vmatmul.msk.bf16.gmra.mxu0 %vm343_vm1, %v5995_v32 }
 0x121   : >> { %4688 = vmatmul.msk.bf16.gmra.mxu2 %vm343_vm1, %v5979_v45 }
 0x123   : >> { %4744 = vmatmul.msk.bf16.gmra.mxu3 %vm343_vm1, %v5987_v46 }
 0x124   : >> { %v7182_v50 = vpop.f32.mrf.mxu2 }
 0x125   : >> { %v7186_v52 = vpop.f32.mrf.mxu1  ;;  %v388_v53 = vpop.f32.mrf.mxu0 }
 0x126   : >> { %v7184_v51 = vpop.f32.mrf.mxu3 }
 0x12c   : >> { %v7192_v57 = vpop.f32.mrf.mxu2 }
 0x12d   : >> { %v497_v36 = vpop.f32.mrf.mxu1  ;;  %v934_v39 = vpop.f32.mrf.mxu0 }
 0x12e   : >> { %v7194_v58 = vpop.f32.mrf.mxu3  ;;  %v498_v40 = vadd.f32 %v497_v36, %v381_v62  ;;  %v6022_v36 = vld [vmem:[%s8478_s1 + $0x208] sm:$0xff] }
 0x130   : >> { %4856 = vmatmul.msk.bf16.vlgmr.msra.gmra.mxu1 %vm343_vm1, %v5997_v60  ;;  %5024 = vmatmul.msk.bf16.vlgmr.msra.gmra.mxu0 %vm343_vm1, %v6021_v61  ;;  %v5998_v61 = vld [vmem:[%s8478_s1 + $0x148] sm:$0xff] }
 0x131   : >> { %4912 = vmatmul.msk.bf16.vlgmr.msra.gmra.mxu2 %vm343_vm1, %v6005_v37 }
 0x133   : >> { %4968 = vmatmul.msk.bf16.vlgmr.msra.gmra.mxu3 %vm343_vm1, %v6013_v38 }
 0x134   : >> { %v632_v43 = vpop.f32.mrf.mxu2 }
 0x135   : >> { %v672_v45 = vadd.f32 %v632_v43, %v498_v40  ;;  %v499_v46 = vpop.f32.mrf.mxu1  ;;  %v936_v48 = vpop.f32.mrf.mxu0  ;;  %v6006_v40 = vld [vmem:[%s8478_s1 + $0x188] sm:$0xff] }
 0x136   : >> { %v783_v32 = vpop.f32.mrf.mxu3  ;;  %v500_v49 = vadd.f32 %v499_v46, %v383_v35  ;;  %v6014_v35 = vld [vmem:[%s8478_s1 + $0x1c8] sm:$0xff] }
 0x137   : >> { %v823_v54 = vadd.f32 %v783_v32, %v672_v45 }
 0x139   : >> { %v7220_v55 = vadd.f32 %v934_v39, %v823_v54 }
 0x13c   : >> { %v634_v62 = vpop.f32.mrf.mxu2 }
 0x13d   : >> { %v673_v37 = vadd.f32 %v634_v62, %v500_v49  ;;  %v502_v38 = vpop.f32.mrf.mxu1  ;;  %v939_v39 = vpop.f32.mrf.mxu0 }
 0x13e   : >> { %v785_v60 = vpop.f32.mrf.mxu3  ;;  %v503_v43 = vadd.f32 %v502_v38, %v386_v47  ;;  %v6007_v38 = vld [vmem:[%s8478_s1 + $0x190] sm:$0xff] }
 0x13f   : >> { %v824_v32 = vadd.f32 %v785_v60, %v673_v37 }
 0x140   : >> { %4857 = vmatmul.msk.bf16.gmra.mxu1 %vm343_vm1, %v5998_v61  ;;  %5025 = vmatmul.msk.bf16.gmra.mxu0 %vm343_vm1, %v6022_v36  ;;  %v6023_v61 = vld [vmem:[%s8478_s1 + $0x210] sm:$0xff] }
 0x141   : >> { %v7236_v45 = vadd.f32 %v936_v48, %v824_v32  ;;  %4913 = vmatmul.msk.bf16.gmra.mxu2 %vm343_vm1, %v6006_v40  ;;  %v5999_v48 = vld [vmem:[%s8478_s1 + $0x150] sm:$0xff] }
 0x143   : >> { %4969 = vmatmul.msk.bf16.gmra.mxu3 %vm343_vm1, %v6014_v35 }
 0x144   : >> { %v637_v46 = vpop.f32.mrf.mxu2 }
 0x145   : >> { %v674_v54 = vadd.f32 %v637_v46, %v503_v43  ;;  %v504_v62 = vpop.f32.mrf.mxu1  ;;  %v941_v1 = vpop.f32.mrf.mxu0 }
 0x146   : >> { %v788_v49 = vpop.f32.mrf.mxu3  ;;  %v505_v0 = vadd.f32 %v504_v62, %v388_v53 }
 0x147   : >> { %v825_v2 = vadd.f32 %v788_v49, %v674_v54 }
 0x149   : >> { %v7240_v16 = vadd.f32 %v939_v39, %v825_v2  ;;  %v6015_v2 = vld [vmem:[%s8478_s1 + $0x1d0] sm:$0xff] }
 0x14c   : >> { %v639_v47 = vpop.f32.mrf.mxu2 }
 0x14d   : >> { %v675_v36 = vadd.f32 %v639_v47, %v505_v0  ;;  %v507_v37 = vpop.f32.mrf.mxu1  ;;  %v944_v53 = vpop.f32.mrf.mxu0 }
 0x14e   : >> { %v790_v60 = vpop.f32.mrf.mxu3  ;;  %v508_v40 = vadd.f32 %v507_v37, %v7137_v59  ;;  %v6008_v37 = vld [vmem:[%s8478_s1 + $0x198] sm:$0xff] }
 0x14f   : >> { %v826_v35 = vadd.f32 %v790_v60, %v675_v36 }
 0x150   : >> { %4858 = vmatmul.msk.bf16.gmra.mxu1 %vm343_vm1, %v5999_v48  ;;  %5026 = vmatmul.msk.bf16.gmra.mxu0 %vm343_vm1, %v6023_v61  ;;  %v6024_v48 = vld [vmem:[%s8478_s1 + $0x218] sm:$0xff] }
 0x151   : >> { %v7257_v39 = vadd.f32 %v941_v1, %v826_v35  ;;  %4914 = vmatmul.msk.bf16.gmra.mxu2 %vm343_vm1, %v6007_v38  ;;  %v6000_v1 = vld [vmem:[%s8478_s1 + $0x158] sm:$0xff] }
 0x153   : >> { %4970 = vmatmul.msk.bf16.gmra.mxu3 %vm343_vm1, %v6015_v2 }
 0x154   : >> { %v642_v0 = vpop.f32.mrf.mxu2 }
 0x155   : >> { %v676_v32 = vadd.f32 %v642_v0, %v508_v40  ;;  %v509_v46 = vpop.f32.mrf.mxu1  ;;  %v946_v49 = vpop.f32.mrf.mxu0 }
 0x156   : >> { %v793_v43 = vpop.f32.mrf.mxu3  ;;  %v510_v54 = vadd.f32 %v509_v46, %v7153_v34  ;;  %v6016_v34 = vld [vmem:[%s8478_s1 + $0x1d8] sm:$0xff] }
 0x157   : >> { %v827_v62 = vadd.f32 %v793_v43, %v676_v32 }
 0x159   : >> { %v7262_v59 = vadd.f32 %v944_v53, %v827_v62 }
 0x15c   : >> { %v644_v47 = vpop.f32.mrf.mxu2 }
 0x15d   : >> { %v677_v61 = vadd.f32 %v644_v47, %v510_v54  ;;  %v512_v36 = vpop.f32.mrf.mxu1  ;;  %v949_v38 = vpop.f32.mrf.mxu0 }
 0x15e   : >> { %v795_v60 = vpop.f32.mrf.mxu3  ;;  %v513_v2 = vadd.f32 %v512_v36, %v7169_v44  ;;  %v6009_v36 = vld [vmem:[%s8478_s1 + $0x1a0] sm:$0xff] }
 0x15f   : >> { %v828_v53 = vadd.f32 %v795_v60, %v677_v61 }
 0x160   : >> { %4859 = vmatmul.msk.bf16.gmra.mxu1 %vm343_vm1, %v6000_v1  ;;  %5027 = vmatmul.msk.bf16.gmra.mxu0 %vm343_vm1, %v6024_v48  ;;  %v6025_v1 = vld [vmem:[%s8478_s1 + $0x220] sm:$0xff] }
 0x161   : >> { %v7279_v40 = vadd.f32 %v946_v49, %v828_v53  ;;  %4915 = vmatmul.msk.bf16.gmra.mxu2 %vm343_vm1, %v6008_v37  ;;  %v6001_v49 = vld [vmem:[%s8478_s1 + $0x160] sm:$0xff] }
 0x163   : >> { %4971 = vmatmul.msk.bf16.gmra.mxu3 %vm343_vm1, %v6016_v34 }
 0x164   : >> { %v647_v35 = vpop.f32.mrf.mxu2 }
 0x165   : >> { %v678_v43 = vadd.f32 %v647_v35, %v513_v2  ;;  %v514_v32 = vpop.f32.mrf.mxu1  ;;  %v951_v46 = vpop.f32.mrf.mxu0 }
 0x166   : >> { %v798_v0 = vpop.f32.mrf.mxu3  ;;  %v515_v54 = vadd.f32 %v514_v32, %v7186_v52  ;;  %v6017_v52 = vld [vmem:[%s8478_s1 + $0x1e0] sm:$0xff] }
 0x167   : >> { %v829_v62 = vadd.f32 %v798_v0, %v678_v43 }
 0x169   : >> { %v7284_v44 = vadd.f32 %v949_v38, %v829_v62 }
 0x16c   : >> { %v649_v47 = vpop.f32.mrf.mxu2 }
 0x16d   : >> { %v679_v48 = vadd.f32 %v649_v47, %v515_v54  ;;  %v517_v61 = vpop.f32.mrf.mxu1  ;;  %v954_v37 = vpop.f32.mrf.mxu0 }
 0x16e   : >> { %v800_v60 = vpop.f32.mrf.mxu3  ;;  %v518_v2 = vadd.f32 %v517_v61, %v7149_v63  ;;  %v6026_v63 = vld [vmem:[%s8478_s1 + $0x228] sm:$0xff] }
 0x16f   : >> { %v830_v34 = vadd.f32 %v800_v60, %v679_v48  ;;  %v6010_v61 = vld [vmem:[%s8478_s1 + $0x1a8] sm:$0xff] }
 0x170   : >> { %4860 = vmatmul.msk.bf16.gmra.mxu1 %vm343_vm1, %v6001_v49  ;;  %5028 = vmatmul.msk.bf16.gmra.mxu0 %vm343_vm1, %v6025_v1 }
 0x171   : >> { %v7300_v38 = vadd.f32 %v951_v46, %v830_v34  ;;  %4916 = vmatmul.msk.bf16.gmra.mxu2 %vm343_vm1, %v6009_v36  ;;  %v6002_v46 = vld [vmem:[%s8478_s1 + $0x168] sm:$0xff] }
 0x173   : >> { %4972 = vmatmul.msk.bf16.gmra.mxu3 %vm343_vm1, %v6017_v52 }
 0x174   : >> { %v652_v53 = vpop.f32.mrf.mxu2 }
 0x175   : >> { %v680_v0 = vadd.f32 %v652_v53, %v518_v2  ;;  %v519_v43 = vpop.f32.mrf.mxu1  ;;  %v956_v32 = vpop.f32.mrf.mxu0 }
 0x176   : >> { %v803_v35 = vpop.f32.mrf.mxu3  ;;  %v520_v47 = vadd.f32 %v519_v43, %v7159_v41  ;;  %v6018_v41 = vld [vmem:[%s8478_s1 + $0x1e8] sm:$0xff] }
 0x177   : >> { %v831_v54 = vadd.f32 %v803_v35, %v680_v0 }
 0x179   : >> { %v7305_v62 = vadd.f32 %v954_v37, %v831_v54 }
 0x17c   : >> { %v654_v60 = vpop.f32.mrf.mxu2 }
 0x17d   : >> { %v681_v1 = vadd.f32 %v654_v60, %v520_v47  ;;  %v522_v48 = vpop.f32.mrf.mxu1  ;;  %v959_v36 = vpop.f32.mrf.mxu0 }
 0x17e   : >> { %v805_v49 = vpop.f32.mrf.mxu3  ;;  %v523_v34 = vadd.f32 %v522_v48, %v7182_v50  ;;  %v6027_v50 = vld [vmem:[%s8478_s1 + $0x230] sm:$0xff] }
 0x17f   : >> { %v832_v52 = vadd.f32 %v805_v49, %v681_v1  ;;  %v6011_v48 = vld [vmem:[%s8478_s1 + $0x1b0] sm:$0xff] }
 0x180   : >> { %4861 = vmatmul.msk.bf16.gmra.mxu1 %vm343_vm1, %v6002_v46  ;;  %5029 = vmatmul.msk.bf16.gmra.mxu0 %vm343_vm1, %v6026_v63 }
 0x181   : >> { %v7322_v37 = vadd.f32 %v956_v32, %v832_v52  ;;  %4917 = vmatmul.msk.bf16.gmra.mxu2 %vm343_vm1, %v6010_v61  ;;  %v6003_v32 = vld [vmem:[%s8478_s1 + $0x170] sm:$0xff]  ;;  %v2425_v52 = vpop.permute.xlu1 %2424 }
 0x183   : >> { %4973 = vmatmul.msk.bf16.gmra.mxu3 %vm343_vm1, %v6018_v41 }
 0x184   : >> { %v657_v2 = vpop.f32.mrf.mxu2 }
 0x185   : >> { %v682_v35 = vadd.f32 %v657_v2, %v523_v34  ;;  %v524_v0 = vpop.f32.mrf.mxu1  ;;  %v961_v43 = vpop.f32.mrf.mxu0  ;;  %v2451_v34 = vsel %vm368_vm0, %v2425_v52, 0 }
 0x186   : >> { %v808_v53 = vpop.f32.mrf.mxu3  ;;  %v525_v60 = vadd.f32 %v524_v0, %v7192_v57  ;;  %v6019_v57 = vld [vmem:[%s8478_s1 + $0x1f0] sm:$0xff]  ;;  %2460 = vmatpush.bf16.msra.mxu2 %v2451_v34 }
 0x187   : >> { %v833_v54 = vadd.f32 %v808_v53, %v682_v35 }
 0x189   : >> { %v7327_v47 = vadd.f32 %v959_v36, %v833_v54 }
 0x18c   : >> { %v659_v49 = vpop.f32.mrf.mxu2 }
 0x18d   : >> { %v683_v63 = vadd.f32 %v659_v49, %v525_v60  ;;  %v527_v1 = vpop.f32.mrf.mxu1  ;;  %v964_v61 = vpop.f32.mrf.mxu0 }
 0x18e   : >> { %v810_v46 = vpop.f32.mrf.mxu3  ;;  %v528_v2 = vadd.f32 %v527_v1, %v7151_v33 }
 0x18f   : >> { %v834_v41 = vadd.f32 %v810_v46, %v683_v63 }
 0x190   : >> { %4862 = vmatmul.msk.bf16.gmra.mxu1 %vm343_vm1, %v6003_v32  ;;  %5030 = vmatmul.msk.bf16.gmra.mxu0 %vm343_vm1, %v6027_v50  ;;  %v2611_v32 = vsel %vm368_vm0, %v7190_v56, 0  ;;  %v6012_v56 = vld [vmem:[%s8478_s1 + $0x1b8] sm:$0xff] }
 0x191   : >> { %v7344_v36 = vadd.f32 %v961_v43, %v834_v41  ;;  %4918 = vmatmul.msk.bf16.gmra.mxu2 %vm343_vm1, %v6011_v48  ;;  %v2274_v43 = vpop.permute.xlu2 %2273  ;;  %2620 = vmatpush.bf16.msra.mxu3 %v2611_v32  ;;  %v6004_v48 = vld [vmem:[%s8478_s1 + $0x178] sm:$0xff] }
 0x192   : >> { %v2300_v50 = vsel %vm368_vm0, %v2274_v43, 0 }
 0x193   : >> { %4974 = vmatmul.msk.bf16.gmra.mxu3 %vm343_vm1, %v6019_v57  ;;  %2309 = vmatpush.bf16.msra.mxu1 %v2300_v50  ;;  %v6028_v57 = vld [vmem:[%s8478_s1 + $0x238] sm:$0xff] }
 0x194   : >> { %v662_v53 = vpop.f32.mrf.mxu2 }
 0x195   : >> { %v684_v0 = vadd.f32 %v662_v53, %v528_v2  ;;  %v529_v54 = vpop.f32.mrf.mxu1  ;;  %v966_v60 = vpop.f32.mrf.mxu0 }
 0x196   : >> { %v813_v35 = vpop.f32.mrf.mxu3  ;;  %v530_v63 = vadd.f32 %v529_v54, %v7161_v42  ;;  %v6020_v42 = vld [vmem:[%s8478_s1 + $0x1f8] sm:$0xff]  ;;  %v2736_v53 = vpop.permute.xlu0 %2735 }
 0x197   : >> { %v835_v49 = vadd.f32 %v813_v35, %v684_v0  ;;  %v2762_v35 = vsel %vm368_vm0, %v2736_v53, 0 }
 0x198   : >> { %2771 = vmatpush.bf16.msra.mxu0 %v2762_v35 }
 0x199   : >> { %v7350_v46 = vadd.f32 %v964_v61, %v835_v49 }
 0x19c   : >> { %v664_v33 = vpop.f32.mrf.mxu2 }
 0x19d   : >> { %v685_v61 = vadd.f32 %v664_v33, %v530_v63  ;;  %v532_v41 = vpop.f32.mrf.mxu1  ;;  %v969_v52 = vpop.f32.mrf.mxu0 }
 0x19e   : >> { %v815_v1 = vpop.f32.mrf.mxu3  ;;  %v533_v0 = vadd.f32 %v532_v41, %v7184_v51  ;;  %v6054_v51 = vld [vmem:[%s8478_s1 + $0x300] sm:$0xff] }
 0x19f   : >> { %v836_v34 = vadd.f32 %v815_v1, %v685_v61 }
 0x1a0   : >> { %4863 = vmatmul.msk.bf16.gmra.mxu1 %vm343_vm1, %v6004_v48  ;;  %5031 = vmatmul.msk.bf16.gmra.mxu0 %vm343_vm1, %v6028_v57  ;;  %v6029_v57 = vld [vmem:[%s8478_s1 + $0x240] sm:$0xff] }
 0x1a1   : >> { %v7370_v2 = vadd.f32 %v966_v60, %v836_v34  ;;  %4919 = vmatmul.msk.bf16.gmra.mxu2 %vm343_vm1, %v6012_v56  ;;  %v6038_v56 = vld [vmem:[%s8478_s1 + $0x280] sm:$0xff] }
 0x1a3   : >> { %4975 = vmatmul.msk.bf16.gmra.mxu3 %vm343_vm1, %v6020_v42 }
 0x1a4   : >> { %v667_v54 = vpop.f32.mrf.mxu2 }
 0x1a5   : >> { %v686_v43 = vadd.f32 %v667_v54, %v533_v0  ;;  %v534_v32 = vpop.f32.mrf.mxu1  ;;  %v971_v50 = vpop.f32.mrf.mxu0 }
 0x1a6   : >> { %v818_v49 = vpop.f32.mrf.mxu3  ;;  %v535_v60 = vadd.f32 %v534_v32, %v7194_v58  ;;  %v6046_v58 = vld [vmem:[%s8478_s1 + $0x2c0] sm:$0xff] }
 0x1a7   : >> { %v837_v63 = vadd.f32 %v818_v49, %v686_v43 }
 0x1a9   : >> { %v7376_v33 = vadd.f32 %v969_v52, %v837_v63 }
 0x1ac   : >> { %v669_v1 = vpop.f32.mrf.mxu2 }
 0x1ad   : >> { %v687_v61 = vadd.f32 %v669_v1, %v535_v60  ;;  %v1094_v41 = vpop.f32.mrf.mxu1  ;;  %v1547_v42 = vpop.f32.mrf.mxu0 }
 0x1ae   : >> { %v820_v48 = vpop.f32.mrf.mxu3  ;;  %v1134_v52 = vadd.f32 %v1094_v41, %v7220_v55 }
 0x1af   : >> { %v838_v34 = vadd.f32 %v820_v48, %v687_v61  ;;  %v6055_v48 = vld [vmem:[%s8478_s1 + $0x308] sm:$0xff] }
 0x1b0   : >> { %5080 = vmatmul.msk.bf16.vlgmr.msrb.gmra.mxu1 %vm343_vm1, %v6029_v57  ;;  %5255 = vmatmul.msk.bf16.vlgmr.msrb.gmra.mxu0 %vm343_vm1, %v6054_v51  ;;  %v6039_v61 = vld [vmem:[%s8478_s1 + $0x288] sm:$0xff] }
 0x1b1   : >> { %v7394_v53 = vadd.f32 %v971_v50, %v838_v34  ;;  %5143 = vmatmul.msk.bf16.vlgmr.msrb.gmra.mxu2 %vm343_vm1, %v6038_v56  ;;  %v6030_v50 = vld [vmem:[%s8478_s1 + $0x248] sm:$0xff] }
 0x1b3   : >> { %5199 = vmatmul.msk.bf16.vlgmr.msrb.gmra.mxu3 %vm343_vm1, %v6046_v58 }
 0x1b4   : >> { %v1245_v35 = vpop.f32.mrf.mxu2 }
 0x1b5   : >> { %v1285_v54 = vadd.f32 %v1245_v35, %v1134_v52  ;;  %v1096_v49 = vpop.f32.mrf.mxu1  ;;  %v1549_v43 = vpop.f32.mrf.mxu0 }
 0x1b6   : >> { %v1396_v0 = vpop.f32.mrf.mxu3  ;;  %v1135_v32 = vadd.f32 %v1096_v49, %v7236_v45  ;;  %v6047_v45 = vld [vmem:[%s8478_s1 + $0x2c8] sm:$0xff] }
 0x1b7   : >> { %v1436_v63 = vadd.f32 %v1396_v0, %v1285_v54 }
 0x1b9   : >> { %v7399_v55 = vadd.f32 %v1547_v42, %v1436_v63 }
 0x1bc   : >> { %v1247_v60 = vpop.f32.mrf.mxu2 }
 0x1bd   : >> { %v1286_v57 = vadd.f32 %v1247_v60, %v1135_v32  ;;  %v1099_v51 = vpop.f32.mrf.mxu1  ;;  %v1552_v41 = vpop.f32.mrf.mxu0 }
 0x1be   : >> { %v1398_v1 = vpop.f32.mrf.mxu3  ;;  %v1136_v56 = vadd.f32 %v1099_v51, %v7240_v16 }
 0x1bf   : >> { %v1437_v58 = vadd.f32 %v1398_v1, %v1286_v57  ;;  %v6056_v1 = vld [vmem:[%s8478_s1 + $0x310] sm:$0xff] }
 0x1c0   : >> { %5081 = vmatmul.msk.bf16.gmra.mxu1 %vm343_vm1, %v6030_v50  ;;  %5256 = vmatmul.msk.bf16.gmra.mxu0 %vm343_vm1, %v6055_v48  ;;  %v6040_v57 = vld [vmem:[%s8478_s1 + $0x290] sm:$0xff] }
 0x1c1   : >> { %v7416_v42 = vadd.f32 %v1549_v43, %v1437_v58  ;;  %5144 = vmatmul.msk.bf16.gmra.mxu2 %vm343_vm1, %v6039_v61  ;;  %v6031_v43 = vld [vmem:[%s8478_s1 + $0x250] sm:$0xff] }
 0x1c3   : >> { %5200 = vmatmul.msk.bf16.gmra.mxu3 %vm343_vm1, %v6047_v45 }
 0x1c4   : >> { %v1250_v52 = vpop.f32.mrf.mxu2 }
 0x1c5   : >> { %v1287_v35 = vadd.f32 %v1250_v52, %v1136_v56  ;;  %v1101_v0 = vpop.f32.mrf.mxu1  ;;  %v1554_v54 = vpop.f32.mrf.mxu0 }
 0x1c6   : >> { %v1401_v34 = vpop.f32.mrf.mxu3  ;;  %v1137_v49 = vadd.f32 %v1101_v0, %v7257_v39  ;;  %v6048_v39 = vld [vmem:[%s8478_s1 + $0x2d0] sm:$0xff] }
 0x1c7   : >> { %v1438_v32 = vadd.f32 %v1401_v34, %v1287_v35 }
 0x1c9   : >> { %v7421_v16 = vadd.f32 %v1552_v41, %v1438_v32 }
 0x1cc   : >> { %v1252_v63 = vpop.f32.mrf.mxu2 }
 0x1cd   : >> { %v1288_v50 = vadd.f32 %v1252_v63, %v1137_v49  ;;  %v1104_v48 = vpop.f32.mrf.mxu1  ;;  %v1557_v51 = vpop.f32.mrf.mxu0 }
 0x1ce   : >> { %v1403_v60 = vpop.f32.mrf.mxu3  ;;  %v1138_v61 = vadd.f32 %v1104_v48, %v7262_v59 }
 0x1cf   : >> { %v1439_v45 = vadd.f32 %v1403_v60, %v1288_v50  ;;  %v6057_v60 = vld [vmem:[%s8478_s1 + $0x318] sm:$0xff] }
 0x1d0   : >> { %5082 = vmatmul.msk.bf16.gmra.mxu1 %vm343_vm1, %v6031_v43  ;;  %5257 = vmatmul.msk.bf16.gmra.mxu0 %vm343_vm1, %v6056_v1  ;;  %v6041_v50 = vld [vmem:[%s8478_s1 + $0x298] sm:$0xff] }
 0x1d1   : >> { %v7438_v41 = vadd.f32 %v1554_v54, %v1439_v45  ;;  %5145 = vmatmul.msk.bf16.gmra.mxu2 %vm343_vm1, %v6040_v57  ;;  %v6032_v54 = vld [vmem:[%s8478_s1 + $0x258] sm:$0xff] }
 0x1d3   : >> { %5201 = vmatmul.msk.bf16.gmra.mxu3 %vm343_vm1, %v6048_v39 }
 0x1d4   : >> { %v1255_v56 = vpop.f32.mrf.mxu2 }
 0x1d5   : >> { %v1289_v52 = vadd.f32 %v1255_v56, %v1138_v61  ;;  %v1106_v34 = vpop.f32.mrf.mxu1  ;;  %v1559_v35 = vpop.f32.mrf.mxu0 }
 0x1d6   : >> { %v1406_v58 = vpop.f32.mrf.mxu3  ;;  %v1139_v0 = vadd.f32 %v1106_v34, %v7279_v40  ;;  %v6049_v40 = vld [vmem:[%s8478_s1 + $0x2d8] sm:$0xff] }
 0x1d7   : >> { %v1440_v49 = vadd.f32 %v1406_v58, %v1289_v52 }
 0x1d9   : >> { %v7443_v59 = vadd.f32 %v1557_v51, %v1440_v49 }
 0x1dc   : >> { %v1257_v32 = vpop.f32.mrf.mxu2 }
 0x1dd   : >> { %v1290_v43 = vadd.f32 %v1257_v32, %v1139_v0  ;;  %v1109_v1 = vpop.f32.mrf.mxu1  ;;  %v1562_v48 = vpop.f32.mrf.mxu0 }
 0x1de   : >> { %v1408_v63 = vpop.f32.mrf.mxu3  ;;  %v1140_v57 = vadd.f32 %v1109_v1, %v7284_v44 }
 0x1df   : >> { %v1441_v39 = vadd.f32 %v1408_v63, %v1290_v43  ;;  %v6058_v63 = vld [vmem:[%s8478_s1 + $0x320] sm:$0xff] }
 0x1e0   : >> { %5083 = vmatmul.msk.bf16.gmra.mxu1 %vm343_vm1, %v6032_v54  ;;  %5258 = vmatmul.msk.bf16.gmra.mxu0 %vm343_vm1, %v6057_v60  ;;  %v6042_v43 = vld [vmem:[%s8478_s1 + $0x2a0] sm:$0xff] }
 0x1e1   : >> { %v7460_v51 = vadd.f32 %v1559_v35, %v1441_v39  ;;  %5146 = vmatmul.msk.bf16.gmra.mxu2 %vm343_vm1, %v6041_v50  ;;  %v6033_v35 = vld [vmem:[%s8478_s1 + $0x260] sm:$0xff] }
 0x1e3   : >> { %5202 = vmatmul.msk.bf16.gmra.mxu3 %vm343_vm1, %v6049_v40 }
 0x1e4   : >> { %v1260_v61 = vpop.f32.mrf.mxu2 }
 0x1e5   : >> { %v1291_v56 = vadd.f32 %v1260_v61, %v1140_v57  ;;  %v1111_v58 = vpop.f32.mrf.mxu1  ;;  %v1564_v52 = vpop.f32.mrf.mxu0 }
 0x1e6   : >> { %v1411_v45 = vpop.f32.mrf.mxu3  ;;  %v1141_v34 = vadd.f32 %v1111_v58, %v7300_v38  ;;  %v6050_v38 = vld [vmem:[%s8478_s1 + $0x2e0] sm:$0xff] }
 0x1e7   : >> { %v1442_v0 = vadd.f32 %v1411_v45, %v1291_v56 }
 0x1e9   : >> { %v7465_v44 = vadd.f32 %v1562_v48, %v1442_v0 }
 0x1ec   : >> { %v1262_v49 = vpop.f32.mrf.mxu2 }
 0x1ed   : >> { %v1292_v54 = vadd.f32 %v1262_v49, %v1141_v34  ;;  %v1114_v60 = vpop.f32.mrf.mxu1  ;;  %v1567_v1 = vpop.f32.mrf.mxu0 }
 0x1ee   : >> { %v1413_v32 = vpop.f32.mrf.mxu3  ;;  %v1142_v50 = vadd.f32 %v1114_v60, %v7305_v62 }
 0x1ef   : >> { %v1443_v40 = vadd.f32 %v1413_v32, %v1292_v54  ;;  %v6059_v32 = vld [vmem:[%s8478_s1 + $0x328] sm:$0xff] }
 0x1f0   : >> { %5084 = vmatmul.msk.bf16.gmra.mxu1 %vm343_vm1, %v6033_v35  ;;  %5259 = vmatmul.msk.bf16.gmra.mxu0 %vm343_vm1, %v6058_v63  ;;  %v6043_v54 = vld [vmem:[%s8478_s1 + $0x2a8] sm:$0xff] }
 0x1f1   : >> { %v7482_v48 = vadd.f32 %v1564_v52, %v1443_v40  ;;  %5147 = vmatmul.msk.bf16.gmra.mxu2 %vm343_vm1, %v6042_v43  ;;  %v6034_v52 = vld [vmem:[%s8478_s1 + $0x268] sm:$0xff] }
 0x1f3   : >> { %5203 = vmatmul.msk.bf16.gmra.mxu3 %vm343_vm1, %v6050_v38 }
 0x1f4   : >> { %v1265_v57 = vpop.f32.mrf.mxu2 }
 0x1f5   : >> { %v1293_v61 = vadd.f32 %v1265_v57, %v1142_v50  ;;  %v1116_v45 = vpop.f32.mrf.mxu1  ;;  %v1569_v56 = vpop.f32.mrf.mxu0 }
 0x1f6   : >> { %v1416_v39 = vpop.f32.mrf.mxu3  ;;  %v1143_v58 = vadd.f32 %v1116_v45, %v7322_v37  ;;  %v6051_v37 = vld [vmem:[%s8478_s1 + $0x2e8] sm:$0xff] }
 0x1f7   : >> { %v1444_v34 = vadd.f32 %v1416_v39, %v1293_v61 }
 0x1f9   : >> { %v7487_v62 = vadd.f32 %v1567_v1, %v1444_v34 }
 0x1fc   : >> { %v1267_v0 = vpop.f32.mrf.mxu2 }
 0x1fd   : >> { %v1294_v35 = vadd.f32 %v1267_v0, %v1143_v58  ;;  %v1119_v63 = vpop.f32.mrf.mxu1  ;;  %v1572_v60 = vpop.f32.mrf.mxu0 }
 0x1fe   : >> { %v1418_v49 = vpop.f32.mrf.mxu3  ;;  %v1144_v43 = vadd.f32 %v1119_v63, %v7327_v47 }
 0x1ff   : >> { %v1445_v38 = vadd.f32 %v1418_v49, %v1294_v35  ;;  %v6060_v49 = vld [vmem:[%s8478_s1 + $0x330] sm:$0xff] }
 0x200   : >> { %5085 = vmatmul.msk.bf16.gmra.mxu1 %vm343_vm1, %v6034_v52  ;;  %5260 = vmatmul.msk.bf16.gmra.mxu0 %vm343_vm1, %v6059_v32  ;;  %v6044_v35 = vld [vmem:[%s8478_s1 + $0x2b0] sm:$0xff] }
 0x201   : >> { %v7504_v1 = vadd.f32 %v1569_v56, %v1445_v38  ;;  %5148 = vmatmul.msk.bf16.gmra.mxu2 %vm343_vm1, %v6043_v54  ;;  %v6035_v56 = vld [vmem:[%s8478_s1 + $0x270] sm:$0xff] }
 0x203   : >> { %5204 = vmatmul.msk.bf16.gmra.mxu3 %vm343_vm1, %v6051_v37 }
 0x204   : >> { %v1270_v50 = vpop.f32.mrf.mxu2 }
 0x205   : >> { %v1295_v57 = vadd.f32 %v1270_v50, %v1144_v43  ;;  %v1121_v39 = vpop.f32.mrf.mxu1  ;;  %v1574_v61 = vpop.f32.mrf.mxu0 }
 0x206   : >> { %v1421_v40 = vpop.f32.mrf.mxu3  ;;  %v1145_v45 = vadd.f32 %v1121_v39, %v7344_v36  ;;  %v6052_v36 = vld [vmem:[%s8478_s1 + $0x2f0] sm:$0xff]  ;;  %v3038_v43 = vpop.permute.xlu1 %3037 }
 0x207   : >> { %v1446_v58 = vadd.f32 %v1421_v40, %v1295_v57  ;;  %v3064_v38 = vsel %vm368_vm0, %v3038_v43, 0 }
 0x208   : >> { %3073 = vmatpush.bf16.msrb.mxu2 %v3064_v38 }
 0x209   : >> { %v7509_v47 = vadd.f32 %v1572_v60, %v1446_v58 }
 0x20c   : >> { %v1272_v34 = vpop.f32.mrf.mxu2 }
 0x20d   : >> { %v1296_v52 = vadd.f32 %v1272_v34, %v1145_v45  ;;  %v1124_v32 = vpop.f32.mrf.mxu1  ;;  %v1577_v63 = vpop.f32.mrf.mxu0 }
 0x20e   : >> { %v1423_v0 = vpop.f32.mrf.mxu3  ;;  %v1146_v54 = vadd.f32 %v1124_v32, %v7350_v46 }
 0x20f   : >> { %v1447_v37 = vadd.f32 %v1423_v0, %v1296_v52  ;;  %v2887_v0 = vpop.permute.xlu0 %2886 }
 0x210   : >> { %5086 = vmatmul.msk.bf16.gmra.mxu1 %vm343_vm1, %v6035_v56  ;;  %5261 = vmatmul.msk.bf16.gmra.mxu0 %vm343_vm1, %v6060_v49  ;;  %v2913_v49 = vsel %vm368_vm0, %v2887_v0, 0 }
 0x211   : >> { %v7526_v60 = vadd.f32 %v1574_v61, %v1447_v37  ;;  %5149 = vmatmul.msk.bf16.gmra.mxu2 %vm343_vm1, %v6044_v35  ;;  %v3189_v61 = vpop.permute.xlu2 %3188  ;;  %2922 = vmatpush.bf16.msrb.mxu1 %v2913_v49  ;;  %v6036_v35 = vld [vmem:[%s8478_s1 + $0x278] sm:$0xff] }
 0x212   : >> { %v3215_v56 = vsel %vm368_vm0, %v3189_v61, 0  ;;  %v6053_v37 = vld [vmem:[%s8478_s1 + $0x2f8] sm:$0xff] }
 0x213   : >> { %5205 = vmatmul.msk.bf16.gmra.mxu3 %vm343_vm1, %v6052_v36 }
 0x214   : >> { %v1275_v50 = vpop.f32.mrf.mxu2  ;;  %3224 = vmatpush.bf16.msrb.mxu3 %v3215_v56 }
 0x215   : >> { %v1297_v57 = vadd.f32 %v1275_v50, %v1146_v54  ;;  %v1126_v39 = vpop.f32.mrf.mxu1  ;;  %v1579_v46 = vpop.f32.mrf.mxu0  ;;  %v6045_v54 = vld [vmem:[%s8478_s1 + $0x2b8] sm:$0xff] }
 0x216   : >> { %v1426_v40 = vpop.f32.mrf.mxu3  ;;  %v1147_v45 = vadd.f32 %v1126_v39, %v7370_v2  ;;  %v6061_v2 = vld [vmem:[%s8478_s1 + $0x338] sm:$0xff]  ;;  %v6119_v39 = vld [vmem:[%s6968_s30 + $0x20] sm:$0x30] }
 0x217   : >> { %v1448_v58 = vadd.f32 %v1426_v40, %v1297_v57  ;;  %v5715_v57 = vld [vmem:[%s6968_s30 + $0x20] sm:$0xf] }
 0x219   : >> { %v7532_v34 = vadd.f32 %v1577_v63, %v1448_v58 }
 0x21c   : >> { %v1277_v52 = vpop.f32.mrf.mxu2 }
 0x21d   : >> { %v1298_v36 = vadd.f32 %v1277_v52, %v1147_v45  ;;  %v1129_v63 = vpop.f32.mrf.mxu1  ;;  %v1582_v43 = vpop.f32.mrf.mxu0  ;;  %v5716_v45 = vor.u32 %v6119_v39, %v5715_v57 }
 0x21e   : >> { %v1428_v32 = vpop.f32.mrf.mxu3  ;;  %v1148_v38 = vadd.f32 %v1129_v63, %v7376_v33  ;;  %v6087_v63 = vld [vmem:[%s8478_s1 + $0x400] sm:$0xff] }
 0x21f   : >> { %v1449_v50 = vadd.f32 %v1428_v32, %v1298_v36  ;;  %v3375_v0 = vsel %vm368_vm0, %v5716_v45, 0  ;;  %3650 = vrot.lane.b32.xlu1 %v5716_v45, %s6746_s6  ;;  %3499 = vrot.lane.b32.xlu0 %v5716_v45, %s6744_s4  ;;  %v6062_v36 = vld [vmem:[%s8478_s1 + $0x340] sm:$0xff] }
 0x220   : >> { %5087 = vmatmul.msk.bf16.gmra.mxu1 %vm343_vm1, %v6036_v35  ;;  %5262 = vmatmul.msk.bf16.gmra.mxu0 %vm343_vm1, %v6061_v2 }
 0x221   : >> { %v7551_v40 = vadd.f32 %v1579_v46, %v1449_v50  ;;  %5150 = vmatmul.msk.bf16.gmra.mxu2 %vm343_vm1, %v6045_v54  ;;  %3384 = vmatpush.bf16.msrb.mxu0 %v3375_v0 }
 0x222   : >> { %3801 = vrot.lane.b32.xlu2 %v5716_v45, %s6745_s5 }
 0x223   : >> { %5206 = vmatmul.msk.bf16.gmra.mxu3 %vm343_vm1, %v6053_v37 }
 0x224   : >> { %v1280_v58 = vpop.f32.mrf.mxu2 }
 0x225   : >> { %v1299_v33 = vadd.f32 %v1280_v58, %v1148_v38  ;;  %v1131_v56 = vpop.f32.mrf.mxu1  ;;  %v1584_v49 = vpop.f32.mrf.mxu0 }
 0x226   : >> { %v1431_v61 = vpop.f32.mrf.mxu3  ;;  %v1149_v46 = vadd.f32 %v1131_v56, %v7394_v53  ;;  %v6070_v53 = vld [vmem:[%s8478_s1 + $0x380] sm:$0xff] }
 0x227   : >> { %v1450_v52 = vadd.f32 %v1431_v61, %v1299_v33  ;;  %3952 = vrot.lane.b32.xlu1 %v5716_v45, %s6747_s7 }
 0x229   : >> { %v7562_v32 = vadd.f32 %v1582_v43, %v1450_v52  ;;  %v6079_v43 = vld [vmem:[%s8478_s1 + $0x3c0] sm:$0xff] }
 0x22c   : >> { %v1282_v35 = vpop.f32.mrf.mxu2 }
 0x22d   : >> { %v1300_v54 = vadd.f32 %v1282_v35, %v1149_v46  ;;  %v1698_v37 = vpop.f32.mrf.mxu1  ;;  %v2160_v38 = vpop.f32.mrf.mxu0 }
 0x22e   : >> { %v1433_v2 = vpop.f32.mrf.mxu3  ;;  %v1738_v50 = vadd.f32 %v1698_v37, %v7399_v55 }
 0x22f   : >> { %v1451_v57 = vadd.f32 %v1433_v2, %v1300_v54  ;;  %v6088_v2 = vld [vmem:[%s8478_s1 + $0x408] sm:$0xff] }
 0x230   : >> { %5311 = vmatmul.msk.bf16.vlgmr.msra.gmra.mxu1 %vm343_vm1, %v6062_v36  ;;  %5486 = vmatmul.msk.bf16.vlgmr.msra.gmra.mxu0 %vm343_vm1, %v6087_v63  ;;  %v6071_v54 = vld [vmem:[%s8478_s1 + $0x388] sm:$0xff] }
 0x231   : >> { %v7580_v39 = vadd.f32 %v1584_v49, %v1451_v57  ;;  %5367 = vmatmul.msk.bf16.vlgmr.msra.gmra.mxu2 %vm343_vm1, %v6070_v53  ;;  %v6063_v49 = vld [vmem:[%s8478_s1 + $0x348] sm:$0xff] }
 0x233   : >> { %5430 = vmatmul.msk.bf16.vlgmr.msra.gmra.mxu3 %vm343_vm1, %v6079_v43 }
 0x234   : >> { %v1858_v45 = vpop.f32.mrf.mxu2 }
 0x235   : >> { %v1898_v61 = vadd.f32 %v1858_v45, %v1738_v50  ;;  %v1700_v0 = vpop.f32.mrf.mxu1  ;;  %v2162_v33 = vpop.f32.mrf.mxu0 }
 0x236   : >> { %v2009_v58 = vpop.f32.mrf.mxu3  ;;  %v1739_v56 = vadd.f32 %v1700_v0, %v7416_v42  ;;  %v6080_v42 = vld [vmem:[%s8478_s1 + $0x3c8] sm:$0xff] }
 0x237   : >> { %v2049_v46 = vadd.f32 %v2009_v58, %v1898_v61 }
 0x239   : >> { %v7585_v55 = vadd.f32 %v2160_v38, %v2049_v46 }
 0x23c   : >> { %v1860_v52 = vpop.f32.mrf.mxu2 }
 0x23d   : >> { %v1899_v36 = vadd.f32 %v1860_v52, %v1739_v56  ;;  %v1703_v63 = vpop.f32.mrf.mxu1  ;;  %v2165_v37 = vpop.f32.mrf.mxu0 }
 0x23e   : >> { %v2011_v35 = vpop.f32.mrf.mxu3  ;;  %v1740_v53 = vadd.f32 %v1703_v63, %v7421_v16 }
 0x23f   : >> { %v2050_v43 = vadd.f32 %v2011_v35, %v1899_v36  ;;  %v6089_v35 = vld [vmem:[%s8478_s1 + $0x410] sm:$0xff] }
 0x240   : >> { %5312 = vmatmul.msk.bf16.gmra.mxu1 %vm343_vm1, %v6063_v49  ;;  %5487 = vmatmul.msk.bf16.gmra.mxu0 %vm343_vm1, %v6088_v2  ;;  %v6072_v36 = vld [vmem:[%s8478_s1 + $0x390] sm:$0xff] }
 0x241   : >> { %v7602_v38 = vadd.f32 %v2162_v33, %v2050_v43  ;;  %5368 = vmatmul.msk.bf16.gmra.mxu2 %vm343_vm1, %v6071_v54  ;;  %v6064_v33 = vld [vmem:[%s8478_s1 + $0x350] sm:$0xff] }
 0x243   : >> { %5431 = vmatmul.msk.bf16.gmra.mxu3 %vm343_vm1, %v6080_v42 }
 0x244   : >> { %v1863_v50 = vpop.f32.mrf.mxu2 }
 0x245   : >> { %v1900_v45 = vadd.f32 %v1863_v50, %v1740_v53  ;;  %v1705_v58 = vpop.f32.mrf.mxu1  ;;  %v2167_v61 = vpop.f32.mrf.mxu0 }
 0x246   : >> { %v2014_v57 = vpop.f32.mrf.mxu3  ;;  %v1741_v0 = vadd.f32 %v1705_v58, %v7438_v41  ;;  %v6081_v41 = vld [vmem:[%s8478_s1 + $0x3d0] sm:$0xff] }
 0x247   : >> { %v2051_v56 = vadd.f32 %v2014_v57, %v1900_v45 }
 0x249   : >> { %v7607_v16 = vadd.f32 %v2165_v37, %v2051_v56 }
 0x24c   : >> { %v1865_v46 = vpop.f32.mrf.mxu2 }
 0x24d   : >> { %v1901_v49 = vadd.f32 %v1865_v46, %v1741_v0  ;;  %v1708_v2 = vpop.f32.mrf.mxu1  ;;  %v2170_v63 = vpop.f32.mrf.mxu0 }
 0x24e   : >> { %v2016_v52 = vpop.f32.mrf.mxu3  ;;  %v1742_v54 = vadd.f32 %v1708_v2, %v7443_v59 }
 0x24f   : >> { %v2052_v42 = vadd.f32 %v2016_v52, %v1901_v49  ;;  %v6090_v52 = vld [vmem:[%s8478_s1 + $0x418] sm:$0xff] }
 0x250   : >> { %5313 = vmatmul.msk.bf16.gmra.mxu1 %vm343_vm1, %v6064_v33  ;;  %5488 = vmatmul.msk.bf16.gmra.mxu0 %vm343_vm1, %v6089_v35  ;;  %v6073_v49 = vld [vmem:[%s8478_s1 + $0x398] sm:$0xff] }
 0x251   : >> { %v7624_v37 = vadd.f32 %v2167_v61, %v2052_v42  ;;  %5369 = vmatmul.msk.bf16.gmra.mxu2 %vm343_vm1, %v6072_v36  ;;  %v6065_v61 = vld [vmem:[%s8478_s1 + $0x358] sm:$0xff] }
 0x253   : >> { %5432 = vmatmul.msk.bf16.gmra.mxu3 %vm343_vm1, %v6081_v41 }
 0x254   : >> { %v1868_v53 = vpop.f32.mrf.mxu2 }
 0x255   : >> { %v1902_v50 = vadd.f32 %v1868_v53, %v1742_v54  ;;  %v1710_v57 = vpop.f32.mrf.mxu1  ;;  %v2172_v45 = vpop.f32.mrf.mxu0 }
 0x256   : >> { %v2019_v43 = vpop.f32.mrf.mxu3  ;;  %v1743_v58 = vadd.f32 %v1710_v57, %v7460_v51  ;;  %v6082_v51 = vld [vmem:[%s8478_s1 + $0x3d8] sm:$0xff] }
 0x257   : >> { %v2053_v0 = vadd.f32 %v2019_v43, %v1902_v50 }
 0x259   : >> { %v7629_v59 = vadd.f32 %v2170_v63, %v2053_v0 }
 0x25c   : >> { %v1870_v56 = vpop.f32.mrf.mxu2 }
 0x25d   : >> { %v1903_v33 = vadd.f32 %v1870_v56, %v1743_v58  ;;  %v1713_v35 = vpop.f32.mrf.mxu1  ;;  %v2175_v2 = vpop.f32.mrf.mxu0 }
 0x25e   : >> { %v2021_v46 = vpop.f32.mrf.mxu3  ;;  %v1744_v36 = vadd.f32 %v1713_v35, %v7465_v44 }
 0x25f   : >> { %v2054_v41 = vadd.f32 %v2021_v46, %v1903_v33  ;;  %v6091_v46 = vld [vmem:[%s8478_s1 + $0x420] sm:$0xff] }
 0x260   : >> { %5314 = vmatmul.msk.bf16.gmra.mxu1 %vm343_vm1, %v6065_v61  ;;  %5489 = vmatmul.msk.bf16.gmra.mxu0 %vm343_vm1, %v6090_v52  ;;  %v6074_v33 = vld [vmem:[%s8478_s1 + $0x3a0] sm:$0xff] }
 0x261   : >> { %v7646_v63 = vadd.f32 %v2172_v45, %v2054_v41  ;;  %5370 = vmatmul.msk.bf16.gmra.mxu2 %vm343_vm1, %v6073_v49  ;;  %v6066_v45 = vld [vmem:[%s8478_s1 + $0x360] sm:$0xff] }
 0x263   : >> { %5433 = vmatmul.msk.bf16.gmra.mxu3 %vm343_vm1, %v6082_v51 }
 0x264   : >> { %v1873_v54 = vpop.f32.mrf.mxu2 }
 0x265   : >> { %v1904_v53 = vadd.f32 %v1873_v54, %v1744_v36  ;;  %v1715_v43 = vpop.f32.mrf.mxu1  ;;  %v2177_v50 = vpop.f32.mrf.mxu0 }
 0x266   : >> { %v2024_v42 = vpop.f32.mrf.mxu3  ;;  %v1745_v57 = vadd.f32 %v1715_v43, %v7482_v48  ;;  %v6083_v48 = vld [vmem:[%s8478_s1 + $0x3e0] sm:$0xff] }
 0x267   : >> { %v2055_v58 = vadd.f32 %v2024_v42, %v1904_v53 }
 0x269   : >> { %v7651_v44 = vadd.f32 %v2175_v2, %v2055_v58 }
 0x26c   : >> { %v1875_v0 = vpop.f32.mrf.mxu2 }
 0x26d   : >> { %v1905_v61 = vadd.f32 %v1875_v0, %v1745_v57  ;;  %v1718_v52 = vpop.f32.mrf.mxu1  ;;  %v2180_v35 = vpop.f32.mrf.mxu0 }
 0x26e   : >> { %v2026_v56 = vpop.f32.mrf.mxu3  ;;  %v1746_v49 = vadd.f32 %v1718_v52, %v7487_v62 }
 0x26f   : >> { %v2056_v51 = vadd.f32 %v2026_v56, %v1905_v61  ;;  %v6092_v56 = vld [vmem:[%s8478_s1 + $0x428] sm:$0xff] }
 0x270   : >> { %5315 = vmatmul.msk.bf16.gmra.mxu1 %vm343_vm1, %v6066_v45  ;;  %5490 = vmatmul.msk.bf16.gmra.mxu0 %vm343_vm1, %v6091_v46  ;;  %v6075_v61 = vld [vmem:[%s8478_s1 + $0x3a8] sm:$0xff] }
 0x271   : >> { %v7668_v2 = vadd.f32 %v2177_v50, %v2056_v51  ;;  %5371 = vmatmul.msk.bf16.gmra.mxu2 %vm343_vm1, %v6074_v33  ;;  %v6067_v50 = vld [vmem:[%s8478_s1 + $0x368] sm:$0xff] }
 0x273   : >> { %5434 = vmatmul.msk.bf16.gmra.mxu3 %vm343_vm1, %v6083_v48 }
 0x274   : >> { %v1878_v36 = vpop.f32.mrf.mxu2 }
 0x275   : >> { %v1906_v54 = vadd.f32 %v1878_v36, %v1746_v49  ;;  %v1720_v42 = vpop.f32.mrf.mxu1  ;;  %v2182_v53 = vpop.f32.mrf.mxu0 }
 0x276   : >> { %v2029_v41 = vpop.f32.mrf.mxu3  ;;  %v1747_v43 = vadd.f32 %v1720_v42, %v7504_v1  ;;  %v6084_v1 = vld [vmem:[%s8478_s1 + $0x3e8] sm:$0xff] }
 0x277   : >> { %v2057_v57 = vadd.f32 %v2029_v41, %v1906_v54 }
 0x279   : >> { %v7673_v62 = vadd.f32 %v2180_v35, %v2057_v57 }
 0x27c   : >> { %v1880_v58 = vpop.f32.mrf.mxu2 }
 0x27d   : >> { %v1907_v45 = vadd.f32 %v1880_v58, %v1747_v43  ;;  %v1723_v46 = vpop.f32.mrf.mxu1  ;;  %v2185_v52 = vpop.f32.mrf.mxu0 }
 0x27e   : >> { %v2031_v0 = vpop.f32.mrf.mxu3  ;;  %v1748_v33 = vadd.f32 %v1723_v46, %v7509_v47 }
 0x27f   : >> { %v2058_v48 = vadd.f32 %v2031_v0, %v1907_v45  ;;  %v6093_v0 = vld [vmem:[%s8478_s1 + $0x430] sm:$0xff] }
 0x280   : >> { %5316 = vmatmul.msk.bf16.gmra.mxu1 %vm343_vm1, %v6067_v50  ;;  %5491 = vmatmul.msk.bf16.gmra.mxu0 %vm343_vm1, %v6092_v56  ;;  %v6076_v45 = vld [vmem:[%s8478_s1 + $0x3b0] sm:$0xff] }
 0x281   : >> { %v7690_v35 = vadd.f32 %v2182_v53, %v2058_v48  ;;  %5372 = vmatmul.msk.bf16.gmra.mxu2 %vm343_vm1, %v6075_v61  ;;  %v6068_v53 = vld [vmem:[%s8478_s1 + $0x370] sm:$0xff] }
 0x283   : >> { %5435 = vmatmul.msk.bf16.gmra.mxu3 %vm343_vm1, %v6084_v1 }
 0x284   : >> { %v1883_v49 = vpop.f32.mrf.mxu2 }
 0x285   : >> { %v1908_v36 = vadd.f32 %v1883_v49, %v1748_v33  ;;  %v1725_v41 = vpop.f32.mrf.mxu1  ;;  %v2187_v54 = vpop.f32.mrf.mxu0 }
 0x286   : >> { %v2034_v51 = vpop.f32.mrf.mxu3  ;;  %v1749_v42 = vadd.f32 %v1725_v41, %v7526_v60  ;;  %v6085_v60 = vld [vmem:[%s8478_s1 + $0x3f0] sm:$0xff] }
 0x287   : >> { %v2059_v43 = vadd.f32 %v2034_v51, %v1908_v36 }
 0x289   : >> { %v7695_v47 = vadd.f32 %v2185_v52, %v2059_v43 }
 0x28c   : >> { %v1885_v57 = vpop.f32.mrf.mxu2 }
 0x28d   : >> { %v1909_v50 = vadd.f32 %v1885_v57, %v1749_v42  ;;  %v1728_v56 = vpop.f32.mrf.mxu1  ;;  %v2190_v46 = vpop.f32.mrf.mxu0 }
 0x28e   : >> { %v2036_v58 = vpop.f32.mrf.mxu3  ;;  %v1750_v61 = vadd.f32 %v1728_v56, %v7532_v34 }
 0x28f   : >> { %v2060_v1 = vadd.f32 %v2036_v58, %v1909_v50 }
 0x290   : >> { %5317 = vmatmul.msk.bf16.gmra.mxu1 %vm343_vm1, %v6068_v53  ;;  %5492 = vmatmul.msk.bf16.gmra.mxu0 %vm343_vm1, %v6093_v0 }
 0x291   : >> { %v7712_v52 = vadd.f32 %v2187_v54, %v2060_v1  ;;  %5373 = vmatmul.msk.bf16.gmra.mxu2 %vm343_vm1, %v6076_v45  ;;  %v3651_v42 = vpop.permute.xlu1 %3650  ;;  %v3802_v54 = vpop.permute.xlu2 %3801  ;;  %v6094_v45 = vld [vmem:[%s8478_s1 + $0x438] sm:$0xff] }
 0x292   : >> { %v3677_v43 = vsel %vm368_vm0, %v3651_v42, 0  ;;  %v3500_v58 = vpop.permute.xlu0 %3499  ;;  %v3828_v53 = vsel %vm368_vm0, %v3802_v54, 0  ;;  %v6086_v1 = vld [vmem:[%s8478_s1 + $0x3f8] sm:$0xff] }
 0x293   : >> { %5436 = vmatmul.msk.bf16.gmra.mxu3 %vm343_vm1, %v6085_v60  ;;  %3686 = vmatpush.bf16.msra.mxu2 %v3677_v43  ;;  %v3526_v0 = vsel %vm368_vm0, %v3500_v58, 0 }
 0x294   : >> { %v1888_v33 = vpop.f32.mrf.mxu2  ;;  %3837 = vmatpush.bf16.msra.mxu3 %v3828_v53  ;;  %3535 = vmatpush.bf16.msra.mxu1 %v3526_v0 }
 0x295   : >> { %v1910_v49 = vadd.f32 %v1888_v33, %v1750_v61  ;;  %v1730_v51 = vpop.f32.mrf.mxu1  ;;  %v2192_v36 = vpop.f32.mrf.mxu0  ;;  %v6077_v61 = vld [vmem:[%s8478_s1 + $0x3b8] sm:$0xff] }
 0x296   : >> { %v2039_v48 = vpop.f32.mrf.mxu3  ;;  %v1751_v41 = vadd.f32 %v1730_v51, %v7551_v40  ;;  %v6069_v40 = vld [vmem:[%s8478_s1 + $0x378] sm:$0xff] }
 0x297   : >> { %v2061_v34 = vadd.f32 %v2039_v48, %v1910_v49 }
 0x299   : >> { %v7718_v57 = vadd.f32 %v2190_v46, %v2061_v34 }
 0x29c   : >> { %v1890_v50 = vpop.f32.mrf.mxu2 }
 0x29d   : >> { %v1911_v60 = vadd.f32 %v1890_v50, %v1751_v41  ;;  %v1733_v46 = vpop.f32.mrf.mxu1  ;;  %v2195_v33 = vpop.f32.mrf.mxu0 }
 0x29e   : >> { %v2041_v56 = vpop.f32.mrf.mxu3  ;;  %v1752_v48 = vadd.f32 %v1733_v46, %v7562_v32  ;;  %v3953_v41 = vpop.permute.xlu1 %3952 }
 0x29f   : >> { %v2062_v49 = vadd.f32 %v2041_v56, %v1911_v60  ;;  %v3979_v42 = vsel %vm368_vm0, %v3953_v41, 0 }
 0x2a0   : >> { %5318 = vmatmul.msk.bf16.gmra.mxu1 %vm343_vm1, %v6069_v40  ;;  %5493 = vmatmul.msk.bf16.gmra.mxu0 %vm343_vm1, %v6094_v45  ;;  %v6095_v40 = vld [vmem:[%s8478_s1 + $0x440] sm:$0xff] }
 0x2a1   : >> { %v7737_v51 = vadd.f32 %v2192_v36, %v2062_v49  ;;  %5374 = vmatmul.msk.bf16.gmra.mxu2 %vm343_vm1, %v6077_v61  ;;  %3988 = vmatpush.bf16.msra.mxu0 %v3979_v42  ;;  %v6120_v45 = vld [vmem:[%s8478_s1 + $0x500] sm:$0xff] }
 0x2a2   : >> { %v6103_v61 = vld [vmem:[%s8478_s1 + $0x480] sm:$0xff] }
 0x2a3   : >> { %5437 = vmatmul.msk.bf16.gmra.mxu3 %vm343_vm1, %v6086_v1 }
 0x2a4   : >> { %v1893_v34 = vpop.f32.mrf.mxu2 }
 0x2a5   : >> { %v1912_v54 = vadd.f32 %v1893_v34, %v1752_v48  ;;  %v1735_v58 = vpop.f32.mrf.mxu1  ;;  %v2197_v32 = vpop.f32.mrf.mxu0 }
 0x2a6   : >> { %v2044_v43 = vpop.f32.mrf.mxu3  ;;  %v1753_v53 = vadd.f32 %v1735_v58, %v7580_v39  ;;  %v6111_v39 = vld [vmem:[%s8478_s1 + $0x4c0] sm:$0xff] }
 0x2a7   : >> { %v2063_v0 = vadd.f32 %v2044_v43, %v1912_v54 }
 0x2a9   : >> { %v7743_v50 = vadd.f32 %v2195_v33, %v2063_v0 }
 0x2ac   : >> { %v1895_v36 = vpop.f32.mrf.mxu2 }
 0x2ad   : >> { %v1913_v60 = vadd.f32 %v1895_v36, %v1753_v53  ;;  %v2311_v46 = vpop.f32.mrf.mxu1  ;;  %v2773_v1 = vpop.f32.mrf.mxu0 }
 0x2ae   : >> { %v2046_v56 = vpop.f32.mrf.mxu3  ;;  %v2351_v33 = vadd.f32 %v2311_v46, %v7585_v55 }
 0x2af   : >> { %v2064_v48 = vadd.f32 %v2046_v56, %v1913_v60  ;;  %v6121_v56 = vld [vmem:[%s8478_s1 + $0x508] sm:$0xff] }
 0x2b0   : >> { %5542 = vmatmul.msk.bf16.vlgmr.msrb.gmra.mxu1 %vm343_vm1, %v6095_v40  ;;  %5717 = vmatmul.msk.bf16.vlgmr.msrb.gmra.mxu0 %vm343_vm1, %v6120_v45  ;;  %v6104_v60 = vld [vmem:[%s8478_s1 + $0x488] sm:$0xff] }
 0x2b1   : >> { %v7760_v49 = vadd.f32 %v2197_v32, %v2064_v48  ;;  %5598 = vmatmul.msk.bf16.vlgmr.msrb.gmra.mxu2 %vm343_vm1, %v6103_v61  ;;  %v6096_v32 = vld [vmem:[%s8478_s1 + $0x448] sm:$0xff] }
 0x2b3   : >> { %5654 = vmatmul.msk.bf16.vlgmr.msrb.gmra.mxu3 %vm343_vm1, %v6111_v39 }
 0x2b4   : >> { %v2462_v41 = vpop.f32.mrf.mxu2 }
 0x2b5   : >> { %v2502_v34 = vadd.f32 %v2462_v41, %v2351_v33  ;;  %v2313_v43 = vpop.f32.mrf.mxu1  ;;  %v2775_v54 = vpop.f32.mrf.mxu0 }
 0x2b6   : >> { %v2622_v42 = vpop.f32.mrf.mxu3  ;;  %v2352_v58 = vadd.f32 %v2313_v43, %v7602_v38  ;;  %v6112_v38 = vld [vmem:[%s8478_s1 + $0x4c8] sm:$0xff] }
 0x2b7   : >> { %v2662_v53 = vadd.f32 %v2622_v42, %v2502_v34 }
 0x2b9   : >> { %v7765_v55 = vadd.f32 %v2773_v1, %v2662_v53 }
 0x2bc   : >> { %v2464_v0 = vpop.f32.mrf.mxu2 }
 0x2bd   : >> { %v2503_v40 = vadd.f32 %v2464_v0, %v2352_v58  ;;  %v2316_v45 = vpop.f32.mrf.mxu1  ;;  %v2778_v46 = vpop.f32.mrf.mxu0 }
 0x2be   : >> { %v2624_v36 = vpop.f32.mrf.mxu3  ;;  %v2353_v61 = vadd.f32 %v2316_v45, %v7607_v16 }
 0x2bf   : >> { %v2663_v39 = vadd.f32 %v2624_v36, %v2503_v40  ;;  %v6122_v36 = vld [vmem:[%s8478_s1 + $0x510] sm:$0xff] }
 0x2c0   : >> { %5543 = vmatmul.msk.bf16.gmra.mxu1 %vm343_vm1, %v6096_v32  ;;  %5718 = vmatmul.msk.bf16.gmra.mxu0 %vm343_vm1, %v6121_v56  ;;  %v6105_v40 = vld [vmem:[%s8478_s1 + $0x490] sm:$0xff] }
 0x2c1   : >> { %v7782_v1 = vadd.f32 %v2775_v54, %v2663_v39  ;;  %5599 = vmatmul.msk.bf16.gmra.mxu2 %vm343_vm1, %v6104_v60  ;;  %v6097_v54 = vld [vmem:[%s8478_s1 + $0x450] sm:$0xff] }
 0x2c3   : >> { %5655 = vmatmul.msk.bf16.gmra.mxu3 %vm343_vm1, %v6112_v38 }
 0x2c4   : >> { %v2467_v33 = vpop.f32.mrf.mxu2 }
 0x2c5   : >> { %v2504_v41 = vadd.f32 %v2467_v33, %v2353_v61  ;;  %v2318_v42 = vpop.f32.mrf.mxu1  ;;  %v2780_v34 = vpop.f32.mrf.mxu0 }
 0x2c6   : >> { %v2627_v48 = vpop.f32.mrf.mxu3  ;;  %v2354_v43 = vadd.f32 %v2318_v42, %v7624_v37  ;;  %v6113_v37 = vld [vmem:[%s8478_s1 + $0x4d0] sm:$0xff] }
 0x2c7   : >> { %v2664_v58 = vadd.f32 %v2627_v48, %v2504_v41 }
 0x2c9   : >> { %v7787_v16 = vadd.f32 %v2778_v46, %v2664_v58 }
 0x2cc   : >> { %v2469_v53 = vpop.f32.mrf.mxu2 }
 0x2cd   : >> { %v2505_v32 = vadd.f32 %v2469_v53, %v2354_v43  ;;  %v2321_v56 = vpop.f32.mrf.mxu1  ;;  %v2783_v45 = vpop.f32.mrf.mxu0 }
 0x2ce   : >> { %v2629_v0 = vpop.f32.mrf.mxu3  ;;  %v2355_v60 = vadd.f32 %v2321_v56, %v7629_v59 }
 0x2cf   : >> { %v2665_v38 = vadd.f32 %v2629_v0, %v2505_v32  ;;  %v6123_v0 = vld [vmem:[%s8478_s1 + $0x518] sm:$0xff] }
 0x2d0   : >> { %5544 = vmatmul.msk.bf16.gmra.mxu1 %vm343_vm1, %v6097_v54  ;;  %5719 = vmatmul.msk.bf16.gmra.mxu0 %vm343_vm1, %v6122_v36  ;;  %v6106_v32 = vld [vmem:[%s8478_s1 + $0x498] sm:$0xff] }
 0x2d1   : >> { %v7804_v46 = vadd.f32 %v2780_v34, %v2665_v38  ;;  %5600 = vmatmul.msk.bf16.gmra.mxu2 %vm343_vm1, %v6105_v40  ;;  %v6098_v34 = vld [vmem:[%s8478_s1 + $0x458] sm:$0xff] }
 0x2d3   : >> { %5656 = vmatmul.msk.bf16.gmra.mxu3 %vm343_vm1, %v6113_v37 }
 0x2d4   : >> { %v2472_v61 = vpop.f32.mrf.mxu2 }
 0x2d5   : >> { %v2506_v33 = vadd.f32 %v2472_v61, %v2355_v60  ;;  %v2323_v48 = vpop.f32.mrf.mxu1  ;;  %v2785_v41 = vpop.f32.mrf.mxu0 }
 0x2d6   : >> { %v2632_v39 = vpop.f32.mrf.mxu3  ;;  %v2356_v42 = vadd.f32 %v2323_v48, %v7646_v63  ;;  %v6114_v63 = vld [vmem:[%s8478_s1 + $0x4d8] sm:$0xff] }
 0x2d7   : >> { %v2666_v43 = vadd.f32 %v2632_v39, %v2506_v33 }
 0x2d9   : >> { %v7809_v59 = vadd.f32 %v2783_v45, %v2666_v43 }
 0x2dc   : >> { %v2474_v58 = vpop.f32.mrf.mxu2 }
 0x2dd   : >> { %v2507_v54 = vadd.f32 %v2474_v58, %v2356_v42  ;;  %v2326_v36 = vpop.f32.mrf.mxu1  ;;  %v2788_v56 = vpop.f32.mrf.mxu0 }
 0x2de   : >> { %v2634_v53 = vpop.f32.mrf.mxu3  ;;  %v2357_v40 = vadd.f32 %v2326_v36, %v7651_v44 }
 0x2df   : >> { %v2667_v37 = vadd.f32 %v2634_v53, %v2507_v54  ;;  %v6124_v53 = vld [vmem:[%s8478_s1 + $0x520] sm:$0xff] }
 0x2e0   : >> { %5545 = vmatmul.msk.bf16.gmra.mxu1 %vm343_vm1, %v6098_v34  ;;  %5720 = vmatmul.msk.bf16.gmra.mxu0 %vm343_vm1, %v6123_v0  ;;  %v6107_v54 = vld [vmem:[%s8478_s1 + $0x4a0] sm:$0xff] }
 0x2e1   : >> { %v7826_v45 = vadd.f32 %v2785_v41, %v2667_v37  ;;  %5601 = vmatmul.msk.bf16.gmra.mxu2 %vm343_vm1, %v6106_v32  ;;  %v6099_v41 = vld [vmem:[%s8478_s1 + $0x460] sm:$0xff] }
 0x2e3   : >> { %5657 = vmatmul.msk.bf16.gmra.mxu3 %vm343_vm1, %v6114_v63 }
 0x2e4   : >> { %v2477_v60 = vpop.f32.mrf.mxu2 }
 0x2e5   : >> { %v2508_v61 = vadd.f32 %v2477_v60, %v2357_v40  ;;  %v2328_v39 = vpop.f32.mrf.mxu1  ;;  %v2790_v33 = vpop.f32.mrf.mxu0 }
 0x2e6   : >> { %v2637_v38 = vpop.f32.mrf.mxu3  ;;  %v2358_v48 = vadd.f32 %v2328_v39, %v7668_v2  ;;  %v6115_v2 = vld [vmem:[%s8478_s1 + $0x4e0] sm:$0xff] }
 0x2e7   : >> { %v2668_v42 = vadd.f32 %v2637_v38, %v2508_v61 }
 0x2e9   : >> { %v7831_v44 = vadd.f32 %v2788_v56, %v2668_v42 }
 0x2ec   : >> { %v2479_v43 = vpop.f32.mrf.mxu2 }
 0x2ed   : >> { %v2509_v34 = vadd.f32 %v2479_v43, %v2358_v48  ;;  %v2331_v0 = vpop.f32.mrf.mxu1  ;;  %v2793_v36 = vpop.f32.mrf.mxu0 }
 0x2ee   : >> { %v2639_v58 = vpop.f32.mrf.mxu3  ;;  %v2359_v32 = vadd.f32 %v2331_v0, %v7673_v62 }
 0x2ef   : >> { %v2669_v63 = vadd.f32 %v2639_v58, %v2509_v34  ;;  %v6125_v58 = vld [vmem:[%s8478_s1 + $0x528] sm:$0xff] }
 0x2f0   : >> { %5546 = vmatmul.msk.bf16.gmra.mxu1 %vm343_vm1, %v6099_v41  ;;  %5721 = vmatmul.msk.bf16.gmra.mxu0 %vm343_vm1, %v6124_v53  ;;  %v6108_v34 = vld [vmem:[%s8478_s1 + $0x4a8] sm:$0xff] }
 0x2f1   : >> { %v7848_v56 = vadd.f32 %v2790_v33, %v2669_v63  ;;  %5602 = vmatmul.msk.bf16.gmra.mxu2 %vm343_vm1, %v6107_v54  ;;  %v6100_v33 = vld [vmem:[%s8478_s1 + $0x468] sm:$0xff] }
 0x2f3   : >> { %5658 = vmatmul.msk.bf16.gmra.mxu3 %vm343_vm1, %v6115_v2 }
 0x2f4   : >> { %v2482_v40 = vpop.f32.mrf.mxu2 }
 0x2f5   : >> { %v2510_v60 = vadd.f32 %v2482_v40, %v2359_v32  ;;  %v2333_v38 = vpop.f32.mrf.mxu1  ;;  %v2795_v61 = vpop.f32.mrf.mxu0 }
 0x2f6   : >> { %v2642_v37 = vpop.f32.mrf.mxu3  ;;  %v2360_v39 = vadd.f32 %v2333_v38, %v7690_v35  ;;  %v6116_v35 = vld [vmem:[%s8478_s1 + $0x4e8] sm:$0xff] }
 0x2f7   : >> { %v2670_v48 = vadd.f32 %v2642_v37, %v2510_v60 }
 0x2f9   : >> { %v7853_v62 = vadd.f32 %v2793_v36, %v2670_v48 }
 0x2fc   : >> { %v2484_v42 = vpop.f32.mrf.mxu2 }
 0x2fd   : >> { %v2511_v41 = vadd.f32 %v2484_v42, %v2360_v39  ;;  %v2336_v53 = vpop.f32.mrf.mxu1  ;;  %v2798_v0 = vpop.f32.mrf.mxu0 }
 0x2fe   : >> { %v2644_v43 = vpop.f32.mrf.mxu3  ;;  %v2361_v54 = vadd.f32 %v2336_v53, %v7695_v47 }
 0x2ff   : >> { %v2671_v2 = vadd.f32 %v2644_v43, %v2511_v41  ;;  %v6126_v43 = vld [vmem:[%s8478_s1 + $0x530] sm:$0xff] }
 0x300   : >> { %5547 = vmatmul.msk.bf16.gmra.mxu1 %vm343_vm1, %v6100_v33  ;;  %5722 = vmatmul.msk.bf16.gmra.mxu0 %vm343_vm1, %v6125_v58  ;;  %v6109_v41 = vld [vmem:[%s8478_s1 + $0x4b0] sm:$0xff] }
 0x301   : >> { %v7870_v36 = vadd.f32 %v2795_v61, %v2671_v2  ;;  %5603 = vmatmul.msk.bf16.gmra.mxu2 %vm343_vm1, %v6108_v34  ;;  %v6101_v61 = vld [vmem:[%s8478_s1 + $0x470] sm:$0xff] }
 0x303   : >> { %5659 = vmatmul.msk.bf16.gmra.mxu3 %vm343_vm1, %v6116_v35 }
 0x304   : >> { %v2487_v32 = vpop.f32.mrf.mxu2 }
 0x305   : >> { %v2512_v40 = vadd.f32 %v2487_v32, %v2361_v54  ;;  %v2338_v37 = vpop.f32.mrf.mxu1  ;;  %v2800_v60 = vpop.f32.mrf.mxu0 }
 0x306   : >> { %v2647_v63 = vpop.f32.mrf.mxu3  ;;  %v2362_v38 = vadd.f32 %v2338_v37, %v7712_v52  ;;  %v6117_v52 = vld [vmem:[%s8478_s1 + $0x4f0] sm:$0xff] }
 0x307   : >> { %v2672_v39 = vadd.f32 %v2647_v63, %v2512_v40 }
 0x309   : >> { %v7875_v47 = vadd.f32 %v2798_v0, %v2672_v39 }
 0x30c   : >> { %v2489_v48 = vpop.f32.mrf.mxu2 }
 0x30d   : >> { %v2513_v33 = vadd.f32 %v2489_v48, %v2362_v38  ;;  %v2341_v58 = vpop.f32.mrf.mxu1  ;;  %v2803_v53 = vpop.f32.mrf.mxu0 }
 0x30e   : >> { %v2649_v42 = vpop.f32.mrf.mxu3  ;;  %v2363_v34 = vadd.f32 %v2341_v58, %v7718_v57 }
 0x30f   : >> { %v2673_v35 = vadd.f32 %v2649_v42, %v2513_v33  ;;  %v6127_v42 = vld [vmem:[%s8478_s1 + $0x538] sm:$0xff] }
 0x310   : >> { %5548 = vmatmul.msk.bf16.gmra.mxu1 %vm343_vm1, %v6101_v61  ;;  %5723 = vmatmul.msk.bf16.gmra.mxu0 %vm343_vm1, %v6126_v43  ;;  %v6110_v33 = vld [vmem:[%s8478_s1 + $0x4b8] sm:$0xff] }
 0x311   : >> { %v7892_v0 = vadd.f32 %v2800_v60, %v2673_v35  ;;  %5604 = vmatmul.msk.bf16.gmra.mxu2 %vm343_vm1, %v6109_v41  ;;  %v6102_v60 = vld [vmem:[%s8478_s1 + $0x478] sm:$0xff] }
 0x313   : >> { %5660 = vmatmul.msk.bf16.gmra.mxu3 %vm343_vm1, %v6117_v52 }
 0x314   : >> { %v2492_v54 = vpop.f32.mrf.mxu2 }
 0x315   : >> { %v2514_v32 = vadd.f32 %v2492_v54, %v2363_v34  ;;  %v2343_v63 = vpop.f32.mrf.mxu1  ;;  %v2805_v40 = vpop.f32.mrf.mxu0 }
 0x316   : >> { %v2652_v2 = vpop.f32.mrf.mxu3  ;;  %v2364_v37 = vadd.f32 %v2343_v63, %v7737_v51  ;;  %v6118_v51 = vld [vmem:[%s8478_s1 + $0x4f8] sm:$0xff] }
 0x317   : >> { %v2674_v38 = vadd.f32 %v2652_v2, %v2514_v32 }
 0x319   : >> { %v7897_v57 = vadd.f32 %v2803_v53, %v2674_v38 }
 0x31c   : >> { %v2494_v39 = vpop.f32.mrf.mxu2 }
 0x31d   : >> { %v2515_v61 = vadd.f32 %v2494_v39, %v2364_v37  ;;  %v2346_v43 = vpop.f32.mrf.mxu1  ;;  %v2808_v58 = vpop.f32.mrf.mxu0 }
 0x31e   : >> { %v2654_v48 = vpop.f32.mrf.mxu3  ;;  %v2365_v41 = vadd.f32 %v2346_v43, %v7743_v50 }
 0x31f   : >> { %v2675_v52 = vadd.f32 %v2654_v48, %v2515_v61  ;;  %v6152_v48 = vld [vmem:[%s8478_s1 + $0x600] sm:$0xff] }
 0x320   : >> { %5549 = vmatmul.msk.bf16.gmra.mxu1 %vm343_vm1, %v6102_v60  ;;  %5724 = vmatmul.msk.bf16.gmra.mxu0 %vm343_vm1, %v6127_v42  ;;  %v6136_v61 = vld [vmem:[%s8478_s1 + $0x580] sm:$0xff] }
 0x321   : >> { %v7914_v53 = vadd.f32 %v2805_v40, %v2675_v52  ;;  %5605 = vmatmul.msk.bf16.gmra.mxu2 %vm343_vm1, %v6110_v33  ;;  %v6128_v40 = vld [vmem:[%s8478_s1 + $0x540] sm:$0xff] }
 0x323   : >> { %5661 = vmatmul.msk.bf16.gmra.mxu3 %vm343_vm1, %v6118_v51 }
 0x324   : >> { %v2497_v34 = vpop.f32.mrf.mxu2 }
 0x325   : >> { %v2516_v54 = vadd.f32 %v2497_v34, %v2365_v41  ;;  %v2348_v2 = vpop.f32.mrf.mxu1  ;;  %v2810_v32 = vpop.f32.mrf.mxu0 }
 0x326   : >> { %v2657_v35 = vpop.f32.mrf.mxu3  ;;  %v2366_v63 = vadd.f32 %v2348_v2, %v7760_v49  ;;  %v6144_v49 = vld [vmem:[%s8478_s1 + $0x5c0] sm:$0xff] }
 0x327   : >> { %v2676_v37 = vadd.f32 %v2657_v35, %v2516_v54 }
 0x329   : >> { %v7919_v50 = vadd.f32 %v2808_v58, %v2676_v37 }
 0x32c   : >> { %v2499_v38 = vpop.f32.mrf.mxu2 }
 0x32d   : >> { %v2517_v60 = vadd.f32 %v2499_v38, %v2366_v63  ;;  %v2924_v42 = vpop.f32.mrf.mxu1  ;;  %v3386_v43 = vpop.f32.mrf.mxu0 }
 0x32e   : >> { %v2659_v39 = vpop.f32.mrf.mxu3  ;;  %v2964_v33 = vadd.f32 %v2924_v42, %v7765_v55 }
 0x32f   : >> { %v2677_v51 = vadd.f32 %v2659_v39, %v2517_v60  ;;  %v6153_v39 = vld [vmem:[%s8478_s1 + $0x608] sm:$0xff] }
 0x330   : >> { %5773 = vmatmul.msk.bf16.vlgmr.msra.gmra.mxu1 %vm343_vm1, %v6128_v40  ;;  %5941 = vmatmul.msk.bf16.vlgmr.msra.gmra.mxu0 %vm343_vm1, %v6152_v48  ;;  %v6137_v60 = vld [vmem:[%s8478_s1 + $0x588] sm:$0xff] }
 0x331   : >> { %v7936_v58 = vadd.f32 %v2810_v32, %v2677_v51  ;;  %5829 = vmatmul.msk.bf16.vlgmr.msra.gmra.mxu2 %vm343_vm1, %v6136_v61  ;;  %v6129_v32 = vld [vmem:[%s8478_s1 + $0x548] sm:$0xff] }
 0x333   : >> { %5885 = vmatmul.msk.bf16.vlgmr.msra.gmra.mxu3 %vm343_vm1, %v6144_v49 }
 0x334   : >> { %v3075_v41 = vpop.f32.mrf.mxu2 }
 0x335   : >> { %v3115_v34 = vadd.f32 %v3075_v41, %v2964_v33  ;;  %v2926_v35 = vpop.f32.mrf.mxu1  ;;  %v3388_v54 = vpop.f32.mrf.mxu0 }
 0x336   : >> { %v3226_v52 = vpop.f32.mrf.mxu3  ;;  %v2965_v2 = vadd.f32 %v2926_v35, %v7782_v1  ;;  %v6145_v1 = vld [vmem:[%s8478_s1 + $0x5c8] sm:$0xff] }
 0x337   : >> { %v3266_v63 = vadd.f32 %v3226_v52, %v3115_v34 }
 0x339   : >> { %v7941_v55 = vadd.f32 %v3386_v43, %v3266_v63 }
 0x33c   : >> { %v3077_v37 = vpop.f32.mrf.mxu2 }
 0x33d   : >> { %v3116_v40 = vadd.f32 %v3077_v37, %v2965_v2  ;;  %v2929_v48 = vpop.f32.mrf.mxu1  ;;  %v3391_v42 = vpop.f32.mrf.mxu0 }
 0x33e   : >> { %v3228_v38 = vpop.f32.mrf.mxu3  ;;  %v2966_v61 = vadd.f32 %v2929_v48, %v7787_v16 }
 0x33f   : >> { %v3267_v49 = vadd.f32 %v3228_v38, %v3116_v40  ;;  %v6154_v38 = vld [vmem:[%s8478_s1 + $0x610] sm:$0xff] }
 0x340   : >> { %5774 = vmatmul.msk.bf16.gmra.mxu1 %vm343_vm1, %v6129_v32  ;;  %5942 = vmatmul.msk.bf16.gmra.mxu0 %vm343_vm1, %v6153_v39  ;;  %v6138_v40 = vld [vmem:[%s8478_s1 + $0x590] sm:$0xff] }
 0x341   : >> { %v7958_v43 = vadd.f32 %v3388_v54, %v3267_v49  ;;  %5830 = vmatmul.msk.bf16.gmra.mxu2 %vm343_vm1, %v6137_v60  ;;  %v6130_v54 = vld [vmem:[%s8478_s1 + $0x550] sm:$0xff] }
 0x343   : >> { %5886 = vmatmul.msk.bf16.gmra.mxu3 %vm343_vm1, %v6145_v1 }
 0x344   : >> { %v3080_v33 = vpop.f32.mrf.mxu2 }
 0x345   : >> { %v3117_v41 = vadd.f32 %v3080_v33, %v2966_v61  ;;  %v2931_v52 = vpop.f32.mrf.mxu1  ;;  %v3393_v34 = vpop.f32.mrf.mxu0 }
 0x346   : >> { %v3231_v51 = vpop.f32.mrf.mxu3  ;;  %v2967_v35 = vadd.f32 %v2931_v52, %v7804_v46  ;;  %v6146_v46 = vld [vmem:[%s8478_s1 + $0x5d0] sm:$0xff] }
 0x347   : >> { %v3268_v2 = vadd.f32 %v3231_v51, %v3117_v41 }
 0x349   : >> { %v7963_v16 = vadd.f32 %v3391_v42, %v3268_v2 }
 0x34c   : >> { %v3082_v63 = vpop.f32.mrf.mxu2 }
 0x34d   : >> { %v3118_v32 = vadd.f32 %v3082_v63, %v2967_v35  ;;  %v2934_v39 = vpop.f32.mrf.mxu1  ;;  %v3396_v48 = vpop.f32.mrf.mxu0 }
 0x34e   : >> { %v3233_v37 = vpop.f32.mrf.mxu3  ;;  %v2968_v60 = vadd.f32 %v2934_v39, %v7809_v59 }
 0x34f   : >> { %v3269_v1 = vadd.f32 %v3233_v37, %v3118_v32  ;;  %v6155_v37 = vld [vmem:[%s8478_s1 + $0x618] sm:$0xff] }
 0x350   : >> { %5775 = vmatmul.msk.bf16.gmra.mxu1 %vm343_vm1, %v6130_v54  ;;  %5943 = vmatmul.msk.bf16.gmra.mxu0 %vm343_vm1, %v6154_v38  ;;  %v6139_v32 = vld [vmem:[%s8478_s1 + $0x598] sm:$0xff] }
 0x351   : >> { %v7980_v42 = vadd.f32 %v3393_v34, %v3269_v1  ;;  %5831 = vmatmul.msk.bf16.gmra.mxu2 %vm343_vm1, %v6138_v40  ;;  %v6131_v34 = vld [vmem:[%s8478_s1 + $0x558] sm:$0xff] }
 0x353   : >> { %5887 = vmatmul.msk.bf16.gmra.mxu3 %vm343_vm1, %v6146_v46 }
 0x354   : >> { %v3085_v61 = vpop.f32.mrf.mxu2 }
 0x355   : >> { %v3119_v33 = vadd.f32 %v3085_v61, %v2968_v60  ;;  %v2936_v51 = vpop.f32.mrf.mxu1  ;;  %v3398_v41 = vpop.f32.mrf.mxu0 }
 0x356   : >> { %v3236_v49 = vpop.f32.mrf.mxu3  ;;  %v2969_v52 = vadd.f32 %v2936_v51, %v7826_v45  ;;  %v6147_v45 = vld [vmem:[%s8478_s1 + $0x5d8] sm:$0xff] }
 0x357   : >> { %v3270_v35 = vadd.f32 %v3236_v49, %v3119_v33 }
 0x359   : >> { %v7985_v59 = vadd.f32 %v3396_v48, %v3270_v35 }
 0x35c   : >> { %v3087_v2 = vpop.f32.mrf.mxu2 }
 0x35d   : >> { %v3120_v54 = vadd.f32 %v3087_v2, %v2969_v52  ;;  %v2939_v38 = vpop.f32.mrf.mxu1  ;;  %v3401_v39 = vpop.f32.mrf.mxu0 }
 0x35e   : >> { %v3238_v63 = vpop.f32.mrf.mxu3  ;;  %v2970_v40 = vadd.f32 %v2939_v38, %v7831_v44 }
 0x35f   : >> { %v3271_v46 = vadd.f32 %v3238_v63, %v3120_v54  ;;  %v6156_v63 = vld [vmem:[%s8478_s1 + $0x620] sm:$0xff] }
 0x360   : >> { %5776 = vmatmul.msk.bf16.gmra.mxu1 %vm343_vm1, %v6131_v34  ;;  %5944 = vmatmul.msk.bf16.gmra.mxu0 %vm343_vm1, %v6155_v37  ;;  %v6140_v54 = vld [vmem:[%s8478_s1 + $0x5a0] sm:$0xff] }
 0x361   : >> { %v8002_v48 = vadd.f32 %v3398_v41, %v3271_v46  ;;  %5832 = vmatmul.msk.bf16.gmra.mxu2 %vm343_vm1, %v6139_v32  ;;  %v6132_v41 = vld [vmem:[%s8478_s1 + $0x560] sm:$0xff] }
 0x363   : >> { %5888 = vmatmul.msk.bf16.gmra.mxu3 %vm343_vm1, %v6147_v45 }
 0x364   : >> { %v3090_v60 = vpop.f32.mrf.mxu2 }
 0x365   : >> { %v3121_v61 = vadd.f32 %v3090_v60, %v2970_v40  ;;  %v2941_v49 = vpop.f32.mrf.mxu1  ;;  %v3403_v33 = vpop.f32.mrf.mxu0 }
 0x366   : >> { %v3241_v1 = vpop.f32.mrf.mxu3  ;;  %v2971_v51 = vadd.f32 %v2941_v49, %v7848_v56  ;;  %v6148_v56 = vld [vmem:[%s8478_s1 + $0x5e0] sm:$0xff] }
 0x367   : >> { %v3272_v52 = vadd.f32 %v3241_v1, %v3121_v61 }
 0x369   : >> { %v8007_v44 = vadd.f32 %v3401_v39, %v3272_v52 }
 0x36c   : >> { %v3092_v35 = vpop.f32.mrf.mxu2 }
 0x36d   : >> { %v3122_v34 = vadd.f32 %v3092_v35, %v2971_v51  ;;  %v2944_v37 = vpop.f32.mrf.mxu1  ;;  %v3406_v38 = vpop.f32.mrf.mxu0 }
 0x36e   : >> { %v3243_v2 = vpop.f32.mrf.mxu3  ;;  %v2972_v32 = vadd.f32 %v2944_v37, %v7853_v62 }
 0x36f   : >> { %v3273_v45 = vadd.f32 %v3243_v2, %v3122_v34  ;;  %v6157_v2 = vld [vmem:[%s8478_s1 + $0x628] sm:$0xff] }
 0x370   : >> { %5777 = vmatmul.msk.bf16.gmra.mxu1 %vm343_vm1, %v6132_v41  ;;  %5945 = vmatmul.msk.bf16.gmra.mxu0 %vm343_vm1, %v6156_v63  ;;  %v6141_v34 = vld [vmem:[%s8478_s1 + $0x5a8] sm:$0xff] }
 0x371   : >> { %v8024_v39 = vadd.f32 %v3403_v33, %v3273_v45  ;;  %5833 = vmatmul.msk.bf16.gmra.mxu2 %vm343_vm1, %v6140_v54  ;;  %v6133_v33 = vld [vmem:[%s8478_s1 + $0x568] sm:$0xff] }
 0x373   : >> { %5889 = vmatmul.msk.bf16.gmra.mxu3 %vm343_vm1, %v6148_v56 }
 0x374   : >> { %v3095_v40 = vpop.f32.mrf.mxu2 }
 0x375   : >> { %v3123_v60 = vadd.f32 %v3095_v40, %v2972_v32  ;;  %v2946_v1 = vpop.f32.mrf.mxu1  ;;  %v3408_v61 = vpop.f32.mrf.mxu0 }
 0x376   : >> { %v3246_v46 = vpop.f32.mrf.mxu3  ;;  %v2973_v49 = vadd.f32 %v2946_v1, %v7870_v36  ;;  %v6149_v36 = vld [vmem:[%s8478_s1 + $0x5e8] sm:$0xff] }
 0x377   : >> { %v3274_v51 = vadd.f32 %v3246_v46, %v3123_v60 }
 0x379   : >> { %v8029_v62 = vadd.f32 %v3406_v38, %v3274_v51 }
 0x37c   : >> { %v3097_v52 = vpop.f32.mrf.mxu2 }
 0x37d   : >> { %v3124_v41 = vadd.f32 %v3097_v52, %v2973_v49  ;;  %v2949_v63 = vpop.f32.mrf.mxu1  ;;  %v3411_v37 = vpop.f32.mrf.mxu0 }
 0x37e   : >> { %v3248_v35 = vpop.f32.mrf.mxu3  ;;  %v2974_v54 = vadd.f32 %v2949_v63, %v7875_v47 }
 0x37f   : >> { %v3275_v56 = vadd.f32 %v3248_v35, %v3124_v41  ;;  %v6158_v35 = vld [vmem:[%s8478_s1 + $0x630] sm:$0xff] }
 0x380   : >> { %5778 = vmatmul.msk.bf16.gmra.mxu1 %vm343_vm1, %v6133_v33  ;;  %5946 = vmatmul.msk.bf16.gmra.mxu0 %vm343_vm1, %v6157_v2  ;;  %v6142_v41 = vld [vmem:[%s8478_s1 + $0x5b0] sm:$0xff] }
 0x381   : >> { %v8046_v38 = vadd.f32 %v3408_v61, %v3275_v56  ;;  %5834 = vmatmul.msk.bf16.gmra.mxu2 %vm343_vm1, %v6141_v34  ;;  %v6134_v61 = vld [vmem:[%s8478_s1 + $0x570] sm:$0xff] }
 0x383   : >> { %5890 = vmatmul.msk.bf16.gmra.mxu3 %vm343_vm1, %v6149_v36 }
 0x384   : >> { %v3100_v32 = vpop.f32.mrf.mxu2 }
 0x385   : >> { %v3125_v40 = vadd.f32 %v3100_v32, %v2974_v54  ;;  %v2951_v46 = vpop.f32.mrf.mxu1  ;;  %v3413_v60 = vpop.f32.mrf.mxu0 }
 0x386   : >> { %v3251_v45 = vpop.f32.mrf.mxu3  ;;  %v2975_v1 = vadd.f32 %v2951_v46, %v7892_v0  ;;  %v6150_v0 = vld [vmem:[%s8478_s1 + $0x5f0] sm:$0xff] }
 0x387   : >> { %v3276_v49 = vadd.f32 %v3251_v45, %v3125_v40 }
 0x389   : >> { %v8051_v47 = vadd.f32 %v3411_v37, %v3276_v49 }
 0x38c   : >> { %v3102_v51 = vpop.f32.mrf.mxu2 }
 0x38d   : >> { %v3126_v33 = vadd.f32 %v3102_v51, %v2975_v1  ;;  %v2954_v2 = vpop.f32.mrf.mxu1  ;;  %v3416_v63 = vpop.f32.mrf.mxu0 }
 0x38e   : >> { %v3253_v52 = vpop.f32.mrf.mxu3  ;;  %v2976_v34 = vadd.f32 %v2954_v2, %v7897_v57 }
 0x38f   : >> { %v3277_v36 = vadd.f32 %v3253_v52, %v3126_v33  ;;  %v6159_v52 = vld [vmem:[%s8478_s1 + $0x638] sm:$0xff] }
 0x390   : >> { %5779 = vmatmul.msk.bf16.gmra.mxu1 %vm343_vm1, %v6134_v61  ;;  %5947 = vmatmul.msk.bf16.gmra.mxu0 %vm343_vm1, %v6158_v35  ;;  %v6143_v33 = vld [vmem:[%s8478_s1 + $0x5b8] sm:$0xff] }
 0x391   : >> { %v8068_v37 = vadd.f32 %v3413_v60, %v3277_v36  ;;  %5835 = vmatmul.msk.bf16.gmra.mxu2 %vm343_vm1, %v6142_v41  ;;  %v6135_v60 = vld [vmem:[%s8478_s1 + $0x578] sm:$0xff] }
 0x393   : >> { %5891 = vmatmul.msk.bf16.gmra.mxu3 %vm343_vm1, %v6150_v0 }
 0x394   : >> { %v3105_v54 = vpop.f32.mrf.mxu2 }
 0x395   : >> { %v3127_v32 = vadd.f32 %v3105_v54, %v2976_v34  ;;  %v2956_v45 = vpop.f32.mrf.mxu1  ;;  %v3418_v40 = vpop.f32.mrf.mxu0 }
 0x396   : >> { %v3256_v56 = vpop.f32.mrf.mxu3  ;;  %v2977_v46 = vadd.f32 %v2956_v45, %v7914_v53  ;;  %v6151_v53 = vld [vmem:[%s8478_s1 + $0x5f8] sm:$0xff] }
 0x397   : >> { %v3278_v1 = vadd.f32 %v3256_v56, %v3127_v32 }
 0x399   : >> { %v8073_v57 = vadd.f32 %v3416_v63, %v3278_v1 }
 0x39c   : >> { %v3107_v49 = vpop.f32.mrf.mxu2 }
 0x39d   : >> { %v3128_v61 = vadd.f32 %v3107_v49, %v2977_v46  ;;  %v2959_v35 = vpop.f32.mrf.mxu1  ;;  %v3421_v2 = vpop.f32.mrf.mxu0 }
 0x39e   : >> { %v3258_v51 = vpop.f32.mrf.mxu3  ;;  %v2978_v41 = vadd.f32 %v2959_v35, %v7919_v50 }
 0x39f   : >> { %v3279_v0 = vadd.f32 %v3258_v51, %v3128_v61 }
 0x3a0   : >> { %5780 = vmatmul.msk.bf16.gmra.mxu1 %vm343_vm1, %v6135_v60  ;;  %5948 = vmatmul.msk.bf16.gmra.mxu0 %vm343_vm1, %v6159_v52 }
 0x3a1   : >> { %v8090_v63 = vadd.f32 %v3418_v40, %v3279_v0  ;;  %5836 = vmatmul.msk.bf16.gmra.mxu2 %vm343_vm1, %v6143_v33 }
 0x3a3   : >> { %5892 = vmatmul.msk.bf16.gmra.mxu3 %vm343_vm1, %v6151_v53 }
 0x3a4   : >> { %v3110_v34 = vpop.f32.mrf.mxu2 }
 0x3a5   : >> { %v3129_v54 = vadd.f32 %v3110_v34, %v2978_v41  ;;  %v2961_v56 = vpop.f32.mrf.mxu1  ;;  %v3423_v32 = vpop.f32.mrf.mxu0 }
 0x3a6   : >> { %v3261_v36 = vpop.f32.mrf.mxu3  ;;  %v2979_v45 = vadd.f32 %v2961_v56, %v7936_v58 }
 0x3a7   : >> { %v3280_v50 = vadd.f32 %v3261_v36, %v3129_v54 }
 0x3a9   : >> { %v8095_v46 = vadd.f32 %v3421_v2, %v3280_v50 }
 0x3ac   : >> { %v3112_v1 = vpop.f32.mrf.mxu2 }
 0x3ad   : >> { %v3130_v40 = vadd.f32 %v3112_v1, %v2979_v45  ;;  %v3537_v51 = vpop.f32.mrf.mxu1  ;;  %v3990_v60 = vpop.f32.mrf.mxu0 }
 0x3ae   : >> { %v3263_v49 = vpop.f32.mrf.mxu3  ;;  %v3577_v35 = vadd.f32 %v3537_v51, %v7941_v55 }
 0x3af   : >> { %v3281_v52 = vadd.f32 %v3263_v49, %v3130_v40 }
 0x3b1   : >> { %v8097_v61 = vadd.f32 %v3423_v32, %v3281_v52 }
 0x3b4   : >> { %v3688_v33 = vpop.f32.mrf.mxu2 }
 0x3b5   : >> { %v3728_v41 = vadd.f32 %v3688_v33, %v3577_v35  ;;  %v3539_v0 = vpop.f32.mrf.mxu1  ;;  %v3992_v58 = vpop.f32.mrf.mxu0 }
 0x3b6   : >> { %v3839_v53 = vpop.f32.mrf.mxu3  ;;  %v3578_v54 = vadd.f32 %v3539_v0, %v7958_v43 }
 0x3b7   : >> { %v3879_v34 = vadd.f32 %v3839_v53, %v3728_v41 }
 0x3b9   : >> { %v4030_v2 = vadd.f32 %v3990_v60, %v3879_v34 }
 0x3bb   : >> { %v4046_v36 = vpack.c.bf16 %v4030_v2, %v4030_v2  ;;  %v4082_v56 = vsel %vm4081_vm2, %v4030_v2, 0.0  ;;  %v4146_v40 = vmul.f32 %v4030_v2, %v4030_v2 }
 0x3bc   : >> { %v3690_v32 = vpop.f32.mrf.mxu2  ;;  %4083 = vadd.xlane.f32.xlu2 %v4082_v56 }
 0x3bd   : >> { %4065 = vst.msk [vmem:[%s8102_s17] sm:$0xf] %vm4064_vm3, %v4046_v36  ;;  %v3729_v45 = vadd.f32 %v3690_v32, %v3578_v54  ;;  %v3542_v50 = vpop.f32.mrf.mxu1  ;;  %v3995_v1 = vpop.f32.mrf.mxu0  ;;  %v4162_v43 = vsel %vm4081_vm2, %v4146_v40, 0.0 }
 0x3be   : >> { %v3841_v55 = vpop.f32.mrf.mxu3  ;;  %v3579_v52 = vadd.f32 %v3542_v50, %v7963_v16 }
 0x3bf   : >> { %v3880_v49 = vadd.f32 %v3841_v55, %v3729_v45 }
 0x3c1   : >> { %v4031_v51 = vadd.f32 %v3992_v58, %v3880_v49 }
 0x3c3   : >> { %v4047_v60 = vpack.c.bf16 %v4031_v51, %v4031_v51  ;;  %v4085_v35 = vsel %vm4081_vm2, %v4031_v51, 0.0  ;;  %v4147_v2 = vmul.f32 %v4031_v51, %v4031_v51 }
 0x3c4   : >> { %v3693_v33 = vpop.f32.mrf.mxu2  ;;  %4086 = vadd.xlane.f32.xlu0 %v4085_v35  ;;  %4163 = vadd.xlane.f32.xlu2 %v4162_v43 }
 0x3c5   : >> { %4066 = vst.msk [vmem:[%s8102_s17 + $0x20] sm:$0xf] %vm4064_vm3, %v4047_v60  ;;  %v3730_v41 = vadd.f32 %v3693_v33, %v3579_v52  ;;  %v3544_v0 = vpop.f32.mrf.mxu1  ;;  %v3997_v34 = vpop.f32.mrf.mxu0  ;;  %v4165_v32 = vsel %vm4081_vm2, %v4147_v2, 0.0 }
 0x3c6   : >> { %v3844_v53 = vpop.f32.mrf.mxu3  ;;  %v3580_v16 = vadd.f32 %v3544_v0, %v7980_v42 }
 0x3c7   : >> { %v3881_v36 = vadd.f32 %v3844_v53, %v3730_v41 }
 0x3c9   : >> { %v4032_v58 = vadd.f32 %v3995_v1, %v3881_v36 }
 0x3cb   : >> { %v4048_v54 = vpack.c.bf16 %v4032_v58, %v4032_v58  ;;  %v4088_v56 = vsel %vm4081_vm2, %v4032_v58, 0.0  ;;  %v4148_v51 = vmul.f32 %v4032_v58, %v4032_v58 }
 0x3cc   : >> { %v3695_v55 = vpop.f32.mrf.mxu2  ;;  %4089 = vadd.xlane.f32.xlu1 %v4088_v56  ;;  %4166 = vadd.xlane.f32.xlu0 %v4165_v32 }
 0x3cd   : >> { %4067 = vst.msk [vmem:[%s8102_s17 + $0x40] sm:$0xf] %vm4064_vm3, %v4048_v54  ;;  %v3731_v50 = vadd.f32 %v3695_v55, %v3580_v16  ;;  %v3547_v49 = vpop.f32.mrf.mxu1  ;;  %v4000_v40 = vpop.f32.mrf.mxu0  ;;  %v4168_v35 = vsel %vm4081_vm2, %v4148_v51, 0.0 }
 0x3ce   : >> { %v3846_v45 = vpop.f32.mrf.mxu3  ;;  %v3581_v42 = vadd.f32 %v3547_v49, %v7985_v59 }
 0x3cf   : >> { %v3882_v60 = vadd.f32 %v3846_v45, %v3731_v50 }
 0x3d1   : >> { %v4033_v1 = vadd.f32 %v3997_v34, %v3882_v60 }
 0x3d3   : >> { %v4049_v52 = vpack.c.bf16 %v4033_v1, %v4033_v1  ;;  %v4091_v43 = vsel %vm4081_vm2, %v4033_v1, 0.0  ;;  %v4149_v58 = vmul.f32 %v4033_v1, %v4033_v1 }
 0x3d4   : >> { %v3698_v33 = vpop.f32.mrf.mxu2  ;;  %4169 = vadd.xlane.f32.xlu1 %v4168_v35  ;;  %4092 = vadd.xlane.f32.xlu2 %v4091_v43 }
 0x3d5   : >> { %4068 = vst.msk [vmem:[%s8102_s17 + $0x60] sm:$0xf] %vm4064_vm3, %v4049_v52  ;;  %v3732_v41 = vadd.f32 %v3698_v33, %v3581_v42  ;;  %v3549_v0 = vpop.f32.mrf.mxu1  ;;  %v4002_v36 = vpop.f32.mrf.mxu0  ;;  %v4171_v16 = vsel %vm4081_vm2, %v4149_v58, 0.0 }
 0x3d6   : >> { %v3849_v53 = vpop.f32.mrf.mxu3  ;;  %v3582_v59 = vadd.f32 %v3549_v0, %v8002_v48 }
 0x3d7   : >> { %v3883_v2 = vadd.f32 %v3849_v53, %v3732_v41 }
 0x3d9   : >> { %v4034_v34 = vadd.f32 %v4000_v40, %v3883_v2 }
 0x3db   : >> { %v4050_v54 = vpack.c.bf16 %v4034_v34, %v4034_v34  ;;  %v4150_v56 = vmul.f32 %v4034_v34, %v4034_v34  ;;  %v4094_v52 = vsel %vm4081_vm2, %v4034_v34, 0.0 }
 0x3dc   : >> { %v3700_v32 = vpop.f32.mrf.mxu2  ;;  %4172 = vadd.xlane.f32.xlu2 %v4171_v16 }
 0x3dd   : >> { %4069 = vst.msk [vmem:[%s8102_s17 + $0x80] sm:$0xf] %vm4064_vm3, %v4050_v54  ;;  %v3733_v45 = vadd.f32 %v3700_v32, %v3582_v59  ;;  %v3552_v50 = vpop.f32.mrf.mxu1  ;;  %v4174_v49 = vsel %vm4081_vm2, %v4150_v56, 0.0  ;;  %v4005_v60 = vpop.f32.mrf.mxu0 }
 0x3de   : >> { %v3851_v55 = vpop.f32.mrf.mxu3  ;;  %4175 = vadd.xlane.f32.xlu0 %v4174_v49  ;;  %v3583_v48 = vadd.f32 %v3552_v50, %v8007_v44 }
 0x3df   : >> { %v3884_v51 = vadd.f32 %v3851_v55, %v3733_v45 }
 0x3e1   : >> { %v4035_v40 = vadd.f32 %v4002_v36, %v3884_v51 }
 0x3e3   : >> { %v4051_v1 = vpack.c.bf16 %v4035_v40, %v4035_v40  ;;  %v4151_v42 = vmul.f32 %v4035_v40, %v4035_v40  ;;  %v4097_v0 = vsel %vm4081_vm2, %v4035_v40, 0.0 }
 0x3e4   : >> { %v3703_v35 = vpop.f32.mrf.mxu2  ;;  %4095 = vadd.xlane.f32.xlu2 %v4094_v52 }
 0x3e5   : >> { %4070 = vst.msk [vmem:[%s8102_s17 + $0xa0] sm:$0xf] %vm4064_vm3, %v4051_v1  ;;  %v3734_v33 = vadd.f32 %v3703_v35, %v3583_v48  ;;  %v3554_v53 = vpop.f32.mrf.mxu1  ;;  %v4177_v41 = vsel %vm4081_vm2, %v4151_v42, 0.0  ;;  %v4007_v2 = vpop.f32.mrf.mxu0 }
 0x3e6   : >> { %v3854_v43 = vpop.f32.mrf.mxu3  ;;  %4178 = vadd.xlane.f32.xlu1 %v4177_v41  ;;  %4098 = vadd.xlane.f32.xlu0 %v4097_v0  ;;  %v3584_v34 = vadd.f32 %v3554_v53, %v8024_v39 }
 0x3e7   : >> { %v3885_v36 = vadd.f32 %v3854_v43, %v3734_v33 }
 0x3e9   : >> { %v4036_v44 = vadd.f32 %v4005_v60, %v3885_v36 }
 0x3eb   : >> { %v4052_v58 = vpack.c.bf16 %v4036_v44, %v4036_v44  ;;  %v4152_v54 = vmul.f32 %v4036_v44, %v4036_v44  ;;  %v4100_v55 = vsel %vm4081_vm2, %v4036_v44, 0.0 }
 0x3ec   : >> { %v3705_v59 = vpop.f32.mrf.mxu2 }
 0x3ed   : >> { %4071 = vst.msk [vmem:[%s8102_s17 + $0xc0] sm:$0xf] %vm4064_vm3, %v4052_v58  ;;  %v3735_v56 = vadd.f32 %v3705_v59, %v3584_v34  ;;  %v3557_v32 = vpop.f32.mrf.mxu1  ;;  %v4180_v45 = vsel %vm4081_vm2, %v4152_v54, 0.0  ;;  %v4010_v50 = vpop.f32.mrf.mxu0 }
 0x3ee   : >> { %v3856_v16 = vpop.f32.mrf.mxu3  ;;  %4101 = vadd.xlane.f32.xlu1 %v4100_v55  ;;  %4181 = vadd.xlane.f32.xlu2 %v4180_v45  ;;  %v3585_v39 = vadd.f32 %v3557_v32, %v8029_v62 }
 0x3ef   : >> { %v3886_v49 = vadd.f32 %v3856_v16, %v3735_v56 }
 0x3f1   : >> { %v4037_v60 = vadd.f32 %v4007_v2, %v3886_v49 }
 0x3f3   : >> { %v4053_v51 = vpack.c.bf16 %v4037_v60, %v4037_v60  ;;  %v4153_v40 = vmul.f32 %v4037_v60, %v4037_v60  ;;  %v4103_v43 = vsel %vm4081_vm2, %v4037_v60, 0.0 }
 0x3f4   : >> { %v3708_v1 = vpop.f32.mrf.mxu2 }
 0x3f5   : >> { %4072 = vst.msk [vmem:[%s8102_s17 + $0xe0] sm:$0xf] %vm4064_vm3, %v4053_v51  ;;  %v3736_v52 = vadd.f32 %v3708_v1, %v3585_v39  ;;  %v3559_v42 = vpop.f32.mrf.mxu1  ;;  %v4183_v35 = vsel %vm4081_vm2, %v4153_v40, 0.0  ;;  %v4012_v33 = vpop.f32.mrf.mxu0 }
 0x3f6   : >> { %v3859_v48 = vpop.f32.mrf.mxu3  ;;  %4184 = vadd.xlane.f32.xlu0 %v4183_v35  ;;  %4104 = vadd.xlane.f32.xlu2 %v4103_v43  ;;  %v3586_v62 = vadd.f32 %v3559_v42, %v8046_v38 }
 0x3f7   : >> { %v3887_v53 = vadd.f32 %v3859_v48, %v3736_v52 }
 0x3f9   : >> { %v4038_v41 = vadd.f32 %v4010_v50, %v3887_v53 }
 0x3fb   : >> { %v4054_v0 = vpack.c.bf16 %v4038_v41, %v4038_v41  ;;  %v4154_v2 = vmul.f32 %v4038_v41, %v4038_v41  ;;  %v4106_v59 = vsel %vm4081_vm2, %v4038_v41, 0.0 }
 0x3fc   : >> { %v3710_v36 = vpop.f32.mrf.mxu2 }
 0x3fd   : >> { %4073 = vst.msk [vmem:[%s8102_s17 + $0x100] sm:$0xf] %vm4064_vm3, %v4054_v0  ;;  %v3737_v58 = vadd.f32 %v3710_v36, %v3586_v62  ;;  %v3562_v34 = vpop.f32.mrf.mxu1  ;;  %v4186_v54 = vsel %vm4081_vm2, %v4154_v2, 0.0  ;;  %v4015_v16 = vpop.f32.mrf.mxu0 }
 0x3fe   : >> { %v3861_v44 = vpop.f32.mrf.mxu3  ;;  %4187 = vadd.xlane.f32.xlu1 %v4186_v54  ;;  %4107 = vadd.xlane.f32.xlu0 %v4106_v59  ;;  %v3587_v38 = vadd.f32 %v3562_v34, %v8051_v47 }
 0x3ff   : >> { %v3888_v56 = vadd.f32 %v3861_v44, %v3737_v58 }
 0x401   : >> { %v4039_v32 = vadd.f32 %v4012_v33, %v3888_v56 }
 0x403   : >> { %v4055_v55 = vpack.c.bf16 %v4039_v32, %v4039_v32  ;;  %v4155_v45 = vmul.f32 %v4039_v32, %v4039_v32  ;;  %v4109_v39 = vsel %vm4081_vm2, %v4039_v32, 0.0 }
 0x404   : >> { %v3713_v50 = vpop.f32.mrf.mxu2 }
 0x405   : >> { %4074 = vst.msk [vmem:[%s8102_s17 + $0x120] sm:$0xf] %vm4064_vm3, %v4055_v55  ;;  %v3738_v60 = vadd.f32 %v3713_v50, %v3587_v38  ;;  %v3564_v51 = vpop.f32.mrf.mxu1  ;;  %v4189_v40 = vsel %vm4081_vm2, %v4155_v45, 0.0  ;;  %v4017_v48 = vpop.f32.mrf.mxu0 }
 0x406   : >> { %v3864_v49 = vpop.f32.mrf.mxu3  ;;  %4110 = vadd.xlane.f32.xlu1 %v4109_v39  ;;  %4190 = vadd.xlane.f32.xlu2 %v4189_v40  ;;  %v3588_v47 = vadd.f32 %v3564_v51, %v8068_v37 }
 0x407   : >> { %v3889_v1 = vadd.f32 %v3864_v49, %v3738_v60 }
 0x409   : >> { %v4040_v52 = vadd.f32 %v4015_v16, %v3889_v1 }
 0x40b   : >> { %v4056_v42 = vpack.c.bf16 %v4040_v52, %v4040_v52  ;;  %v4156_v35 = vmul.f32 %v4040_v52, %v4040_v52  ;;  %v4112_v62 = vsel %vm4081_vm2, %v4040_v52, 0.0 }
 0x40c   : >> { %v3715_v43 = vpop.f32.mrf.mxu2 }
 0x40d   : >> { %4075 = vst.msk [vmem:[%s8102_s17 + $0x140] sm:$0xf] %vm4064_vm3, %v4056_v42  ;;  %v3739_v53 = vadd.f32 %v3715_v43, %v3588_v47  ;;  %v3567_v41 = vpop.f32.mrf.mxu1  ;;  %v4192_v0 = vsel %vm4081_vm2, %v4156_v35, 0.0  ;;  %v4020_v44 = vpop.f32.mrf.mxu0 }
 0x40e   : >> { %v3866_v33 = vpop.f32.mrf.mxu3  ;;  %4193 = vadd.xlane.f32.xlu0 %v4192_v0  ;;  %4113 = vadd.xlane.f32.xlu2 %v4112_v62  ;;  %v3589_v37 = vadd.f32 %v3567_v41, %v8073_v57 }
 0x40f   : >> { %v3890_v2 = vadd.f32 %v3866_v33, %v3739_v53 }
 0x411   : >> { %v4041_v36 = vadd.f32 %v4017_v48, %v3890_v2 }
 0x413   : >> { %v4057_v58 = vpack.c.bf16 %v4041_v36, %v4041_v36  ;;  %v4157_v34 = vmul.f32 %v4041_v36, %v4041_v36  ;;  %v4115_v55 = vsel %vm4081_vm2, %v4041_v36, 0.0 }
 0x414   : >> { %v3718_v54 = vpop.f32.mrf.mxu2 }
 0x415   : >> { %4076 = vst.msk [vmem:[%s8102_s17 + $0x160] sm:$0xf] %vm4064_vm3, %v4057_v58  ;;  %v3740_v16 = vadd.f32 %v3718_v54, %v3589_v37  ;;  %v3569_v56 = vpop.f32.mrf.mxu1  ;;  %v4195_v32 = vsel %vm4081_vm2, %v4157_v34, 0.0  ;;  %v4022_v57 = vpop.f32.mrf.mxu0 }
 0x416   : >> { %v3869_v59 = vpop.f32.mrf.mxu3  ;;  %4196 = vadd.xlane.f32.xlu1 %v4195_v32  ;;  %4116 = vadd.xlane.f32.xlu0 %v4115_v55  ;;  %v3590_v49 = vadd.f32 %v3569_v56, %v8090_v63 }
 0x417   : >> { %v3891_v38 = vadd.f32 %v3869_v59, %v3740_v16 }
 0x419   : >> { %v4042_v45 = vadd.f32 %v4020_v44, %v3891_v38 }
 0x41b   : >> { %v4058_v50 = vpack.c.bf16 %v4042_v45, %v4042_v45  ;;  %v4158_v60 = vmul.f32 %v4042_v45, %v4042_v45  ;;  %v4118_v1 = vsel %vm4081_vm2, %v4042_v45, 0.0 }
 0x41c   : >> { %v3720_v51 = vpop.f32.mrf.mxu2 }
 0x41d   : >> { %4077 = vst.msk [vmem:[%s8102_s17 + $0x180] sm:$0xf] %vm4064_vm3, %v4058_v50  ;;  %v3741_v40 = vadd.f32 %v3720_v51, %v3590_v49  ;;  %v4198_v48 = vsel %vm4081_vm2, %v4158_v60, 0.0  ;;  %v3572_v52 = vpop.f32.mrf.mxu1  ;;  %v4025_v0 = vpop.f32.mrf.mxu0 }
 0x41e   : >> { %v3871_v39 = vpop.f32.mrf.mxu3  ;;  %4119 = vadd.xlane.f32.xlu1 %v4118_v1  ;;  %4199 = vadd.xlane.f32.xlu2 %v4198_v48  ;;  %v3591_v63 = vadd.f32 %v3572_v52, %v8095_v46 }
 0x41f   : >> { %v3892_v42 = vadd.f32 %v3871_v39, %v3741_v40 }
 0x421   : >> { %v4043_v47 = vadd.f32 %v4022_v57, %v3892_v42 }
 0x423   : >> { %v4059_v35 = vpack.c.bf16 %v4043_v47, %v4043_v47  ;;  %v4121_v41 = vsel %vm4081_vm2, %v4043_v47, 0.0  ;;  %v4159_v56 = vmul.f32 %v4043_v47, %v4043_v47 }
 0x424   : >> { %v3723_v43 = vpop.f32.mrf.mxu2 }
 0x425   : >> { %4078 = vst.msk [vmem:[%s8102_s17 + $0x1a0] sm:$0xf] %vm4064_vm3, %v4059_v35  ;;  %v3742_v53 = vadd.f32 %v3723_v43, %v3591_v63  ;;  %v3574_v2 = vpop.f32.mrf.mxu1  ;;  %v4027_v32 = vpop.f32.mrf.mxu0  ;;  %v4201_v50 = vsel %vm4081_vm2, %v4159_v56, 0.0 }
 0x426   : >> { %v3874_v33 = vpop.f32.mrf.mxu3  ;;  %4122 = vadd.xlane.f32.xlu2 %v4121_v41  ;;  %v3592_v58 = vadd.f32 %v3574_v2, %v8097_v61  ;;  %v8514_v2 = vld [vmem:[#allocation5_spill] sm:$0xff] }
 0x427   : >> { %v3893_v62 = vadd.f32 %v3874_v33, %v3742_v53 }
 0x429   : >> { %v4044_v36 = vadd.f32 %v4025_v0, %v3893_v62 }
 0x42b   : >> { %v4060_v44 = vpack.c.bf16 %v4044_v36, %v4044_v36  ;;  %v4124_v37 = vsel %vm4081_vm2, %v4044_v36, 0.0  ;;  %v4160_v39 = vmul.f32 %v4044_v36, %v4044_v36 }
 0x42c   : >> { %v3725_v34 = vpop.f32.mrf.mxu2  ;;  %4125 = vadd.xlane.f32.xlu0 %v4124_v37 }
 0x42d   : >> { %4079 = vst.msk [vmem:[%s8102_s17 + $0x1c0] sm:$0xf] %vm4064_vm3, %v4060_v44  ;;  %v3743_v46 = vadd.f32 %v3725_v34, %v3592_v58 }
 0x42e   : >> { %v3876_v54 = vpop.f32.mrf.mxu3 }
 0x42f   : >> { %v3894_v59 = vadd.f32 %v3876_v54, %v3743_v46  ;;  %v4084_v16 = vpop.xlane.xlu2 %4083 }
 0x430   : >> { %v8178_v31 = vadd.f32 %v6738_v31, %v4084_v16  }
 0x431   : >> { %v4045_v38 = vadd.f32 %v4027_v32, %v3894_v59 }
 0x432   : >> { %v8486_v55 = vmov %v8178_v31  ;;  %v4204_v31 = vsel %vm4081_vm2, %v4160_v39, 0.0 }
 0x433   : >> { %v4061_v45 = vpack.c.bf16 %v4045_v38, %v4045_v38  ;;  %v4127_v61 = vsel %vm4081_vm2, %v4045_v38, 0.0  ;;  %v4161_v49 = vmul.f32 %v4045_v38, %v4045_v38 }
 0x434   : >> { %4128 = vadd.xlane.f32.xlu1 %v4127_v61  ;;  %4202 = vadd.xlane.f32.xlu0 %v4201_v50 }
 0x435   : >> { %4080 = vst.msk [vmem:[%s8102_s17 + $0x1e0] sm:$0xf] %vm4064_vm3, %v4061_v45  ;;  %v4207_v57 = vsel %vm4081_vm2, %v4161_v49, 0.0 }
 0x436   : >> { %4208 = vadd.xlane.f32.xlu2 %v4207_v57 }
 0x437   : >> { %v4087_v60 = vpop.xlane.xlu0 %4086  ;;  %v4164_v51 = vpop.xlane.xlu2 %4163 }
 0x438   : >> { %v8186_v30 = vadd.f32 %v6734_v30, %v4087_v60   ;;  %v8189_v15 = vadd.f32 %v6674_v15, %v4164_v51  }
 0x43a   : >> { %v8487_v40 = vmov %v8186_v30  ;;  %v8488_v48 = vmov %v8189_v15 }
 0x43c   : >> { %4205 = vadd.xlane.f32.xlu1 %v4204_v31  ;;  %v8519_v31 = vld [vmem:[#allocation2_spill] sm:$0xff] }
 0x43f   : >> { %v4090_v1 = vpop.xlane.xlu1 %4089  ;;  %v4167_v52 = vpop.xlane.xlu0 %4166 }
 0x440   : >> { %v8193_v29 = vadd.f32 %v6730_v29, %v4090_v1   ;;  %v8196_v14 = vadd.f32 %v6670_v14, %v4167_v52   ;;  %v8521_v1 = vld [vmem:[#allocation3_spill] sm:$0xff] }
 0x442   : >> { %v8489_v42 = vmov %v8193_v29  ;;  %v8490_v47 = vmov %v8196_v14 }
 0x447   : >> { %v4170_v35 = vpop.xlane.xlu1 %4169  ;;  %v4093_v63 = vpop.xlane.xlu2 %4092 }
 0x448   : >> { %v8199_v13 = vadd.f32 %v6666_v13, %v4170_v35   ;;  %v8202_v28 = vadd.f32 %v6726_v28, %v4093_v63  }
 0x44a   : >> { %v8491_v43 = vmov %v8199_v13  ;;  %v8492_v33 = vmov %v8202_v28 }
 0x44f   : >> { %v4173_v15 = vpop.xlane.xlu2 %4172 }
 0x450   : >> { %v8205_v12 = vadd.f32 %v6662_v12, %v4173_v15   ;;  %v8539_v15 = vmov %v8488_v48 }
 0x451   : >> { %v4176_v30 = vpop.xlane.xlu0 %4175 }
 0x452   : >> { %v8493_v53 = vmov %v8205_v12  ;;  %v8208_v11 = vadd.f32 %v6658_v11, %v4176_v30   ;;  %v8555_v30 = vmov %v8487_v40 }
 0x454   : >> { %v8494_v41 = vmov %v8208_v11 }
 0x457   : >> { %v4096_v29 = vpop.xlane.xlu2 %4095 }
 0x458   : >> { %v8211_v27 = vadd.f32 %v6722_v27, %v4096_v29   ;;  %v8554_v29 = vmov %v8489_v42 }
 0x459   : >> { %v4179_v14 = vpop.xlane.xlu1 %4178  ;;  %v4099_v0 = vpop.xlane.xlu0 %4098 }
 0x45a   : >> { %v8495_v62 = vmov %v8211_v27  ;;  %v8214_v10 = vadd.f32 %v6654_v10, %v4179_v14   ;;  %v8217_v26 = vadd.f32 %v6718_v26, %v4099_v0   ;;  %v8538_v14 = vmov %v8490_v47 }
 0x45c   : >> { %v8496_v36 = vmov %v8214_v10  ;;  %v8497_v44 = vmov %v8217_v26 }
 0x461   : >> { %v4102_v13 = vpop.xlane.xlu1 %4101  ;;  %v4182_v28 = vpop.xlane.xlu2 %4181 }
 0x462   : >> { %v8220_v25 = vadd.f32 %v6714_v25, %v4102_v13   ;;  %v8223_v9 = vadd.f32 %v6650_v9, %v4182_v28   ;;  %v8537_v13 = vmov %v8491_v43  ;;  %v8553_v28 = vmov %v8492_v33 }
 0x464   : >> { %v8498_v58 = vmov %v8220_v25  ;;  %v8499_v37 = vmov %v8223_v9 }
 0x469   : >> { %v4185_v11 = vpop.xlane.xlu0 %4184  ;;  %v4105_v12 = vpop.xlane.xlu2 %4104 }
 0x46a   : >> { %v8226_v8 = vadd.f32 %v6646_v8, %v4185_v11   ;;  %v8229_v24 = vadd.f32 %v6710_v24, %v4105_v12   ;;  %v8535_v11 = vmov %v8494_v41  ;;  %v8536_v12 = vmov %v8493_v53 }
 0x46c   : >> { %v8500_v34 = vmov %v8226_v8  ;;  %v8501_v46 = vmov %v8229_v24 }
 0x471   : >> { %v4188_v10 = vpop.xlane.xlu1 %4187  ;;  %v4108_v27 = vpop.xlane.xlu0 %4107 }
 0x472   : >> { %v8232_v7 = vadd.f32 %v6642_v7, %v4188_v10   ;;  %v8235_v23 = vadd.f32 %v6706_v23, %v4108_v27   ;;  %v8534_v10 = vmov %v8496_v36  ;;  %v8552_v27 = vmov %v8495_v62 }
 0x474   : >> { %v8502_v54 = vmov %v8232_v7  ;;  %v8503_v59 = vmov %v8235_v23 }
 0x479   : >> { %v4111_v25 = vpop.xlane.xlu1 %4110  ;;  %v4191_v26 = vpop.xlane.xlu2 %4190 }
 0x47a   : >> { %v8238_v22 = vadd.f32 %v6702_v22, %v4111_v25   ;;  %v8241_v6 = vadd.f32 %v6638_v6, %v4191_v26   ;;  %v8550_v25 = vmov %v8498_v58  ;;  %v8551_v26 = vmov %v8497_v44 }
 0x47c   : >> { %v8504_v56 = vmov %v8238_v22  ;;  %v8505_v32 = vmov %v8241_v6 }
 0x481   : >> { %v4194_v8 = vpop.xlane.xlu0 %4193  ;;  %v4114_v9 = vpop.xlane.xlu2 %4113 }
 0x482   : >> { %v8244_v5 = vadd.f32 %v6634_v5, %v4194_v8   ;;  %v8247_v21 = vadd.f32 %v6698_v21, %v4114_v9   ;;  %v8532_v8 = vmov %v8500_v34  ;;  %v8533_v9 = vmov %v8499_v37 }
 0x484   : >> { %v8506_v38 = vmov %v8244_v5  ;;  %v8507_v45 = vmov %v8247_v21 }
 0x489   : >> { %v4197_v7 = vpop.xlane.xlu1 %4196  ;;  %v4117_v24 = vpop.xlane.xlu0 %4116 }
 0x48a   : >> { %v8250_v4 = vadd.f32 %v6630_v4, %v4197_v7   ;;  %v8253_v20 = vadd.f32 %v6694_v20, %v4117_v24   ;;  %v8531_v7 = vmov %v8502_v54  ;;  %v8549_v24 = vmov %v8501_v46 }
 0x48c   : >> { %v8508_v61 = vmov %v8250_v4  ;;  %v8509_v50 = vmov %v8253_v20  ;;  %v8517_v20 = vld [vmem:[#allocation4_spill] sm:$0xff] }
 0x491   : >> { %v4120_v22 = vpop.xlane.xlu1 %4119  ;;  %v4200_v23 = vpop.xlane.xlu2 %4199 }
 0x492   : >> { %v8256_v19 = vadd.f32 %v6690_v19, %v4120_v22   ;;  %v8259_v3 = vadd.f32 %v6626_v3, %v4200_v23   ;;  %v8547_v22 = vmov %v8504_v56  ;;  %v8548_v23 = vmov %v8503_v59 }
 0x494   : >> { %v8510_v49 = vmov %v8256_v19  ;;  %v8511_v57 = vmov %v8259_v3 }
 0x495   : > { %v4239_v15 = vsel (%p8282_p5), %vm4226_vm4, %v8510_v49, %v8511_v57 }
 0x496   : > { %4256 = vst.msk [vmem:[%s6799_s27 + $0x60] sm:$0xff] (%p8282_p5), %vm4243_vm5, %v4239_v15 }
 0x499   : >> { %v4123_v5 = vpop.xlane.xlu2 %4122 }
 0x49a   : >> { %v8262_v18 = vadd.f32 %v6686_v18, %v4123_v5   ;;  %v8529_v5 = vmov %v8506_v38 }
 0x49c   : >> { %v8512_v60 = vmov %v8262_v18 }
 0x49d   : >> { %v8543_v18 = vmov %v8512_v60 }
 0x49e   : > { %v4230_v18 = vsel (%p8282_p5), %vm4226_vm4, %v8492_v33, %v8493_v53  ;;  %v4238_v33 = vsel (%p8282_p5), %vm4226_vm4, %v8509_v50, %v8508_v61 }
 0x49f   : >> { %v4126_v6 = vpop.xlane.xlu0 %4125  ;;  %4247 = vst.msk [vmem:[%s6799_s27 + $0x18] sm:$0xff] (%p8282_p5), %vm4243_vm5, %v4230_v18 }
 0x4a0   : >> { %v8265_v17 = vadd.f32 %v6682_v17, %v4126_v6   ;;  %v8530_v6 = vmov %v8505_v32  ;;  %4255 = vst.msk [vmem:[%s6799_s27 + $0x58] sm:$0xff] (%p8282_p5), %vm4243_vm5, %v4238_v33 }
 0x4a2   : >> { %v8513_v51 = vmov %v8265_v17 }
 0x4a3   : >> { %v8542_v17 = vmov %v8513_v51 }
 0x4a4   : > { %v4229_v17 = vsel (%p8282_p5), %vm4226_vm4, %v8489_v42, %v8491_v43  ;;  %v4235_v42 = vsel (%p8282_p5), %vm4226_vm4, %v8503_v59, %v8502_v54  ;;  %v4237_v43 = vsel (%p8282_p5), %vm4226_vm4, %v8507_v45, %v8506_v38 }
 0x4a5   : > { %4246 = vst.msk [vmem:[%s6799_s27 + $0x10] sm:$0xff] (%p8282_p5), %vm4243_vm5, %v4229_v17 }
 0x4a6   : > { %4252 = vst.msk [vmem:[%s6799_s27 + $0x40] sm:$0xff] (%p8282_p5), %vm4243_vm5, %v4235_v42 }
 0x4a7   : >> { %v4129_v4 = vpop.xlane.xlu1 %4128  ;;  %v4203_v21 = vpop.xlane.xlu0 %4202  ;;  %4254 = vst.msk [vmem:[%s6799_s27 + $0x50] sm:$0xff] (%p8282_p5), %vm4243_vm5, %v4237_v43 }
 0x4a8   : >> { %v8268_v16 = vadd.f32 %v8514_v2, %v4129_v4   ;;  %v8271_v2 = vadd.f32 %v8517_v20, %v4203_v21   ;;  %v8528_v4 = vmov %v8508_v61  ;;  %v8545_v20 = vmov %v8509_v50 }
 0x4a9   : >> { %v4209_v19 = vpop.xlane.xlu2 %4208  ;;  %v8546_v21 = vmov %v8507_v45 }
 0x4aa   : >> { %8515 = vst [vmem:[#allocation6_spill] sm:$0xff] %v8268_v16  ;;  %v8518_v52 = vmov %v8271_v2  ;;  %v8274_v0 = vadd.f32 %v8519_v31, %v4209_v19   ;;  %v8540_v39 = vmov %v8268_v16  ;;  %v8544_v19 = vmov %v8510_v49 }
 0x4ab   : >> { %v8526_v2 = vmov %v8518_v52  ;;  %v8541_v16 = vmov %v8540_v39  ;;  %v8556_v31 = vmov %v8486_v55  ;;  %v4228_v39 = vsel (%p8282_p5), %vm4226_vm4, %v8487_v40, %v8490_v47 }
 0x4ac   : >> { %v8520_v35 = vmov %v8274_v0  ;;  %v4227_v31 = vsel (%p8282_p5), %vm4226_vm4, %v8486_v55, %v8488_v48  ;;  %4245 = vst.msk [vmem:[%s6799_s27 + $0x8] sm:$0xff] (%p8282_p5), %vm4243_vm5, %v4228_v39  ;;  %v4231_v16 = vsel (%p8282_p5), %vm4226_vm4, %v8495_v62, %v8494_v41  ;;  %v4232_v55 = vsel (%p8282_p5), %vm4226_vm4, %v8497_v44, %v8496_v36 }
 0x4ad   : >> { %v8524_v0 = vmov %v8520_v35  ;;  %4244 = vst.msk [vmem:[%s6799_s27] sm:$0xff] (%p8282_p5), %vm4243_vm5, %v4227_v31  ;;  %v4233_v40 = vsel (%p8282_p5), %vm4226_vm4, %v8498_v58, %v8499_v37  ;;  %v4234_v48 = vsel (%p8282_p5), %vm4226_vm4, %v8501_v46, %v8500_v34  ;;  %v4236_v47 = vsel (%p8282_p5), %vm4226_vm4, %v8504_v56, %v8505_v32 }
 0x4ae   : > { %4248 = vst.msk [vmem:[%s6799_s27 + $0x20] sm:$0xff] (%p8282_p5), %vm4243_vm5, %v4231_v16  ;;  %v4240_v53 = vsel (%p8282_p5), %vm4226_vm4, %v8512_v60, %v8518_v52 }
 0x4af   : >> { %v4206_v3 = vpop.xlane.xlu1 %4205  ;;  %223 = sbr.rel (!%p8282_p5) target bundleno = 20 (0x14), region = 107  ;;  %4249 = vst.msk [vmem:[%s6799_s27 + $0x28] sm:$0xff] (%p8282_p5), %vm4243_vm5, %v4232_v55 }
 0x4b0   : >> { %v8277_v1 = vadd.f32 %v8521_v1, %v4206_v3   ;;  %v8527_v3 = vmov %v8511_v57  ;;  %4250 = vst.msk [vmem:[%s6799_s27 + $0x30] sm:$0xff] (%p8282_p5), %vm4243_vm5, %v4233_v40 }
 0x4b1   : > { %4251 = vst.msk [vmem:[%s6799_s27 + $0x38] sm:$0xff] (%p8282_p5), %vm4243_vm5, %v4234_v48  ;;  %v8558_v41 = vld [vmem:[#allocation6_spill] sm:$0xff] (%p8282_p5) }
 0x4b2   : >> { %v8522_v63 = vmov %v8277_v1  ;;  %4253 = vst.msk [vmem:[%s6799_s27 + $0x48] sm:$0xff] (%p8282_p5), %vm4243_vm5, %v4236_v47  ;;  %v4242_v29 = vsel (%p8282_p5), %vm4226_vm4, %v8558_v41, %v8520_v35 }
 0x4b3   : >> { %v8525_v1 = vmov %v8522_v63  ;;  %v4241_v30 = vsel (%p8282_p5), %vm4226_vm4, %v8513_v51, %v8522_v63  ;;  %4257 = vst.msk [vmem:[%s6799_s27 + $0x68] sm:$0xff] (%p8282_p5), %vm4243_vm5, %v4240_v53 }
 0x4b4   : > { %4258 = vst.msk [vmem:[%s6799_s27 + $0x70] sm:$0xff] %vm4243_vm5, %v4241_v30 }
 0x4b5   : > { %4259 = vst.msk [vmem:[%s6799_s27 + $0x78] sm:$0xff] %vm4243_vm5, %v4242_v29 }
 0x4b6 PF: > { %s14_s14 = sadd.s32 1, %s6610_s14   ;;  %s8559_s12 = smov %s6606_s13 }
 0x4b7   : > { %p11_p6 = scmp.ge.s32.totalorder %s14_s14, 4   ;;  %s8560_s13 = smov %s8562_s15 }
 0x4b9   :  { %13 = sbr.rel (!%p11_p6) target bundleno = 2 (0x2), region = 118 }

// kernel: input_transition_forward.3
= control target key start
LH: loop header
LB: loop body
LE: loop exit
PB: predicated region body
PF: predicated region fallthrough
CT: control target
= control target key end

     0   :  { %s506_s12 = smov 0   ;;  %s508_s13 = smov 0   ;;  %s565_s0 = inlined_call_operand.vmem [shape: bf16[2,16,512], index: 0, kind: input, shape index: {}]   ;;  %s566_s1 = inlined_call_operand.vmem [shape: f32[16,1], index: 1, kind: input, shape index: {}]   ;;  %s567_s2 = inlined_call_operand.vmem [shape: f32[16,1], index: 2, kind: input, shape index: {}]   ;;  %s568_s3 = inlined_call_operand.vmem [shape: f32[2,16,512], index: 3, kind: output, shape index: {}]  }
   0x1   :  { %s510_s14 = smov 0  }
   0x2 LB: > { %s25_s15 = sadd.s32 1, %s479_s13  ;;  %p401_p0 = scmp.ge.s32.totalorder %s483_s14, 1  ;;  %s483_s14 = sphi %s510_s14, %s13_s14   ;;  %s479_s13 = sphi %s508_s13, %s570_s13   ;;  %s475_s12 = sphi %s506_s12, %s569_s12  }
   0x3   : > { %p27_p1 = scmp.ge.s32.totalorder %s25_s15, 2  ;;  %p158_p2 = scmp.lt.s32.totalorder %s483_s14, 3 }
   0x5   : > { %s572_s15 = smov (%p27_p1, %s25_s15), 0  ;;  %p159_p3 = pnand %p401_p0, %p158_p2 }
   0x6   : > { %p191_p4 = scmp.lt.s32.totalorder (!%p159_p3), %s475_s12, 1 }
   0x7   : > { %162 = sbr.rel (%p159_p3) target bundleno = 157 (0x9d), region = 32 }
   0xc   : > { %v242_v0 = vld [vmem:[%s567_s2] sm:$0xff]  ;;  %v485_v2 = vmov 0   ;;  %v243_v3 = vld [vmem:[%s567_s2 + $0x8] sm:$0xff]  ;;  %s574_s12 = smov (!%p191_p4, %s475_s12), 1 }
   0xd   : > { %v222_v1 = vld [vmem:[%s566_s1] sm:$0xff]  ;;  %444 = vset.pattern.permute.xlu1 %v485_v2  ;;  %443 = vset.pattern.permute.xlu0 %v485_v2  ;;  %v223_v4 = vld [vmem:[%s566_s1 + $0x8] sm:$0xff]  ;;  %s416_s24 = sshll.u32 %s574_s12, 5  ;;  %s417_s28 = sshll.u32 %s574_s12, 6 }
   0xe   : > { %246 = vperm.xlu1 %444, %v242_v0   ;;  %226 = vperm.xlu0 %443, %v222_v1   ;;  %s198_s27 = scalar_lea.vmem %s565_s0, %s416_s24  ;;  %s546_s4 = scalar_lea.vmem %s568_s3, %s417_s28 }
   0xf   : > { %v210_v5 = vld [vmem:[%s198_s27] sm:$0xff]  ;;  %v211_v6 = vld [vmem:[%s198_s27 + $0x8] sm:$0xff]  ;;  %v212_v17 = vld [vmem:[%s198_s27 + $0x10] sm:$0xff] }
  0x10   : > { %v214_v7 = vunpack.c.l.bf16 %v210_v5  ;;  %v215_v8 = vunpack.c.h.bf16 %v210_v5  ;;  %v216_v9 = vunpack.c.l.bf16 %v211_v6  ;;  %v217_v10 = vunpack.c.h.bf16 %v211_v6  ;;  %v213_v18 = vld [vmem:[%s198_s27 + $0x18] sm:$0xff] }
  0x11   : > { %v218_v23 = vunpack.c.l.bf16 %v212_v17  ;;  %v219_v24 = vunpack.c.h.bf16 %v212_v17  ;;  %v220_v25 = vunpack.c.l.bf16 %v213_v18  ;;  %v221_v29 = vunpack.c.h.bf16 %v213_v18 }
  0x16   : > { %251 = vperm.xlu1 %444, %v243_v3   ;;  %231 = vperm.xlu0 %443, %v223_v4  }
  0x80   : > { %v247_v11 = vpop.permute.xlu1 %246  ;;  %v227_v12 = vpop.permute.xlu0 %226 }
  0x81   : > { %v234_v13 = vmul.f32 %v227_v12, %v214_v7  ;;  %v235_v14 = vmul.f32 %v227_v12, %v215_v8  ;;  %v236_v15 = vmul.f32 %v227_v12, %v216_v9  ;;  %v237_v16 = vmul.f32 %v227_v12, %v217_v10 }
  0x83   : > { %v254_v19 = vadd.f32 %v247_v11, %v234_v13  ;;  %v255_v20 = vadd.f32 %v247_v11, %v235_v14  ;;  %v256_v21 = vadd.f32 %v247_v11, %v236_v15  ;;  %v257_v22 = vadd.f32 %v247_v11, %v237_v16 }
  0x85   : > { %v270_v26 = vmul.f32 1.442695, %v254_v19  ;;  %v272_v27 = vmul.f32 1.442695, %v255_v20  ;;  %v274_v28 = vmul.f32 1.442695, %v256_v21 }
  0x86   : > { %v276_v30 = vmul.f32 1.442695, %v257_v22  ;;  %vm262_vm0 = vcmp.gt.f32.partialorder %v254_v19, 0.0  ;;  %vm263_vm1 = vcmp.gt.f32.partialorder %v255_v20, 0.0  ;;  %vm264_vm2 = vcmp.gt.f32.partialorder %v256_v21, 0.0 }
  0x87   : > { %445 = vpow2.f32 %v270_v26  ;;  %vm265_vm3 = vcmp.gt.f32.partialorder %v257_v22, 0.0 }
  0x88   : > { %v232_v31 = vpop.permute.xlu0 %231  ;;  %447 = vpow2.f32 %v272_v27  ;;  %v252_v35 = vpop.permute.xlu1 %251 }
  0x89   : > { %v238_v32 = vmul.f32 %v232_v31, %v218_v23  ;;  %v239_v33 = vmul.f32 %v232_v31, %v219_v24  ;;  %v240_v34 = vmul.f32 %v232_v31, %v220_v25  ;;  %449 = vpow2.f32 %v274_v28 }
  0x8a   : > { %v241_v36 = vmul.f32 %v232_v31, %v221_v29  ;;  %451 = vpow2.f32 %v276_v30 }
  0x8b   : > { %v258_v37 = vadd.f32 %v252_v35, %v238_v32  ;;  %v259_v38 = vadd.f32 %v252_v35, %v239_v33  ;;  %v260_v39 = vadd.f32 %v252_v35, %v240_v34 }
  0x8c   : > { %v261_v40 = vadd.f32 %v252_v35, %v241_v36 }
  0x8d   : > { %v278_v41 = vmul.f32 1.442695, %v258_v37  ;;  %v446_v42 = vpop.eup %445  ;;  %v280_v43 = vmul.f32 1.442695, %v259_v38  ;;  %v282_v44 = vmul.f32 1.442695, %v260_v39 }
  0x8e   : > { %v448_v45 = vpop.eup %447  ;;  %v406_v46 = vadd.f32 -1.0, %v446_v42  ;;  %v284_v47 = vmul.f32 1.442695, %v261_v40  ;;  %vm266_vm4 = vcmp.gt.f32.partialorder %v258_v37, 0.0  ;;  %vm267_vm5 = vcmp.gt.f32.partialorder %v259_v38, 0.0 }
  0x8f   : > { %453 = vpow2.f32 %v278_v41  ;;  %v450_v48 = vpop.eup %449  ;;  %v407_v49 = vadd.f32 -1.0, %v448_v45  ;;  %vm268_vm6 = vcmp.gt.f32.partialorder %v260_v39, 0.0  ;;  %vm269_vm7 = vcmp.gt.f32.partialorder %v261_v40, 0.0 }
  0x90   : > { %455 = vpow2.f32 %v280_v43  ;;  %v452_v50 = vpop.eup %451  ;;  %v408_v51 = vadd.f32 -1.0, %v450_v48  ;;  %v294_v52 = vsel %vm262_vm0, %v254_v19, %v406_v46 }
  0x91   : > { %457 = vpow2.f32 %v282_v44  ;;  %v409_v53 = vadd.f32 -1.0, %v452_v50  ;;  %v295_v54 = vsel %vm263_vm1, %v255_v20, %v407_v49  ;;  %302 = vst [vmem:[%s546_s4] sm:$0xff] %v294_v52 }
  0x92   : > { %459 = vpow2.f32 %v284_v47  ;;  %v296_v55 = vsel %vm264_vm2, %v256_v21, %v408_v51  ;;  %303 = vst [vmem:[%s546_s4 + $0x8] sm:$0xff] %v295_v54 }
  0x93   : > { %v297_v56 = vsel %vm265_vm3, %v257_v22, %v409_v53  ;;  %304 = vst [vmem:[%s546_s4 + $0x10] sm:$0xff] %v296_v55 }
  0x94   : > { %305 = vst [vmem:[%s546_s4 + $0x18] sm:$0xff] %v297_v56 }
  0x95   : > { %v454_v57 = vpop.eup %453 }
  0x96   : > { %v456_v58 = vpop.eup %455  ;;  %v410_v59 = vadd.f32 -1.0, %v454_v57 }
  0x97   : > { %v458_v60 = vpop.eup %457  ;;  %v411_v61 = vadd.f32 -1.0, %v456_v58 }
  0x98   : > { %v460_v62 = vpop.eup %459  ;;  %v412_v63 = vadd.f32 -1.0, %v458_v60  ;;  %v298_v0 = vsel %vm266_vm4, %v258_v37, %v410_v59 }
  0x99   : > { %v413_v1 = vadd.f32 -1.0, %v460_v62  ;;  %v299_v2 = vsel %vm267_vm5, %v259_v38, %v411_v61  ;;  %306 = vst [vmem:[%s546_s4 + $0x20] sm:$0xff] %v298_v0 }
  0x9a   : > { %v300_v3 = vsel %vm268_vm6, %v260_v39, %v412_v63  ;;  %307 = vst [vmem:[%s546_s4 + $0x28] sm:$0xff] %v299_v2 }
  0x9b   : > { %v301_v4 = vsel %vm269_vm7, %v261_v40, %v413_v1  ;;  %308 = vst [vmem:[%s546_s4 + $0x30] sm:$0xff] %v300_v3 }
  0x9c   : > { %309 = vst [vmem:[%s546_s4 + $0x38] sm:$0xff] %v301_v4 }
  0x9d PF: > { %s13_s14 = sadd.s32 1, %s483_s14   ;;  %s569_s12 = smov %s479_s13 }
  0x9e   : > { %p10_p5 = scmp.ge.s32.totalorder %s13_s14, 4   ;;  %s570_s13 = smov %s572_s15 }
  0xa0   :  { %12 = sbr.rel (!%p10_p5) target bundleno = 2 (0x2), region = 62 }

</bundles_post_ra>
